<compile_context>
chip_gen: v7x
topology: tpu7x:2x2x1
jax: 0.10.0
libtpu: 0.0.40
codegen_flags: <defaults>
</compile_context>

<pallas_src>
import functools
import math

import jax
import jax.numpy as jnp
from jax.experimental import pallas as pl
from jax.experimental.pallas import tpu as pltpu


# ----------------------------------------------------------------------------
# helpers
# ----------------------------------------------------------------------------

def _round_up(x, m):
    return (x + m - 1) // m * m


def _cparams(semantics):
    return pltpu.CompilerParams(
        dimension_semantics=semantics,
        vmem_limit_bytes=48 * 1024 * 1024)   # above 16/32 MiB default, < v7x 64 MiB


def _apply_act(x, act):
    if act == "relu":
        return jnp.maximum(x, 0.0)
    if act == "sigmoid":
        return jax.nn.sigmoid(x)
    if act == "gelu":
        # TODO(synk): torch nn.GELU defaults to exact erf; tanh approx used here.
        return jax.nn.gelu(x, approximate=True)
    return x


# ----------------------------------------------------------------------------
# Tiled matmul kernels:  out = act(x @ w + bias) [+ residual]
# ----------------------------------------------------------------------------

def _mm_kernel(x_ref, w_ref, b_ref, o_ref, acc_ref, *, act):
    k = pl.program_id(2)

    @pl.when(k == 0)
    def _init():
        acc_ref[...] = jnp.zeros_like(acc_ref)

    acc_ref[...] += jnp.dot(x_ref[...], w_ref[...],
                            preferred_element_type=jnp.float32)

    @pl.when(k == pl.num_programs(2) - 1)
    def _finalize():
        acc = _apply_act(acc_ref[...] + b_ref[...], act)
        o_ref[...] = acc.astype(o_ref.dtype)


def _mm_res_kernel(x_ref, w_ref, b_ref, r_ref, o_ref, acc_ref, *, act):
    k = pl.program_id(2)

    @pl.when(k == 0)
    def _init():
        acc_ref[...] = jnp.zeros_like(acc_ref)

    acc_ref[...] += jnp.dot(x_ref[...], w_ref[...],
                            preferred_element_type=jnp.float32)

    @pl.when(k == pl.num_programs(2) - 1)
    def _finalize():
        acc = _apply_act(acc_ref[...] + b_ref[...], act)
        acc = acc + r_ref[...].astype(jnp.float32)          # residual after act
        o_ref[...] = acc.astype(o_ref.dtype)


def matmul_bias_act(x, w, bias, *, act="none", residual=None,
                    residual_rows=None, out_dtype=jnp.bfloat16,
                    alias_residual=False):
    """Tiled MXU matmul with fused bias / activation / residual epilogue.

    x:(M,K)  w:(K,N)  bias:(N,)
    residual: (M,N), or (residual_rows,N) broadcast over M//residual_rows
    batches (used for pos_embed — never materialized at batch size in HBM).
    """
    M, K = x.shape
    K2, N = w.shape
    assert K == K2
    x = x.astype(jnp.bfloat16)
    w = w.astype(jnp.bfloat16)
    bias = bias.reshape(1, N).astype(jnp.float32)

    # --- tile sizes (full-extent blocks are always legal; else 8/128-aligned)
    if residual is not None and residual_rows is not None:
        mb = residual_rows
        assert M % mb == 0 and mb % 8 == 0
        tm = math.gcd(mb, 256)
    else:
        tm = min(256, _round_up(M, 8))
    if N <= 256:
        tn = N
    elif N % 256 == 0:
        tn = 256
    elif N % 128 == 0:
        tn = 128
    else:
        tn = N
    if K <= 1024:
        tk = K
    elif K % 256 == 0:
        tk = 256
    elif K % 128 == 0:
        tk = 128
    else:
        tk = K

    Mp = _round_up(M, tm)
    if Mp != M:
        x = jnp.pad(x, ((0, Mp - M), (0, 0)))
        if residual is not None and residual_rows is None:
            residual = jnp.pad(residual, ((0, Mp - M), (0, 0)))
    nm, nn, nk = Mp // tm, N // tn, K // tk

    in_specs = [
        pl.BlockSpec((tm, tk), lambda i, j, k: (i, k)),
        pl.BlockSpec((tk, tn), lambda i, j, k: (k, j)),
        pl.BlockSpec((1, tn), lambda i, j, k: (0, j)),
    ]
    operands = [x, w, bias]
    io_aliases = {}
    if residual is None:
        kernel = functools.partial(_mm_kernel, act=act)
    else:
        kernel = functools.partial(_mm_res_kernel, act=act)
        if residual_rows is not None:
            nb = residual_rows // tm
            if nb == 1:
                r_map = lambda i, j, k: (0, j)
            else:
                r_map = lambda i, j, k: (i % nb, j)
        else:
            r_map = lambda i, j, k: (i, j)
        in_specs.append(pl.BlockSpec((tm, tn), r_map))
        operands.append(residual)
        if (alias_residual and residual.shape == (Mp, N)
                and residual.dtype == out_dtype):
            io_aliases = {3: 0}          # in-place residual update

    out = pl.pallas_call(
        kernel,
        out_shape=jax.ShapeDtypeStruct((Mp, N), out_dtype),
        grid_spec=pltpu.PrefetchScalarGridSpec(
            num_scalar_prefetch=0,
            grid=(nm, nn, nk),
            in_specs=in_specs,
            out_specs=pl.BlockSpec((tm, tn), lambda i, j, k: (i, j)),
            scratch_shapes=[pltpu.VMEM((tm, tn), jnp.float32)]),
        compiler_params=_cparams(("parallel", "parallel", "arbitrary")),
        input_output_aliases=io_aliases,
    )(*operands)
    return out[:M] if Mp != M else out


# ----------------------------------------------------------------------------
# Fused synthetic SAM block:  x + gelu(x @ w1) @ w2   (h stays in VMEM)
# ----------------------------------------------------------------------------

def _sam_block_kernel(x_ref, w1_ref, w2_ref, o_ref):
    x = x_ref[...]
    h = jnp.dot(x, w1_ref[...], preferred_element_type=jnp.float32)
    h = _apply_act(h, "gelu").astype(jnp.bfloat16)
    y = jnp.dot(h, w2_ref[...], preferred_element_type=jnp.float32)
    o_ref[...] = (x.astype(jnp.float32) + y).astype(o_ref.dtype)


def sam_block(x_sp, w1, w2):
    B, H, W, C = x_sp.shape
    M = B * H * W
    x = x_sp.reshape(M, C).astype(jnp.bfloat16)
    tm = min(256, _round_up(M, 8))
    Mp = _round_up(M, tm)
    if Mp != M:
        x = jnp.pad(x, ((0, Mp - M), (0, 0)))
    out = pl.pallas_call(
        _sam_block_kernel,
        out_shape=jax.ShapeDtypeStruct((Mp, C), jnp.bfloat16),
        grid_spec=pltpu.PrefetchScalarGridSpec(
            num_scalar_prefetch=0,
            grid=(Mp // tm,),
            in_specs=[pl.BlockSpec((tm, C), lambda i: (i, 0)),
                      pl.BlockSpec((C, C), lambda i: (0, 0)),
                      pl.BlockSpec((C, C), lambda i: (0, 0))],
            out_specs=pl.BlockSpec((tm, C), lambda i: (i, 0))),
        compiler_params=_cparams(("parallel",)),
        input_output_aliases={0: 0},        # in-place residual block update
    )(x, w1.astype(jnp.bfloat16), w2.astype(jnp.bfloat16))
    out = out[:M] if Mp != M else out
    return out.reshape(B, H, W, C)


# ----------------------------------------------------------------------------
# Fused gate residual:  out = base + sigmoid(gate_logit) * other
# ----------------------------------------------------------------------------

def _gated_add_kernel(g_ref, base_ref, other_ref, o_ref):
    g = jax.nn.sigmoid(g_ref[...].astype(jnp.float32))       # (tm, 1) lane-bcast
    o_ref[...] = (base_ref[...].astype(jnp.float32)
                  + g * other_ref[...].astype(jnp.float32)).astype(o_ref.dtype)


def gated_add(logit, base_sp, other_sp):
    B, H, W, C = base_sp.shape
    M = B * H * W
    base = base_sp.reshape(M, C).astype(jnp.bfloat16)
    other = other_sp.reshape(M, C).astype(jnp.bfloat16)
    tm = min(512, _round_up(M, 8))
    Mp = _round_up(M, tm)
    if Mp != M:
        logit = jnp.pad(logit, ((0, Mp - M), (0, 0)))
        base = jnp.pad(base, ((0, Mp - M), (0, 0)))
        other = jnp.pad(other, ((0, Mp - M), (0, 0)))
    out = pl.pallas_call(
        _gated_add_kernel,
        out_shape=jax.ShapeDtypeStruct((Mp, C), jnp.bfloat16),
        grid_spec=pltpu.PrefetchScalarGridSpec(
            num_scalar_prefetch=0,
            grid=(Mp // tm,),
            in_specs=[pl.BlockSpec((tm, 1), lambda i: (i, 0)),
                      pl.BlockSpec((tm, C), lambda i: (i, 0)),
                      pl.BlockSpec((tm, C), lambda i: (i, 0))],
            out_specs=pl.BlockSpec((tm, C), lambda i: (i, 0))),
        compiler_params=_cparams(("parallel",)),
    )(logit, base, other)
    out = out[:M] if Mp != M else out
    return out.reshape(B, H, W, C)


def gate_logit(x_sp, gate_p):
    """3x3 embed->1 gate conv logits WITHOUT im2col and without a lane-1 Pallas
    store: h = x @ Wr (channel->9 taps, Pallas MXU) then a 9-tap spatial
    shift-sum over the tiny 9-channel tensor (plain XLA fusion glue)."""
    B, H, W, C = x_sp.shape
    h = matmul_bias_act(x_sp.reshape(B * H * W, C), gate_p["wr"],
                        jnp.zeros((9,), jnp.float32), act="none",
                        out_dtype=jnp.float32)
    hp = jnp.pad(h.reshape(B, H, W, 9), ((0, 0), (1, 1), (1, 1), (0, 0)))
    acc = jnp.zeros((B, H, W), jnp.float32)
    for t in range(9):
        di, dj = t // 3, t % 3
        acc = acc + hp[:, di:di + H, dj:dj + W, t]
    return (acc + gate_p["bias"][0]).reshape(B * H * W, 1)


# ----------------------------------------------------------------------------
# ConvModule (conv + folded BN + act).  1x1 convs: pure reshape, no im2col.
# ----------------------------------------------------------------------------

def _im2col(x, KH, KW, stride, padding):
    # TODO(synk): remaining im2col path (7x7 stem conv, 3x3 multi-channel
    # convs); a halo-tiled tap-accumulate Pallas conv would remove the KH*KW
    # HBM amplification here as well.  bf16 already halves it.
    B, H, W, C = x.shape
    if padding:
        x = jnp.pad(x, ((0, 0), (padding, padding), (padding, padding), (0, 0)))
    Hp, Wp = x.shape[1], x.shape[2]
    Ho = (Hp - KH) // stride + 1
    Wo = (Wp - KW) // stride + 1
    cols = []
    for i in range(KH):
        for j in range(KW):
            cols.append(x[:, i:i + (Ho - 1) * stride + 1:stride,
                           j:j + (Wo - 1) * stride + 1:stride, :])
    patches = jnp.concatenate(cols, axis=-1).reshape(B * Ho * Wo, KH * KW * C)
    return patches, Ho, Wo


def conv2d(x, cm, *, stride=1, padding=0, act="relu", out_dtype=jnp.bfloat16,
           residual=None, alias_residual=False):
    B, H, W, C = x.shape
    KH, KW, Cin, Cout = cm["w"].shape
    wm = cm["w"].reshape(KH * KW * Cin, Cout)
    if KH == 1 and KW == 1 and stride == 1 and padding == 0:
        xm, Ho, Wo = x.reshape(B * H * W, C), H, W
    else:
        xm, Ho, Wo = _im2col(x, KH, KW, stride, padding)
    out = matmul_bias_act(xm, wm, cm["b"], act=act, out_dtype=out_dtype,
                          residual=residual, alias_residual=alias_residual)
    return out.reshape(B, Ho, Wo, Cout)


# ----------------------------------------------------------------------------
# Parameters (xavier-uniform like init_weights(); BN folded on the host)
# ----------------------------------------------------------------------------

BN_EPS = 1e-5
BN_SCALE = 1.0 / math.sqrt(1.0 + BN_EPS)   # eval-mode BN (mean=0, var=1) fold


def _xavier(key, shape):
    if len(shape) == 4:
        fan_in = shape[0] * shape[1] * shape[2]
        fan_out = shape[0] * shape[1] * shape[3]
    else:
        fan_in, fan_out = shape[0], shape[1]
    bound = math.sqrt(6.0 / (fan_in + fan_out))
    return jax.random.uniform(key, shape, jnp.float32, -bound, bound)


def conv_module_params(key, kh, kw, cin, cout, *, has_bn=True):
    w = _xavier(key, (kh, kw, cin, cout))
    if has_bn:
        # TODO(synk): general BN fold needs gamma/sqrt(var+eps) and
        # beta - mean*gamma/sqrt(var+eps) from a real checkpoint.
        w = w * BN_SCALE
    return {"w": w.astype(jnp.bfloat16), "b": jnp.zeros((cout,), jnp.float32)}


def gate_params(key, embed_dim):
    w = _xavier(key, (3, 3, embed_dim, 1))          # ConvModule(embed->1, k=3)
    wr = w.reshape(9, embed_dim).T                  # (C, 9): col t = tap t//3,t%3
    return {"wr": wr.astype(jnp.bfloat16), "bias": jnp.zeros((1,), jnp.float32)}


def build_params(key, in_channels, inner_dim, embed_dim, depth, out_channels,
                 patch, grid_hw):
    keys = iter(jax.random.split(key, 256))
    p = {}
    p["stem"] = [
        conv_module_params(next(keys), 7, 7, in_channels, inner_dim),
        conv_module_params(next(keys), 3, 3, inner_dim, inner_dim),
        conv_module_params(next(keys), 3, 3, inner_dim, inner_dim),
        conv_module_params(next(keys), 1, 1, inner_dim, embed_dim),
    ]
    p["gates"] = [gate_params(next(keys), embed_dim)
                  for _ in range(2 * (depth + 1))]
    p["adap"] = [[
        conv_module_params(next(keys), 1, 1, embed_dim, inner_dim),
        conv_module_params(next(keys), 3, 3, inner_dim, inner_dim),
        conv_module_params(next(keys), 1, 1, inner_dim, embed_dim),
    ] for _ in range(depth)]
    p["semantic_neck"] = [
        conv_module_params(next(keys), 1, 1, embed_dim, out_channels),
        conv_module_params(next(keys), 3, 3, out_channels, out_channels),
    ]
    # TODO(synk): sambackbone is an external SAM ViT; replaced by a synthetic
    # deterministic backbone (patch-embed, pos-embed, residual MLP blocks,
    # conv neck) that runs through the same Pallas kernels.
    pe_w = _xavier(next(keys), (patch, patch, in_channels, embed_dim))
    p["patch_embed"] = {
        "w": pe_w.reshape(patch * patch * in_channels, embed_dim).astype(jnp.bfloat16),
        "b": jnp.zeros((embed_dim,), jnp.float32)}
    p["pos_embed"] = 0.02 * jax.random.normal(
        next(keys), (1, grid_hw, grid_hw, embed_dim), jnp.float32)
    p["blocks"] = [{
        "w1": _xavier(next(keys), (embed_dim, embed_dim)).astype(jnp.bfloat16),
        "w2": _xavier(next(keys), (embed_dim, embed_dim)).astype(jnp.bfloat16),
    } for _ in range(depth)]
    p["sam_neck"] = [
        conv_module_params(next(keys), 1, 1, embed_dim, out_channels, has_bn=False),
        conv_module_params(next(keys), 3, 3, out_channels, out_channels, has_bn=False),
    ]
    return p


# ----------------------------------------------------------------------------
# Module pieces
# ----------------------------------------------------------------------------

def stem_layer(x, s):
    x = conv2d(x, s[0], stride=4, padding=3, act="relu")
    x = conv2d(x, s[1], stride=2, padding=1, act="relu")
    x = conv2d(x, s[2], stride=2, padding=1, act="relu")
    x = conv2d(x, s[3], act="relu")                        # 1x1 -> embed_dim
    return x


def adap_layer(x, p):
    """x + adap(x); residual fused into the last 1x1 conv (in-place via alias)."""
    B, H, W, E = x.shape
    a = conv2d(x, p[0], act="relu")
    a = conv2d(a, p[1], padding=1, act="relu")
    return conv2d(a, p[2], act="relu",
                  residual=x.reshape(B * H * W, E), alias_residual=True)


def synthetic_sam_neck(x, p):
    x = conv2d(x, p[0], act="none")
    x = conv2d(x, p[1], padding=1, act="none", out_dtype=jnp.float32)
    return x


def semantic_neck(x, p):
    x = conv2d(x, p[0], act="relu")
    x = conv2d(x, p[1], padding=1, act="none", out_dtype=jnp.float32)  # act=None
    return x


# ----------------------------------------------------------------------------
# SAMAdaptor.forward
# ----------------------------------------------------------------------------

def sam_adaptor_forward(inputs_nchw, params, depth, patch):
    x = jnp.transpose(inputs_nchw, (0, 2, 3, 1)).astype(jnp.bfloat16)  # NHWC
    B, H, W, Cin = x.shape
    Gh, Gw = H // patch, W // patch
    E = params["pos_embed"].shape[-1]

    # x0 = sambackbone.patch_embed(inputs) + pos_embed
    # stride == kernel -> pure space-to-depth reshape (no im2col); pos_embed is
    # fused into the matmul epilogue, un-broadcast, mapped per batch.
    xp = x.reshape(B, Gh, patch, Gw, patch, Cin)
    xp = xp.transpose(0, 1, 3, 2, 4, 5).reshape(B * Gh * Gw, patch * patch * Cin)
    pe = params["patch_embed"]
    x0 = matmul_bias_act(xp, pe["w"], pe["b"], act="none",
                         residual=params["pos_embed"].reshape(Gh * Gw, E),
                         residual_rows=Gh * Gw)
    x0 = x0.reshape(B, Gh, Gw, E)

    # x1 = stem_layer(inputs)
    x1 = stem_layer(x, params["stem"])

    def cross_gate(x0_c, x1_c, g0, g1):
        # both residuals use the PRE-update tensors (matches the reference:
        # res_x1 multiplies x0_rearrange taken before x0 was updated)
        l0 = gate_logit(x0_c, g0)
        l1 = gate_logit(x1_c, g1)
        x0_n = gated_add(l0, x0_c, x1_c)     # x0 += sigmoid(g0(x0)) * x1
        x1_n = gated_add(l1, x1_c, x0_c)     # x1 += sigmoid(g1(x1)) * x0_old
        return x0_n, x1_n

    x0, x1 = cross_gate(x0, x1, params["gates"][0], params["gates"][1])

    for idx in range(depth):
        blk = params["blocks"][idx]
        x0 = sam_block(x0, blk["w1"], blk["w2"])          # synthetic ViT block
        x1 = adap_layer(x1, params["adap"][idx])          # adap(x1) + x1
        x0, x1 = cross_gate(x0, x1, params["gates"][2 * idx + 2],
                            params["gates"][2 * idx + 3])

    x0 = synthetic_sam_neck(x0, params["sam_neck"])
    x1 = semantic_neck(x1, params["semantic_neck"])
    # back to NCHW like the reference module outputs
    return jnp.transpose(x0, (0, 3, 1, 2)), jnp.transpose(x1, (0, 3, 1, 2))


# ----------------------------------------------------------------------------

if __name__ == "__main__":
    IN_CHANNELS = 3
    INNER_DIM = 32
    EMBED_DIM = 128      # lane-aligned channel width (128-wide TPU lanes)
    DEPTH = 2
    OUT_CHANNELS = 64
    IMG = 64             # stem downsamples 4*2*2 = 16x ; patch_embed stride 16
    PATCH = 16
    GRID = IMG // PATCH

    key = jax.random.PRNGKey(0)
    k_in, k_par = jax.random.split(key)
    inputs = jax.random.normal(k_in, (2, IN_CHANNELS, IMG, IMG), jnp.float32)
    params = build_params(k_par, IN_CHANNELS, INNER_DIM, EMBED_DIM, DEPTH,
                          OUT_CHANNELS, PATCH, GRID)

    fwd = jax.jit(functools.partial(sam_adaptor_forward, depth=DEPTH,
                                    patch=PATCH))
    x0_out, x1_out = fwd(inputs, params)
    jax.block_until_ready((x0_out, x1_out))

    assert x0_out.shape == (2, OUT_CHANNELS, GRID, GRID), x0_out.shape
    assert x1_out.shape == (2, OUT_CHANNELS, GRID, GRID), x1_out.shape
    assert bool(jnp.all(jnp.isfinite(x0_out)))
    assert bool(jnp.all(jnp.isfinite(x1_out)))
    print("KERNEL_OK")
</pallas_src>

<mosaic_0001>
module attributes {stable_mosaic.version = 11 : i64} {
  func.func @_mm_res_kernel(%arg0: i32, %arg1: i32, %arg2: i32, %arg3: memref<16x768xbf16, #tpu.memory_space<vmem>>, %arg4: memref<768x128xbf16, #tpu.memory_space<vmem>>, %arg5: memref<1x128xf32, #tpu.memory_space<vmem>>, %arg6: memref<16x128xf32, #tpu.memory_space<vmem>>, %arg7: memref<16x128xbf16, #tpu.memory_space<vmem>>, %arg8: memref<16x128xf32, #tpu.memory_space<vmem>>) attributes {dimension_semantics = [#tpu.dimension_semantics<parallel>, #tpu.dimension_semantics<parallel>, #tpu.dimension_semantics<arbitrary>], iteration_bounds = array<i64: 2, 1, 1>, scalar_prefetch = 0 : i64, scratch_operands = 1 : i64, tpu.core_type = #tpu.core_type<tc>, window_params = [{transform_indices = @transform_0, window_bounds = array<i64: 16, 768>}, {transform_indices = @transform_1, window_bounds = array<i64: 768, 128>}, {transform_indices = @transform_2, window_bounds = array<i64: 1, 128>}, {transform_indices = @transform_3, window_bounds = array<i64: 16, 128>}, {transform_indices = @transform_4, window_bounds = array<i64: 16, 128>}]} {
    %c0_i32 = arith.constant 0 : i32
    %0 = arith.cmpi eq, %arg2, %c0_i32 : i32
    %1 = arith.extui %0 : i1 to i32
    %c0_i32_0 = arith.constant 0 : i32
    %2 = arith.cmpi ne, %1, %c0_i32_0 : i32
    scf.if %2 {
      %cst_10 = arith.constant 0.000000e+00 : f32
      %12 = vector.broadcast %cst_10 : f32 to vector<16x128xf32>
      %c0_11 = arith.constant 0 : index
      %c0_12 = arith.constant 0 : index
      %13 = vector.load %arg8[%c0_11, %c0_12] : memref<16x128xf32, #tpu.memory_space<vmem>>, vector<16x128xf32>
      tpu.vector_store %arg8[%c0_11, %c0_12], %12 {strides = array<i32>} : memref<16x128xf32, #tpu.memory_space<vmem>>, vector<16x128xf32>,
    } else {
    }
    %c0 = arith.constant 0 : index
    %c0_1 = arith.constant 0 : index
    %3 = vector.load %arg8[%c0, %c0_1] : memref<16x128xf32, #tpu.memory_space<vmem>>, vector<16x128xf32>
    %c0_2 = arith.constant 0 : index
    %c0_3 = arith.constant 0 : index
    %4 = vector.load %arg3[%c0_2, %c0_3] : memref<16x768xbf16, #tpu.memory_space<vmem>>, vector<16x768xbf16>
    %c0_4 = arith.constant 0 : index
    %c0_5 = arith.constant 0 : index
    %5 = vector.load %arg4[%c0_4, %c0_5] : memref<768x128xbf16, #tpu.memory_space<vmem>>, vector<768x128xbf16>
    %cst = arith.constant dense<0.000000e+00> : vector<16x128xf32>
    %6 = tpu.matmul %4, %5, %cst {dimension_numbers = #tpu.dot_dimension_numbers<[1], [0], [0], [1], [0, 0, 1, 1], [], []>} : vector<16x768xbf16>, vector<768x128xbf16>, vector<16x128xf32> -> vector<16x128xf32>
    %7 = arith.addf %3, %6 : vector<16x128xf32>
    %c0_6 = arith.constant 0 : index
    %c0_7 = arith.constant 0 : index
    %8 = vector.load %arg8[%c0_6, %c0_7] : memref<16x128xf32, #tpu.memory_space<vmem>>, vector<16x128xf32>
    tpu.vector_store %arg8[%c0_6, %c0_7], %7 {strides = array<i32>} : memref<16x128xf32, #tpu.memory_space<vmem>>, vector<16x128xf32>,
    %c0_i32_8 = arith.constant 0 : i32
    %9 = arith.cmpi eq, %arg2, %c0_i32_8 : i32
    %10 = arith.extui %9 : i1 to i32
    %c0_i32_9 = arith.constant 0 : i32
    %11 = arith.cmpi ne, %10, %c0_i32_9 : i32
    scf.if %11 {
      %c0_10 = arith.constant 0 : index
      %c0_11 = arith.constant 0 : index
      %12 = vector.load %arg8[%c0_10, %c0_11] : memref<16x128xf32, #tpu.memory_space<vmem>>, vector<16x128xf32>
      %c0_12 = arith.constant 0 : index
      %c0_13 = arith.constant 0 : index
      %13 = vector.load %arg5[%c0_12, %c0_13] : memref<1x128xf32, #tpu.memory_space<vmem>>, vector<1x128xf32>
      %14 = vector.broadcast %13 : vector<1x128xf32> to vector<16x128xf32>
      %15 = arith.addf %12, %14 : vector<16x128xf32>
      %c0_14 = arith.constant 0 : index
      %c0_15 = arith.constant 0 : index
      %16 = vector.load %arg6[%c0_14, %c0_15] : memref<16x128xf32, #tpu.memory_space<vmem>>, vector<16x128xf32>
      %17 = arith.addf %15, %16 : vector<16x128xf32>
      %18 = arith.truncf %17 : vector<16x128xf32> to vector<16x128xbf16>
      %c0_16 = arith.constant 0 : index
      %c0_17 = arith.constant 0 : index
      %19 = vector.load %arg7[%c0_16, %c0_17] : memref<16x128xbf16, #tpu.memory_space<vmem>>, vector<16x128xbf16>
      tpu.vector_store %arg7[%c0_16, %c0_17], %18 {strides = array<i32>} : memref<16x128xbf16, #tpu.memory_space<vmem>>, vector<16x128xbf16>,
    } else {
    }
    return
  }
  func.func @transform_0(%arg0: i32, %arg1: i32, %arg2: i32) -> (i32, i32) {
    %c0_i32 = arith.constant 0 : i32
    return %arg0, %arg2 : i32, i32
  }
  func.func @transform_1(%arg0: i32, %arg1: i32, %arg2: i32) -> (i32, i32) {
    %c0_i32 = arith.constant 0 : i32
    return %arg2, %arg1 : i32, i32
  }
  func.func @transform_2(%arg0: i32, %arg1: i32, %arg2: i32) -> (i32, i32) {
    %c0_i32 = arith.constant 0 : i32
    %c0_i32_0 = arith.constant 0 : i32
    return %c0_i32, %arg1 : i32, i32
  }
  func.func @transform_3(%arg0: i32, %arg1: i32, %arg2: i32) -> (i32, i32) {
    %c0_i32 = arith.constant 0 : i32
    %c0_i32_0 = arith.constant 0 : i32
    return %c0_i32, %arg1 : i32, i32
  }
  func.func @transform_4(%arg0: i32, %arg1: i32, %arg2: i32) -> (i32, i32) {
    %c0_i32 = arith.constant 0 : i32
    return %arg0, %arg1 : i32, i32
  }
}

module attributes {stable_mosaic.version = 11 : i64} {
  func.func @_mm_kernel(%arg0: i32, %arg1: i32, %arg2: i32, %arg3: memref<32x128xbf16, #tpu.memory_space<vmem>>, %arg4: memref<128x9xbf16, #tpu.memory_space<vmem>>, %arg5: memref<1x9xf32, #tpu.memory_space<vmem>>, %arg6: memref<32x9xf32, #tpu.memory_space<vmem>>, %arg7: memref<32x9xf32, #tpu.memory_space<vmem>>) attributes {dimension_semantics = [#tpu.dimension_semantics<parallel>, #tpu.dimension_semantics<parallel>, #tpu.dimension_semantics<arbitrary>], iteration_bounds = array<i64: 1, 1, 1>, scalar_prefetch = 0 : i64, scratch_operands = 1 : i64, tpu.core_type = #tpu.core_type<tc>, window_params = [{transform_indices = @transform_0, window_bounds = array<i64: 32, 128>}, {transform_indices = @transform_1, window_bounds = array<i64: 128, 9>}, {transform_indices = @transform_2, window_bounds = array<i64: 1, 9>}, {transform_indices = @transform_3, window_bounds = array<i64: 32, 9>}]} {
    %c0_i32 = arith.constant 0 : i32
    %0 = arith.cmpi eq, %arg2, %c0_i32 : i32
    %1 = arith.extui %0 : i1 to i32
    %c0_i32_0 = arith.constant 0 : i32
    %2 = arith.cmpi ne, %1, %c0_i32_0 : i32
    scf.if %2 {
      %cst_10 = arith.constant 0.000000e+00 : f32
      %12 = vector.broadcast %cst_10 : f32 to vector<32x9xf32>
      %c0_11 = arith.constant 0 : index
      %c0_12 = arith.constant 0 : index
      %13 = vector.load %arg7[%c0_11, %c0_12] : memref<32x9xf32, #tpu.memory_space<vmem>>, vector<32x9xf32>
      tpu.vector_store %arg7[%c0_11, %c0_12], %12 {strides = array<i32>} : memref<32x9xf32, #tpu.memory_space<vmem>>, vector<32x9xf32>,
    } else {
    }
    %c0 = arith.constant 0 : index
    %c0_1 = arith.constant 0 : index
    %3 = vector.load %arg7[%c0, %c0_1] : memref<32x9xf32, #tpu.memory_space<vmem>>, vector<32x9xf32>
    %c0_2 = arith.constant 0 : index
    %c0_3 = arith.constant 0 : index
    %4 = vector.load %arg3[%c0_2, %c0_3] : memref<32x128xbf16, #tpu.memory_space<vmem>>, vector<32x128xbf16>
    %c0_4 = arith.constant 0 : index
    %c0_5 = arith.constant 0 : index
    %5 = vector.load %arg4[%c0_4, %c0_5] : memref<128x9xbf16, #tpu.memory_space<vmem>>, vector<128x9xbf16>
    %cst = arith.constant dense<0.000000e+00> : vector<32x9xf32>
    %6 = tpu.matmul %4, %5, %cst {dimension_numbers = #tpu.dot_dimension_numbers<[1], [0], [0], [1], [0, 0, 1, 1], [], []>} : vector<32x128xbf16>, vector<128x9xbf16>, vector<32x9xf32> -> vector<32x9xf32>
    %7 = arith.addf %3, %6 : vector<32x9xf32>
    %c0_6 = arith.constant 0 : index
    %c0_7 = arith.constant 0 : index
    %8 = vector.load %arg7[%c0_6, %c0_7] : memref<32x9xf32, #tpu.memory_space<vmem>>, vector<32x9xf32>
    tpu.vector_store %arg7[%c0_6, %c0_7], %7 {strides = array<i32>} : memref<32x9xf32, #tpu.memory_space<vmem>>, vector<32x9xf32>,
    %c0_i32_8 = arith.constant 0 : i32
    %9 = arith.cmpi eq, %arg2, %c0_i32_8 : i32
    %10 = arith.extui %9 : i1 to i32
    %c0_i32_9 = arith.constant 0 : i32
    %11 = arith.cmpi ne, %10, %c0_i32_9 : i32
    scf.if %11 {
      %c0_10 = arith.constant 0 : index
      %c0_11 = arith.constant 0 : index
      %12 = vector.load %arg7[%c0_10, %c0_11] : memref<32x9xf32, #tpu.memory_space<vmem>>, vector<32x9xf32>
      %c0_12 = arith.constant 0 : index
      %c0_13 = arith.constant 0 : index
      %13 = vector.load %arg5[%c0_12, %c0_13] : memref<1x9xf32, #tpu.memory_space<vmem>>, vector<1x9xf32>
      %14 = vector.broadcast %13 : vector<1x9xf32> to vector<32x9xf32>
      %15 = arith.addf %12, %14 : vector<32x9xf32>
      %c0_14 = arith.constant 0 : index
      %c0_15 = arith.constant 0 : index
      %16 = vector.load %arg6[%c0_14, %c0_15] : memref<32x9xf32, #tpu.memory_space<vmem>>, vector<32x9xf32>
      tpu.vector_store %arg6[%c0_14, %c0_15], %15 {strides = array<i32>} : memref<32x9xf32, #tpu.memory_space<vmem>>, vector<32x9xf32>,
    } else {
    }
    return
  }
  func.func @transform_0(%arg0: i32, %arg1: i32, %arg2: i32) -> (i32, i32) {
    %c0_i32 = arith.constant 0 : i32
    return %arg0, %arg2 : i32, i32
  }
  func.func @transform_1(%arg0: i32, %arg1: i32, %arg2: i32) -> (i32, i32) {
    %c0_i32 = arith.constant 0 : i32
    return %arg2, %arg1 : i32, i32
  }
  func.func @transform_2(%arg0: i32, %arg1: i32, %arg2: i32) -> (i32, i32) {
    %c0_i32 = arith.constant 0 : i32
    %c0_i32_0 = arith.constant 0 : i32
    return %c0_i32, %arg1 : i32, i32
  }
  func.func @transform_3(%arg0: i32, %arg1: i32, %arg2: i32) -> (i32, i32) {
    %c0_i32 = arith.constant 0 : i32
    return %arg0, %arg1 : i32, i32
  }
}

module attributes {stable_mosaic.version = 11 : i64} {
  func.func @_mm_kernel(%arg0: i32, %arg1: i32, %arg2: i32, %arg3: memref<256x147xbf16, #tpu.memory_space<vmem>>, %arg4: memref<147x32xbf16, #tpu.memory_space<vmem>>, %arg5: memref<1x32xf32, #tpu.memory_space<vmem>>, %arg6: memref<256x32xbf16, #tpu.memory_space<vmem>>, %arg7: memref<256x32xf32, #tpu.memory_space<vmem>>) attributes {dimension_semantics = [#tpu.dimension_semantics<parallel>, #tpu.dimension_semantics<parallel>, #tpu.dimension_semantics<arbitrary>], iteration_bounds = array<i64: 2, 1, 1>, scalar_prefetch = 0 : i64, scratch_operands = 1 : i64, tpu.core_type = #tpu.core_type<tc>, window_params = [{transform_indices = @transform_0, window_bounds = array<i64: 256, 147>}, {transform_indices = @transform_1, window_bounds = array<i64: 147, 32>}, {transform_indices = @transform_2, window_bounds = array<i64: 1, 32>}, {transform_indices = @transform_3, window_bounds = array<i64: 256, 32>}]} {
    %c0_i32 = arith.constant 0 : i32
    %0 = arith.cmpi eq, %arg2, %c0_i32 : i32
    %1 = arith.extui %0 : i1 to i32
    %c0_i32_0 = arith.constant 0 : i32
    %2 = arith.cmpi ne, %1, %c0_i32_0 : i32
    scf.if %2 {
      %cst_10 = arith.constant 0.000000e+00 : f32
      %12 = vector.broadcast %cst_10 : f32 to vector<256x32xf32>
      %c0_11 = arith.constant 0 : index
      %c0_12 = arith.constant 0 : index
      %13 = vector.load %arg7[%c0_11, %c0_12] : memref<256x32xf32, #tpu.memory_space<vmem>>, vector<256x32xf32>
      tpu.vector_store %arg7[%c0_11, %c0_12], %12 {strides = array<i32>} : memref<256x32xf32, #tpu.memory_space<vmem>>, vector<256x32xf32>,
    } else {
    }
    %c0 = arith.constant 0 : index
    %c0_1 = arith.constant 0 : index
    %3 = vector.load %arg7[%c0, %c0_1] : memref<256x32xf32, #tpu.memory_space<vmem>>, vector<256x32xf32>
    %c0_2 = arith.constant 0 : index
    %c0_3 = arith.constant 0 : index
    %4 = vector.load %arg3[%c0_2, %c0_3] : memref<256x147xbf16, #tpu.memory_space<vmem>>, vector<256x147xbf16>
    %c0_4 = arith.constant 0 : index
    %c0_5 = arith.constant 0 : index
    %5 = vector.load %arg4[%c0_4, %c0_5] : memref<147x32xbf16, #tpu.memory_space<vmem>>, vector<147x32xbf16>
    %cst = arith.constant dense<0.000000e+00> : vector<256x32xf32>
    %6 = tpu.matmul %4, %5, %cst {dimension_numbers = #tpu.dot_dimension_numbers<[1], [0], [0], [1], [0, 0, 1, 1], [], []>} : vector<256x147xbf16>, vector<147x32xbf16>, vector<256x32xf32> -> vector<256x32xf32>
    %7 = arith.addf %3, %6 : vector<256x32xf32>
    %c0_6 = arith.constant 0 : index
    %c0_7 = arith.constant 0 : index
    %8 = vector.load %arg7[%c0_6, %c0_7] : memref<256x32xf32, #tpu.memory_space<vmem>>, vector<256x32xf32>
    tpu.vector_store %arg7[%c0_6, %c0_7], %7 {strides = array<i32>} : memref<256x32xf32, #tpu.memory_space<vmem>>, vector<256x32xf32>,
    %c0_i32_8 = arith.constant 0 : i32
    %9 = arith.cmpi eq, %arg2, %c0_i32_8 : i32
    %10 = arith.extui %9 : i1 to i32
    %c0_i32_9 = arith.constant 0 : i32
    %11 = arith.cmpi ne, %10, %c0_i32_9 : i32
    scf.if %11 {
      %c0_10 = arith.constant 0 : index
      %c0_11 = arith.constant 0 : index
      %12 = vector.load %arg7[%c0_10, %c0_11] : memref<256x32xf32, #tpu.memory_space<vmem>>, vector<256x32xf32>
      %c0_12 = arith.constant 0 : index
      %c0_13 = arith.constant 0 : index
      %13 = vector.load %arg5[%c0_12, %c0_13] : memref<1x32xf32, #tpu.memory_space<vmem>>, vector<1x32xf32>
      %14 = vector.broadcast %13 : vector<1x32xf32> to vector<256x32xf32>
      %15 = arith.addf %12, %14 : vector<256x32xf32>
      %cst_14 = arith.constant 0.000000e+00 : f32
      %16 = vector.broadcast %cst_14 : f32 to vector<256x32xf32>
      %17 = arith.maximumf %15, %16 : vector<256x32xf32>
      %18 = arith.truncf %17 : vector<256x32xf32> to vector<256x32xbf16>
      %c0_15 = arith.constant 0 : index
      %c0_16 = arith.constant 0 : index
      %19 = vector.load %arg6[%c0_15, %c0_16] : memref<256x32xbf16, #tpu.memory_space<vmem>>, vector<256x32xbf16>
      tpu.vector_store %arg6[%c0_15, %c0_16], %18 {strides = array<i32>} : memref<256x32xbf16, #tpu.memory_space<vmem>>, vector<256x32xbf16>,
    } else {
    }
    return
  }
  func.func @transform_0(%arg0: i32, %arg1: i32, %arg2: i32) -> (i32, i32) {
    %c0_i32 = arith.constant 0 : i32
    return %arg0, %arg2 : i32, i32
  }
  func.func @transform_1(%arg0: i32, %arg1: i32, %arg2: i32) -> (i32, i32) {
    %c0_i32 = arith.constant 0 : i32
    return %arg2, %arg1 : i32, i32
  }
  func.func @transform_2(%arg0: i32, %arg1: i32, %arg2: i32) -> (i32, i32) {
    %c0_i32 = arith.constant 0 : i32
    %c0_i32_0 = arith.constant 0 : i32
    return %c0_i32, %arg1 : i32, i32
  }
  func.func @transform_3(%arg0: i32, %arg1: i32, %arg2: i32) -> (i32, i32) {
    %c0_i32 = arith.constant 0 : i32
    return %arg0, %arg1 : i32, i32
  }
}

module attributes {stable_mosaic.version = 11 : i64} {
  func.func @_mm_kernel(%arg0: i32, %arg1: i32, %arg2: i32, %arg3: memref<128x288xbf16, #tpu.memory_space<vmem>>, %arg4: memref<288x32xbf16, #tpu.memory_space<vmem>>, %arg5: memref<1x32xf32, #tpu.memory_space<vmem>>, %arg6: memref<128x32xbf16, #tpu.memory_space<vmem>>, %arg7: memref<128x32xf32, #tpu.memory_space<vmem>>) attributes {dimension_semantics = [#tpu.dimension_semantics<parallel>, #tpu.dimension_semantics<parallel>, #tpu.dimension_semantics<arbitrary>], iteration_bounds = array<i64: 1, 1, 1>, scalar_prefetch = 0 : i64, scratch_operands = 1 : i64, tpu.core_type = #tpu.core_type<tc>, window_params = [{transform_indices = @transform_0, window_bounds = array<i64: 128, 288>}, {transform_indices = @transform_1, window_bounds = array<i64: 288, 32>}, {transform_indices = @transform_2, window_bounds = array<i64: 1, 32>}, {transform_indices = @transform_3, window_bounds = array<i64: 128, 32>}]} {
    %c0_i32 = arith.constant 0 : i32
    %0 = arith.cmpi eq, %arg2, %c0_i32 : i32
    %1 = arith.extui %0 : i1 to i32
    %c0_i32_0 = arith.constant 0 : i32
    %2 = arith.cmpi ne, %1, %c0_i32_0 : i32
    scf.if %2 {
      %cst_10 = arith.constant 0.000000e+00 : f32
      %12 = vector.broadcast %cst_10 : f32 to vector<128x32xf32>
      %c0_11 = arith.constant 0 : index
      %c0_12 = arith.constant 0 : index
      %13 = vector.load %arg7[%c0_11, %c0_12] : memref<128x32xf32, #tpu.memory_space<vmem>>, vector<128x32xf32>
      tpu.vector_store %arg7[%c0_11, %c0_12], %12 {strides = array<i32>} : memref<128x32xf32, #tpu.memory_space<vmem>>, vector<128x32xf32>,
    } else {
    }
    %c0 = arith.constant 0 : index
    %c0_1 = arith.constant 0 : index
    %3 = vector.load %arg7[%c0, %c0_1] : memref<128x32xf32, #tpu.memory_space<vmem>>, vector<128x32xf32>
    %c0_2 = arith.constant 0 : index
    %c0_3 = arith.constant 0 : index
    %4 = vector.load %arg3[%c0_2, %c0_3] : memref<128x288xbf16, #tpu.memory_space<vmem>>, vector<128x288xbf16>
    %c0_4 = arith.constant 0 : index
    %c0_5 = arith.constant 0 : index
    %5 = vector.load %arg4[%c0_4, %c0_5] : memref<288x32xbf16, #tpu.memory_space<vmem>>, vector<288x32xbf16>
    %cst = arith.constant dense<0.000000e+00> : vector<128x32xf32>
    %6 = tpu.matmul %4, %5, %cst {dimension_numbers = #tpu.dot_dimension_numbers<[1], [0], [0], [1], [0, 0, 1, 1], [], []>} : vector<128x288xbf16>, vector<288x32xbf16>, vector<128x32xf32> -> vector<128x32xf32>
    %7 = arith.addf %3, %6 : vector<128x32xf32>
    %c0_6 = arith.constant 0 : index
    %c0_7 = arith.constant 0 : index
    %8 = vector.load %arg7[%c0_6, %c0_7] : memref<128x32xf32, #tpu.memory_space<vmem>>, vector<128x32xf32>
    tpu.vector_store %arg7[%c0_6, %c0_7], %7 {strides = array<i32>} : memref<128x32xf32, #tpu.memory_space<vmem>>, vector<128x32xf32>,
    %c0_i32_8 = arith.constant 0 : i32
    %9 = arith.cmpi eq, %arg2, %c0_i32_8 : i32
    %10 = arith.extui %9 : i1 to i32
    %c0_i32_9 = arith.constant 0 : i32
    %11 = arith.cmpi ne, %10, %c0_i32_9 : i32
    scf.if %11 {
      %c0_10 = arith.constant 0 : index
      %c0_11 = arith.constant 0 : index
      %12 = vector.load %arg7[%c0_10, %c0_11] : memref<128x32xf32, #tpu.memory_space<vmem>>, vector<128x32xf32>
      %c0_12 = arith.constant 0 : index
      %c0_13 = arith.constant 0 : index
      %13 = vector.load %arg5[%c0_12, %c0_13] : memref<1x32xf32, #tpu.memory_space<vmem>>, vector<1x32xf32>
      %14 = vector.broadcast %13 : vector<1x32xf32> to vector<128x32xf32>
      %15 = arith.addf %12, %14 : vector<128x32xf32>
      %cst_14 = arith.constant 0.000000e+00 : f32
      %16 = vector.broadcast %cst_14 : f32 to vector<128x32xf32>
      %17 = arith.maximumf %15, %16 : vector<128x32xf32>
      %18 = arith.truncf %17 : vector<128x32xf32> to vector<128x32xbf16>
      %c0_15 = arith.constant 0 : index
      %c0_16 = arith.constant 0 : index
      %19 = vector.load %arg6[%c0_15, %c0_16] : memref<128x32xbf16, #tpu.memory_space<vmem>>, vector<128x32xbf16>
      tpu.vector_store %arg6[%c0_15, %c0_16], %18 {strides = array<i32>} : memref<128x32xbf16, #tpu.memory_space<vmem>>, vector<128x32xbf16>,
    } else {
    }
    return
  }
  func.func @transform_0(%arg0: i32, %arg1: i32, %arg2: i32) -> (i32, i32) {
    %c0_i32 = arith.constant 0 : i32
    return %arg0, %arg2 : i32, i32
  }
  func.func @transform_1(%arg0: i32, %arg1: i32, %arg2: i32) -> (i32, i32) {
    %c0_i32 = arith.constant 0 : i32
    return %arg2, %arg1 : i32, i32
  }
  func.func @transform_2(%arg0: i32, %arg1: i32, %arg2: i32) -> (i32, i32) {
    %c0_i32 = arith.constant 0 : i32
    %c0_i32_0 = arith.constant 0 : i32
    return %c0_i32, %arg1 : i32, i32
  }
  func.func @transform_3(%arg0: i32, %arg1: i32, %arg2: i32) -> (i32, i32) {
    %c0_i32 = arith.constant 0 : i32
    return %arg0, %arg1 : i32, i32
  }
}

module attributes {stable_mosaic.version = 11 : i64} {
  func.func @_mm_kernel(%arg0: i32, %arg1: i32, %arg2: i32, %arg3: memref<32x288xbf16, #tpu.memory_space<vmem>>, %arg4: memref<288x32xbf16, #tpu.memory_space<vmem>>, %arg5: memref<1x32xf32, #tpu.memory_space<vmem>>, %arg6: memref<32x32xbf16, #tpu.memory_space<vmem>>, %arg7: memref<32x32xf32, #tpu.memory_space<vmem>>) attributes {dimension_semantics = [#tpu.dimension_semantics<parallel>, #tpu.dimension_semantics<parallel>, #tpu.dimension_semantics<arbitrary>], iteration_bounds = array<i64: 1, 1, 1>, scalar_prefetch = 0 : i64, scratch_operands = 1 : i64, tpu.core_type = #tpu.core_type<tc>, window_params = [{transform_indices = @transform_0, window_bounds = array<i64: 32, 288>}, {transform_indices = @transform_1, window_bounds = array<i64: 288, 32>}, {transform_indices = @transform_2, window_bounds = array<i64: 1, 32>}, {transform_indices = @transform_3, window_bounds = array<i64: 32, 32>}]} {
    %c0_i32 = arith.constant 0 : i32
    %0 = arith.cmpi eq, %arg2, %c0_i32 : i32
    %1 = arith.extui %0 : i1 to i32
    %c0_i32_0 = arith.constant 0 : i32
    %2 = arith.cmpi ne, %1, %c0_i32_0 : i32
    scf.if %2 {
      %cst_10 = arith.constant 0.000000e+00 : f32
      %12 = vector.broadcast %cst_10 : f32 to vector<32x32xf32>
      %c0_11 = arith.constant 0 : index
      %c0_12 = arith.constant 0 : index
      %13 = vector.load %arg7[%c0_11, %c0_12] : memref<32x32xf32, #tpu.memory_space<vmem>>, vector<32x32xf32>
      tpu.vector_store %arg7[%c0_11, %c0_12], %12 {strides = array<i32>} : memref<32x32xf32, #tpu.memory_space<vmem>>, vector<32x32xf32>,
    } else {
    }
    %c0 = arith.constant 0 : index
    %c0_1 = arith.constant 0 : index
    %3 = vector.load %arg7[%c0, %c0_1] : memref<32x32xf32, #tpu.memory_space<vmem>>, vector<32x32xf32>
    %c0_2 = arith.constant 0 : index
    %c0_3 = arith.constant 0 : index
    %4 = vector.load %arg3[%c0_2, %c0_3] : memref<32x288xbf16, #tpu.memory_space<vmem>>, vector<32x288xbf16>
    %c0_4 = arith.constant 0 : index
    %c0_5 = arith.constant 0 : index
    %5 = vector.load %arg4[%c0_4, %c0_5] : memref<288x32xbf16, #tpu.memory_space<vmem>>, vector<288x32xbf16>
    %cst = arith.constant dense<0.000000e+00> : vector<32x32xf32>
    %6 = tpu.matmul %4, %5, %cst {dimension_numbers = #tpu.dot_dimension_numbers<[1], [0], [0], [1], [0, 0, 1, 1], [], []>} : vector<32x288xbf16>, vector<288x32xbf16>, vector<32x32xf32> -> vector<32x32xf32>
    %7 = arith.addf %3, %6 : vector<32x32xf32>
    %c0_6 = arith.constant 0 : index
    %c0_7 = arith.constant 0 : index
    %8 = vector.load %arg7[%c0_6, %c0_7] : memref<32x32xf32, #tpu.memory_space<vmem>>, vector<32x32xf32>
    tpu.vector_store %arg7[%c0_6, %c0_7], %7 {strides = array<i32>} : memref<32x32xf32, #tpu.memory_space<vmem>>, vector<32x32xf32>,
    %c0_i32_8 = arith.constant 0 : i32
    %9 = arith.cmpi eq, %arg2, %c0_i32_8 : i32
    %10 = arith.extui %9 : i1 to i32
    %c0_i32_9 = arith.constant 0 : i32
    %11 = arith.cmpi ne, %10, %c0_i32_9 : i32
    scf.if %11 {
      %c0_10 = arith.constant 0 : index
      %c0_11 = arith.constant 0 : index
      %12 = vector.load %arg7[%c0_10, %c0_11] : memref<32x32xf32, #tpu.memory_space<vmem>>, vector<32x32xf32>
      %c0_12 = arith.constant 0 : index
      %c0_13 = arith.constant 0 : index
      %13 = vector.load %arg5[%c0_12, %c0_13] : memref<1x32xf32, #tpu.memory_space<vmem>>, vector<1x32xf32>
      %14 = vector.broadcast %13 : vector<1x32xf32> to vector<32x32xf32>
      %15 = arith.addf %12, %14 : vector<32x32xf32>
      %cst_14 = arith.constant 0.000000e+00 : f32
      %16 = vector.broadcast %cst_14 : f32 to vector<32x32xf32>
      %17 = arith.maximumf %15, %16 : vector<32x32xf32>
      %18 = arith.truncf %17 : vector<32x32xf32> to vector<32x32xbf16>
      %c0_15 = arith.constant 0 : index
      %c0_16 = arith.constant 0 : index
      %19 = vector.load %arg6[%c0_15, %c0_16] : memref<32x32xbf16, #tpu.memory_space<vmem>>, vector<32x32xbf16>
      tpu.vector_store %arg6[%c0_15, %c0_16], %18 {strides = array<i32>} : memref<32x32xbf16, #tpu.memory_space<vmem>>, vector<32x32xbf16>,
    } else {
    }
    return
  }
  func.func @transform_0(%arg0: i32, %arg1: i32, %arg2: i32) -> (i32, i32) {
    %c0_i32 = arith.constant 0 : i32
    return %arg0, %arg2 : i32, i32
  }
  func.func @transform_1(%arg0: i32, %arg1: i32, %arg2: i32) -> (i32, i32) {
    %c0_i32 = arith.constant 0 : i32
    return %arg2, %arg1 : i32, i32
  }
  func.func @transform_2(%arg0: i32, %arg1: i32, %arg2: i32) -> (i32, i32) {
    %c0_i32 = arith.constant 0 : i32
    %c0_i32_0 = arith.constant 0 : i32
    return %c0_i32, %arg1 : i32, i32
  }
  func.func @transform_3(%arg0: i32, %arg1: i32, %arg2: i32) -> (i32, i32) {
    %c0_i32 = arith.constant 0 : i32
    return %arg0, %arg1 : i32, i32
  }
}

module attributes {stable_mosaic.version = 11 : i64} {
  func.func @_mm_kernel(%arg0: i32, %arg1: i32, %arg2: i32, %arg3: memref<32x32xbf16, #tpu.memory_space<vmem>>, %arg4: memref<32x128xbf16, #tpu.memory_space<vmem>>, %arg5: memref<1x128xf32, #tpu.memory_space<vmem>>, %arg6: memref<32x128xbf16, #tpu.memory_space<vmem>>, %arg7: memref<32x128xf32, #tpu.memory_space<vmem>>) attributes {dimension_semantics = [#tpu.dimension_semantics<parallel>, #tpu.dimension_semantics<parallel>, #tpu.dimension_semantics<arbitrary>], iteration_bounds = array<i64: 1, 1, 1>, scalar_prefetch = 0 : i64, scratch_operands = 1 : i64, tpu.core_type = #tpu.core_type<tc>, window_params = [{transform_indices = @transform_0, window_bounds = array<i64: 32, 32>}, {transform_indices = @transform_1, window_bounds = array<i64: 32, 128>}, {transform_indices = @transform_2, window_bounds = array<i64: 1, 128>}, {transform_indices = @transform_3, window_bounds = array<i64: 32, 128>}]} {
    %c0_i32 = arith.constant 0 : i32
    %0 = arith.cmpi eq, %arg2, %c0_i32 : i32
    %1 = arith.extui %0 : i1 to i32
    %c0_i32_0 = arith.constant 0 : i32
    %2 = arith.cmpi ne, %1, %c0_i32_0 : i32
    scf.if %2 {
      %cst_10 = arith.constant 0.000000e+00 : f32
      %12 = vector.broadcast %cst_10 : f32 to vector<32x128xf32>
      %c0_11 = arith.constant 0 : index
      %c0_12 = arith.constant 0 : index
      %13 = vector.load %arg7[%c0_11, %c0_12] : memref<32x128xf32, #tpu.memory_space<vmem>>, vector<32x128xf32>
      tpu.vector_store %arg7[%c0_11, %c0_12], %12 {strides = array<i32>} : memref<32x128xf32, #tpu.memory_space<vmem>>, vector<32x128xf32>,
    } else {
    }
    %c0 = arith.constant 0 : index
    %c0_1 = arith.constant 0 : index
    %3 = vector.load %arg7[%c0, %c0_1] : memref<32x128xf32, #tpu.memory_space<vmem>>, vector<32x128xf32>
    %c0_2 = arith.constant 0 : index
    %c0_3 = arith.constant 0 : index
    %4 = vector.load %arg3[%c0_2, %c0_3] : memref<32x32xbf16, #tpu.memory_space<vmem>>, vector<32x32xbf16>
    %c0_4 = arith.constant 0 : index
    %c0_5 = arith.constant 0 : index
    %5 = vector.load %arg4[%c0_4, %c0_5] : memref<32x128xbf16, #tpu.memory_space<vmem>>, vector<32x128xbf16>
    %cst = arith.constant dense<0.000000e+00> : vector<32x128xf32>
    %6 = tpu.matmul %4, %5, %cst {dimension_numbers = #tpu.dot_dimension_numbers<[1], [0], [0], [1], [0, 0, 1, 1], [], []>} : vector<32x32xbf16>, vector<32x128xbf16>, vector<32x128xf32> -> vector<32x128xf32>
    %7 = arith.addf %3, %6 : vector<32x128xf32>
    %c0_6 = arith.constant 0 : index
    %c0_7 = arith.constant 0 : index
    %8 = vector.load %arg7[%c0_6, %c0_7] : memref<32x128xf32, #tpu.memory_space<vmem>>, vector<32x128xf32>
    tpu.vector_store %arg7[%c0_6, %c0_7], %7 {strides = array<i32>} : memref<32x128xf32, #tpu.memory_space<vmem>>, vector<32x128xf32>,
    %c0_i32_8 = arith.constant 0 : i32
    %9 = arith.cmpi eq, %arg2, %c0_i32_8 : i32
    %10 = arith.extui %9 : i1 to i32
    %c0_i32_9 = arith.constant 0 : i32
    %11 = arith.cmpi ne, %10, %c0_i32_9 : i32
    scf.if %11 {
      %c0_10 = arith.constant 0 : index
      %c0_11 = arith.constant 0 : index
      %12 = vector.load %arg7[%c0_10, %c0_11] : memref<32x128xf32, #tpu.memory_space<vmem>>, vector<32x128xf32>
      %c0_12 = arith.constant 0 : index
      %c0_13 = arith.constant 0 : index
      %13 = vector.load %arg5[%c0_12, %c0_13] : memref<1x128xf32, #tpu.memory_space<vmem>>, vector<1x128xf32>
      %14 = vector.broadcast %13 : vector<1x128xf32> to vector<32x128xf32>
      %15 = arith.addf %12, %14 : vector<32x128xf32>
      %cst_14 = arith.constant 0.000000e+00 : f32
      %16 = vector.broadcast %cst_14 : f32 to vector<32x128xf32>
      %17 = arith.maximumf %15, %16 : vector<32x128xf32>
      %18 = arith.truncf %17 : vector<32x128xf32> to vector<32x128xbf16>
      %c0_15 = arith.constant 0 : index
      %c0_16 = arith.constant 0 : index
      %19 = vector.load %arg6[%c0_15, %c0_16] : memref<32x128xbf16, #tpu.memory_space<vmem>>, vector<32x128xbf16>
      tpu.vector_store %arg6[%c0_15, %c0_16], %18 {strides = array<i32>} : memref<32x128xbf16, #tpu.memory_space<vmem>>, vector<32x128xbf16>,
    } else {
    }
    return
  }
  func.func @transform_0(%arg0: i32, %arg1: i32, %arg2: i32) -> (i32, i32) {
    %c0_i32 = arith.constant 0 : i32
    return %arg0, %arg2 : i32, i32
  }
  func.func @transform_1(%arg0: i32, %arg1: i32, %arg2: i32) -> (i32, i32) {
    %c0_i32 = arith.constant 0 : i32
    return %arg2, %arg1 : i32, i32
  }
  func.func @transform_2(%arg0: i32, %arg1: i32, %arg2: i32) -> (i32, i32) {
    %c0_i32 = arith.constant 0 : i32
    %c0_i32_0 = arith.constant 0 : i32
    return %c0_i32, %arg1 : i32, i32
  }
  func.func @transform_3(%arg0: i32, %arg1: i32, %arg2: i32) -> (i32, i32) {
    %c0_i32 = arith.constant 0 : i32
    return %arg0, %arg1 : i32, i32
  }
}

module attributes {stable_mosaic.version = 11 : i64} {
  func.func @_gated_add_kernel(%arg0: i32, %arg1: memref<32x1xf32, #tpu.memory_space<vmem>>, %arg2: memref<32x128xbf16, #tpu.memory_space<vmem>>, %arg3: memref<32x128xbf16, #tpu.memory_space<vmem>>, %arg4: memref<32x128xbf16, #tpu.memory_space<vmem>>) attributes {dimension_semantics = [#tpu.dimension_semantics<parallel>], iteration_bounds = array<i64: 1>, scalar_prefetch = 0 : i64, scratch_operands = 0 : i64, tpu.core_type = #tpu.core_type<tc>, window_params = [{transform_indices = @transform_0, window_bounds = array<i64: 32, 1>}, {transform_indices = @transform_1, window_bounds = array<i64: 32, 128>}, {transform_indices = @transform_2, window_bounds = array<i64: 32, 128>}, {transform_indices = @transform_3, window_bounds = array<i64: 32, 128>}]} {
    %c0 = arith.constant 0 : index
    %c0_0 = arith.constant 0 : index
    %0 = vector.load %arg1[%c0, %c0_0] : memref<32x1xf32, #tpu.memory_space<vmem>>, vector<32x1xf32>
    %1 = arith.negf %0 : vector<32x1xf32>
    %2 = math.exp %1 : vector<32x1xf32>
    %cst = arith.constant 1.000000e+00 : f32
    %3 = vector.broadcast %cst : f32 to vector<32x1xf32>
    %4 = arith.addf %3, %2 : vector<32x1xf32>
    %5 = arith.divf %3, %4 : vector<32x1xf32>
    %c0_1 = arith.constant 0 : index
    %c0_2 = arith.constant 0 : index
    %6 = vector.load %arg2[%c0_1, %c0_2] : memref<32x128xbf16, #tpu.memory_space<vmem>>, vector<32x128xbf16>
    %7 = arith.extf %6 : vector<32x128xbf16> to vector<32x128xf32>
    %c0_3 = arith.constant 0 : index
    %c0_4 = arith.constant 0 : index
    %8 = vector.load %arg3[%c0_3, %c0_4] : memref<32x128xbf16, #tpu.memory_space<vmem>>, vector<32x128xbf16>
    %9 = arith.extf %8 : vector<32x128xbf16> to vector<32x128xf32>
    %10 = vector.broadcast %5 : vector<32x1xf32> to vector<32x128xf32>
    %11 = arith.mulf %10, %9 : vector<32x128xf32>
    %12 = arith.addf %7, %11 : vector<32x128xf32>
    %13 = arith.truncf %12 : vector<32x128xf32> to vector<32x128xbf16>
    %c0_5 = arith.constant 0 : index
    %c0_6 = arith.constant 0 : index
    %14 = vector.load %arg4[%c0_5, %c0_6] : memref<32x128xbf16, #tpu.memory_space<vmem>>, vector<32x128xbf16>
    tpu.vector_store %arg4[%c0_5, %c0_6], %13 {strides = array<i32>} : memref<32x128xbf16, #tpu.memory_space<vmem>>, vector<32x128xbf16>,
    return
  }
  func.func @transform_0(%arg0: i32) -> (i32, i32) {
    %c0_i32 = arith.constant 0 : i32
    %c0_i32_0 = arith.constant 0 : i32
    return %arg0, %c0_i32 : i32, i32
  }
  func.func @transform_1(%arg0: i32) -> (i32, i32) {
    %c0_i32 = arith.constant 0 : i32
    %c0_i32_0 = arith.constant 0 : i32
    return %arg0, %c0_i32 : i32, i32
  }
  func.func @transform_2(%arg0: i32) -> (i32, i32) {
    %c0_i32 = arith.constant 0 : i32
    %c0_i32_0 = arith.constant 0 : i32
    return %arg0, %c0_i32 : i32, i32
  }
  func.func @transform_3(%arg0: i32) -> (i32, i32) {
    %c0_i32 = arith.constant 0 : i32
    %c0_i32_0 = arith.constant 0 : i32
    return %arg0, %c0_i32 : i32, i32
  }
}

module attributes {stable_mosaic.version = 11 : i64} {
  func.func @_sam_block_kernel(%arg0: i32, %arg1: memref<32x128xbf16, #tpu.memory_space<vmem>>, %arg2: memref<128x128xbf16, #tpu.memory_space<vmem>>, %arg3: memref<128x128xbf16, #tpu.memory_space<vmem>>, %arg4: memref<32x128xbf16, #tpu.memory_space<vmem>>) attributes {dimension_semantics = [#tpu.dimension_semantics<parallel>], iteration_bounds = array<i64: 1>, scalar_prefetch = 0 : i64, scratch_operands = 0 : i64, tpu.core_type = #tpu.core_type<tc>, window_params = [{transform_indices = @transform_0, window_bounds = array<i64: 32, 128>}, {pipeline_mode = #tpu.pipeline_mode<synchronous>, transform_indices = @transform_1, window_bounds = array<i64: 128, 128>}, {pipeline_mode = #tpu.pipeline_mode<synchronous>, transform_indices = @transform_2, window_bounds = array<i64: 128, 128>}, {transform_indices = @transform_3, window_bounds = array<i64: 32, 128>}]} {
    %c0 = arith.constant 0 : index
    %c0_0 = arith.constant 0 : index
    %0 = vector.load %arg1[%c0, %c0_0] : memref<32x128xbf16, #tpu.memory_space<vmem>>, vector<32x128xbf16>
    %c0_1 = arith.constant 0 : index
    %c0_2 = arith.constant 0 : index
    %1 = vector.load %arg2[%c0_1, %c0_2] : memref<128x128xbf16, #tpu.memory_space<vmem>>, vector<128x128xbf16>
    %cst = arith.constant dense<0.000000e+00> : vector<32x128xf32>
    %2 = tpu.matmul %0, %1, %cst {dimension_numbers = #tpu.dot_dimension_numbers<[1], [0], [0], [1], [0, 0, 1, 1], [], []>} : vector<32x128xbf16>, vector<128x128xbf16>, vector<32x128xf32> -> vector<32x128xf32>
    %3 = arith.mulf %2, %2 : vector<32x128xf32>
    %4 = arith.mulf %2, %3 : vector<32x128xf32>
    %cst_3 = arith.constant 4.471500e-02 : f32
    %5 = vector.broadcast %cst_3 : f32 to vector<32x128xf32>
    %6 = arith.mulf %5, %4 : vector<32x128xf32>
    %7 = arith.addf %2, %6 : vector<32x128xf32>
    %cst_4 = arith.constant 0.797884583 : f32
    %8 = vector.broadcast %cst_4 : f32 to vector<32x128xf32>
    %9 = arith.mulf %8, %7 : vector<32x128xf32>
    %10 = math.tanh %9 : vector<32x128xf32>
    %cst_5 = arith.constant 1.000000e+00 : f32
    %11 = vector.broadcast %cst_5 : f32 to vector<32x128xf32>
    %12 = arith.addf %11, %10 : vector<32x128xf32>
    %cst_6 = arith.constant 5.000000e-01 : f32
    %13 = vector.broadcast %cst_6 : f32 to vector<32x128xf32>
    %14 = arith.mulf %13, %12 : vector<32x128xf32>
    %15 = arith.mulf %2, %14 : vector<32x128xf32>
    %16 = arith.truncf %15 : vector<32x128xf32> to vector<32x128xbf16>
    %c0_7 = arith.constant 0 : index
    %c0_8 = arith.constant 0 : index
    %17 = vector.load %arg3[%c0_7, %c0_8] : memref<128x128xbf16, #tpu.memory_space<vmem>>, vector<128x128xbf16>
    %cst_9 = arith.constant dense<0.000000e+00> : vector<32x128xf32>
    %18 = tpu.matmul %16, %17, %cst_9 {dimension_numbers = #tpu.dot_dimension_numbers<[1], [0], [0], [1], [0, 0, 1, 1], [], []>} : vector<32x128xbf16>, vector<128x128xbf16>, vector<32x128xf32> -> vector<32x128xf32>
    %19 = arith.extf %0 : vector<32x128xbf16> to vector<32x128xf32>
    %20 = arith.addf %19, %18 : vector<32x128xf32>
    %21 = arith.truncf %20 : vector<32x128xf32> to vector<32x128xbf16>
    %c0_10 = arith.constant 0 : index
    %c0_11 = arith.constant 0 : index
    %22 = vector.load %arg4[%c0_10, %c0_11] : memref<32x128xbf16, #tpu.memory_space<vmem>>, vector<32x128xbf16>
    tpu.vector_store %arg4[%c0_10, %c0_11], %21 {strides = array<i32>} : memref<32x128xbf16, #tpu.memory_space<vmem>>, vector<32x128xbf16>,
    return
  }
  func.func @transform_0(%arg0: i32) -> (i32, i32) {
    %c0_i32 = arith.constant 0 : i32
    %c0_i32_0 = arith.constant 0 : i32
    return %arg0, %c0_i32 : i32, i32
  }
  func.func @transform_1(%arg0: i32) -> (i32, i32) {
    %c0_i32 = arith.constant 0 : i32
    %c0_i32_0 = arith.constant 0 : i32
    %c0_i32_1 = arith.constant 0 : i32
    return %c0_i32, %c0_i32_0 : i32, i32
  }
  func.func @transform_2(%arg0: i32) -> (i32, i32) {
    %c0_i32 = arith.constant 0 : i32
    %c0_i32_0 = arith.constant 0 : i32
    %c0_i32_1 = arith.constant 0 : i32
    return %c0_i32, %c0_i32_0 : i32, i32
  }
  func.func @transform_3(%arg0: i32) -> (i32, i32) {
    %c0_i32 = arith.constant 0 : i32
    %c0_i32_0 = arith.constant 0 : i32
    return %arg0, %c0_i32 : i32, i32
  }
}

module attributes {stable_mosaic.version = 11 : i64} {
  func.func @_mm_kernel(%arg0: i32, %arg1: i32, %arg2: i32, %arg3: memref<32x128xbf16, #tpu.memory_space<vmem>>, %arg4: memref<128x32xbf16, #tpu.memory_space<vmem>>, %arg5: memref<1x32xf32, #tpu.memory_space<vmem>>, %arg6: memref<32x32xbf16, #tpu.memory_space<vmem>>, %arg7: memref<32x32xf32, #tpu.memory_space<vmem>>) attributes {dimension_semantics = [#tpu.dimension_semantics<parallel>, #tpu.dimension_semantics<parallel>, #tpu.dimension_semantics<arbitrary>], iteration_bounds = array<i64: 1, 1, 1>, scalar_prefetch = 0 : i64, scratch_operands = 1 : i64, tpu.core_type = #tpu.core_type<tc>, window_params = [{transform_indices = @transform_0, window_bounds = array<i64: 32, 128>}, {transform_indices = @transform_1, window_bounds = array<i64: 128, 32>}, {transform_indices = @transform_2, window_bounds = array<i64: 1, 32>}, {transform_indices = @transform_3, window_bounds = array<i64: 32, 32>}]} {
    %c0_i32 = arith.constant 0 : i32
    %0 = arith.cmpi eq, %arg2, %c0_i32 : i32
    %1 = arith.extui %0 : i1 to i32
    %c0_i32_0 = arith.constant 0 : i32
    %2 = arith.cmpi ne, %1, %c0_i32_0 : i32
    scf.if %2 {
      %cst_10 = arith.constant 0.000000e+00 : f32
      %12 = vector.broadcast %cst_10 : f32 to vector<32x32xf32>
      %c0_11 = arith.constant 0 : index
      %c0_12 = arith.constant 0 : index
      %13 = vector.load %arg7[%c0_11, %c0_12] : memref<32x32xf32, #tpu.memory_space<vmem>>, vector<32x32xf32>
      tpu.vector_store %arg7[%c0_11, %c0_12], %12 {strides = array<i32>} : memref<32x32xf32, #tpu.memory_space<vmem>>, vector<32x32xf32>,
    } else {
    }
    %c0 = arith.constant 0 : index
    %c0_1 = arith.constant 0 : index
    %3 = vector.load %arg7[%c0, %c0_1] : memref<32x32xf32, #tpu.memory_space<vmem>>, vector<32x32xf32>
    %c0_2 = arith.constant 0 : index
    %c0_3 = arith.constant 0 : index
    %4 = vector.load %arg3[%c0_2, %c0_3] : memref<32x128xbf16, #tpu.memory_space<vmem>>, vector<32x128xbf16>
    %c0_4 = arith.constant 0 : index
    %c0_5 = arith.constant 0 : index
    %5 = vector.load %arg4[%c0_4, %c0_5] : memref<128x32xbf16, #tpu.memory_space<vmem>>, vector<128x32xbf16>
    %cst = arith.constant dense<0.000000e+00> : vector<32x32xf32>
    %6 = tpu.matmul %4, %5, %cst {dimension_numbers = #tpu.dot_dimension_numbers<[1], [0], [0], [1], [0, 0, 1, 1], [], []>} : vector<32x128xbf16>, vector<128x32xbf16>, vector<32x32xf32> -> vector<32x32xf32>
    %7 = arith.addf %3, %6 : vector<32x32xf32>
    %c0_6 = arith.constant 0 : index
    %c0_7 = arith.constant 0 : index
    %8 = vector.load %arg7[%c0_6, %c0_7] : memref<32x32xf32, #tpu.memory_space<vmem>>, vector<32x32xf32>
    tpu.vector_store %arg7[%c0_6, %c0_7], %7 {strides = array<i32>} : memref<32x32xf32, #tpu.memory_space<vmem>>, vector<32x32xf32>,
    %c0_i32_8 = arith.constant 0 : i32
    %9 = arith.cmpi eq, %arg2, %c0_i32_8 : i32
    %10 = arith.extui %9 : i1 to i32
    %c0_i32_9 = arith.constant 0 : i32
    %11 = arith.cmpi ne, %10, %c0_i32_9 : i32
    scf.if %11 {
      %c0_10 = arith.constant 0 : index
      %c0_11 = arith.constant 0 : index
      %12 = vector.load %arg7[%c0_10, %c0_11] : memref<32x32xf32, #tpu.memory_space<vmem>>, vector<32x32xf32>
      %c0_12 = arith.constant 0 : index
      %c0_13 = arith.constant 0 : index
      %13 = vector.load %arg5[%c0_12, %c0_13] : memref<1x32xf32, #tpu.memory_space<vmem>>, vector<1x32xf32>
      %14 = vector.broadcast %13 : vector<1x32xf32> to vector<32x32xf32>
      %15 = arith.addf %12, %14 : vector<32x32xf32>
      %cst_14 = arith.constant 0.000000e+00 : f32
      %16 = vector.broadcast %cst_14 : f32 to vector<32x32xf32>
      %17 = arith.maximumf %15, %16 : vector<32x32xf32>
      %18 = arith.truncf %17 : vector<32x32xf32> to vector<32x32xbf16>
      %c0_15 = arith.constant 0 : index
      %c0_16 = arith.constant 0 : index
      %19 = vector.load %arg6[%c0_15, %c0_16] : memref<32x32xbf16, #tpu.memory_space<vmem>>, vector<32x32xbf16>
      tpu.vector_store %arg6[%c0_15, %c0_16], %18 {strides = array<i32>} : memref<32x32xbf16, #tpu.memory_space<vmem>>, vector<32x32xbf16>,
    } else {
    }
    return
  }
  func.func @transform_0(%arg0: i32, %arg1: i32, %arg2: i32) -> (i32, i32) {
    %c0_i32 = arith.constant 0 : i32
    return %arg0, %arg2 : i32, i32
  }
  func.func @transform_1(%arg0: i32, %arg1: i32, %arg2: i32) -> (i32, i32) {
    %c0_i32 = arith.constant 0 : i32
    return %arg2, %arg1 : i32, i32
  }
  func.func @transform_2(%arg0: i32, %arg1: i32, %arg2: i32) -> (i32, i32) {
    %c0_i32 = arith.constant 0 : i32
    %c0_i32_0 = arith.constant 0 : i32
    return %c0_i32, %arg1 : i32, i32
  }
  func.func @transform_3(%arg0: i32, %arg1: i32, %arg2: i32) -> (i32, i32) {
    %c0_i32 = arith.constant 0 : i32
    return %arg0, %arg1 : i32, i32
  }
}

module attributes {stable_mosaic.version = 11 : i64} {
  func.func @_mm_res_kernel(%arg0: i32, %arg1: i32, %arg2: i32, %arg3: memref<32x32xbf16, #tpu.memory_space<vmem>>, %arg4: memref<32x128xbf16, #tpu.memory_space<vmem>>, %arg5: memref<1x128xf32, #tpu.memory_space<vmem>>, %arg6: memref<32x128xbf16, #tpu.memory_space<vmem>>, %arg7: memref<32x128xbf16, #tpu.memory_space<vmem>>, %arg8: memref<32x128xf32, #tpu.memory_space<vmem>>) attributes {dimension_semantics = [#tpu.dimension_semantics<parallel>, #tpu.dimension_semantics<parallel>, #tpu.dimension_semantics<arbitrary>], iteration_bounds = array<i64: 1, 1, 1>, scalar_prefetch = 0 : i64, scratch_operands = 1 : i64, tpu.core_type = #tpu.core_type<tc>, window_params = [{transform_indices = @transform_0, window_bounds = array<i64: 32, 32>}, {transform_indices = @transform_1, window_bounds = array<i64: 32, 128>}, {transform_indices = @transform_2, window_bounds = array<i64: 1, 128>}, {transform_indices = @transform_3, window_bounds = array<i64: 32, 128>}, {transform_indices = @transform_4, window_bounds = array<i64: 32, 128>}]} {
    %c0_i32 = arith.constant 0 : i32
    %0 = arith.cmpi eq, %arg2, %c0_i32 : i32
    %1 = arith.extui %0 : i1 to i32
    %c0_i32_0 = arith.constant 0 : i32
    %2 = arith.cmpi ne, %1, %c0_i32_0 : i32
    scf.if %2 {
      %cst_10 = arith.constant 0.000000e+00 : f32
      %12 = vector.broadcast %cst_10 : f32 to vector<32x128xf32>
      %c0_11 = arith.constant 0 : index
      %c0_12 = arith.constant 0 : index
      %13 = vector.load %arg8[%c0_11, %c0_12] : memref<32x128xf32, #tpu.memory_space<vmem>>, vector<32x128xf32>
      tpu.vector_store %arg8[%c0_11, %c0_12], %12 {strides = array<i32>} : memref<32x128xf32, #tpu.memory_space<vmem>>, vector<32x128xf32>,
    } else {
    }
    %c0 = arith.constant 0 : index
    %c0_1 = arith.constant 0 : index
    %3 = vector.load %arg8[%c0, %c0_1] : memref<32x128xf32, #tpu.memory_space<vmem>>, vector<32x128xf32>
    %c0_2 = arith.constant 0 : index
    %c0_3 = arith.constant 0 : index
    %4 = vector.load %arg3[%c0_2, %c0_3] : memref<32x32xbf16, #tpu.memory_space<vmem>>, vector<32x32xbf16>
    %c0_4 = arith.constant 0 : index
    %c0_5 = arith.constant 0 : index
    %5 = vector.load %arg4[%c0_4, %c0_5] : memref<32x128xbf16, #tpu.memory_space<vmem>>, vector<32x128xbf16>
    %cst = arith.constant dense<0.000000e+00> : vector<32x128xf32>
    %6 = tpu.matmul %4, %5, %cst {dimension_numbers = #tpu.dot_dimension_numbers<[1], [0], [0], [1], [0, 0, 1, 1], [], []>} : vector<32x32xbf16>, vector<32x128xbf16>, vector<32x128xf32> -> vector<32x128xf32>
    %7 = arith.addf %3, %6 : vector<32x128xf32>
    %c0_6 = arith.constant 0 : index
    %c0_7 = arith.constant 0 : index
    %8 = vector.load %arg8[%c0_6, %c0_7] : memref<32x128xf32, #tpu.memory_space<vmem>>, vector<32x128xf32>
    tpu.vector_store %arg8[%c0_6, %c0_7], %7 {strides = array<i32>} : memref<32x128xf32, #tpu.memory_space<vmem>>, vector<32x128xf32>,
    %c0_i32_8 = arith.constant 0 : i32
    %9 = arith.cmpi eq, %arg2, %c0_i32_8 : i32
    %10 = arith.extui %9 : i1 to i32
    %c0_i32_9 = arith.constant 0 : i32
    %11 = arith.cmpi ne, %10, %c0_i32_9 : i32
    scf.if %11 {
      %c0_10 = arith.constant 0 : index
      %c0_11 = arith.constant 0 : index
      %12 = vector.load %arg8[%c0_10, %c0_11] : memref<32x128xf32, #tpu.memory_space<vmem>>, vector<32x128xf32>
      %c0_12 = arith.constant 0 : index
      %c0_13 = arith.constant 0 : index
      %13 = vector.load %arg5[%c0_12, %c0_13] : memref<1x128xf32, #tpu.memory_space<vmem>>, vector<1x128xf32>
      %14 = vector.broadcast %13 : vector<1x128xf32> to vector<32x128xf32>
      %15 = arith.addf %12, %14 : vector<32x128xf32>
      %cst_14 = arith.constant 0.000000e+00 : f32
      %16 = vector.broadcast %cst_14 : f32 to vector<32x128xf32>
      %17 = arith.maximumf %15, %16 : vector<32x128xf32>
      %c0_15 = arith.constant 0 : index
      %c0_16 = arith.constant 0 : index
      %18 = vector.load %arg6[%c0_15, %c0_16] : memref<32x128xbf16, #tpu.memory_space<vmem>>, vector<32x128xbf16>
      %19 = arith.extf %18 : vector<32x128xbf16> to vector<32x128xf32>
      %20 = arith.addf %17, %19 : vector<32x128xf32>
      %21 = arith.truncf %20 : vector<32x128xf32> to vector<32x128xbf16>
      %c0_17 = arith.constant 0 : index
      %c0_18 = arith.constant 0 : index
      %22 = vector.load %arg7[%c0_17, %c0_18] : memref<32x128xbf16, #tpu.memory_space<vmem>>, vector<32x128xbf16>
      tpu.vector_store %arg7[%c0_17, %c0_18], %21 {strides = array<i32>} : memref<32x128xbf16, #tpu.memory_space<vmem>>, vector<32x128xbf16>,
    } else {
    }
    return
  }
  func.func @transform_0(%arg0: i32, %arg1: i32, %arg2: i32) -> (i32, i32) {
    %c0_i32 = arith.constant 0 : i32
    return %arg0, %arg2 : i32, i32
  }
  func.func @transform_1(%arg0: i32, %arg1: i32, %arg2: i32) -> (i32, i32) {
    %c0_i32 = arith.constant 0 : i32
    return %arg2, %arg1 : i32, i32
  }
  func.func @transform_2(%arg0: i32, %arg1: i32, %arg2: i32) -> (i32, i32) {
    %c0_i32 = arith.constant 0 : i32
    %c0_i32_0 = arith.constant 0 : i32
    return %c0_i32, %arg1 : i32, i32
  }
  func.func @transform_3(%arg0: i32, %arg1: i32, %arg2: i32) -> (i32, i32) {
    %c0_i32 = arith.constant 0 : i32
    return %arg0, %arg1 : i32, i32
  }
  func.func @transform_4(%arg0: i32, %arg1: i32, %arg2: i32) -> (i32, i32) {
    %c0_i32 = arith.constant 0 : i32
    return %arg0, %arg1 : i32, i32
  }
}

module attributes {stable_mosaic.version = 11 : i64} {
  func.func @_mm_kernel(%arg0: i32, %arg1: i32, %arg2: i32, %arg3: memref<32x128xbf16, #tpu.memory_space<vmem>>, %arg4: memref<128x64xbf16, #tpu.memory_space<vmem>>, %arg5: memref<1x64xf32, #tpu.memory_space<vmem>>, %arg6: memref<32x64xbf16, #tpu.memory_space<vmem>>, %arg7: memref<32x64xf32, #tpu.memory_space<vmem>>) attributes {dimension_semantics = [#tpu.dimension_semantics<parallel>, #tpu.dimension_semantics<parallel>, #tpu.dimension_semantics<arbitrary>], iteration_bounds = array<i64: 1, 1, 1>, scalar_prefetch = 0 : i64, scratch_operands = 1 : i64, tpu.core_type = #tpu.core_type<tc>, window_params = [{transform_indices = @transform_0, window_bounds = array<i64: 32, 128>}, {transform_indices = @transform_1, window_bounds = array<i64: 128, 64>}, {transform_indices = @transform_2, window_bounds = array<i64: 1, 64>}, {transform_indices = @transform_3, window_bounds = array<i64: 32, 64>}]} {
    %c0_i32 = arith.constant 0 : i32
    %0 = arith.cmpi eq, %arg2, %c0_i32 : i32
    %1 = arith.extui %0 : i1 to i32
    %c0_i32_0 = arith.constant 0 : i32
    %2 = arith.cmpi ne, %1, %c0_i32_0 : i32
    scf.if %2 {
      %cst_10 = arith.constant 0.000000e+00 : f32
      %12 = vector.broadcast %cst_10 : f32 to vector<32x64xf32>
      %c0_11 = arith.constant 0 : index
      %c0_12 = arith.constant 0 : index
      %13 = vector.load %arg7[%c0_11, %c0_12] : memref<32x64xf32, #tpu.memory_space<vmem>>, vector<32x64xf32>
      tpu.vector_store %arg7[%c0_11, %c0_12], %12 {strides = array<i32>} : memref<32x64xf32, #tpu.memory_space<vmem>>, vector<32x64xf32>,
    } else {
    }
    %c0 = arith.constant 0 : index
    %c0_1 = arith.constant 0 : index
    %3 = vector.load %arg7[%c0, %c0_1] : memref<32x64xf32, #tpu.memory_space<vmem>>, vector<32x64xf32>
    %c0_2 = arith.constant 0 : index
    %c0_3 = arith.constant 0 : index
    %4 = vector.load %arg3[%c0_2, %c0_3] : memref<32x128xbf16, #tpu.memory_space<vmem>>, vector<32x128xbf16>
    %c0_4 = arith.constant 0 : index
    %c0_5 = arith.constant 0 : index
    %5 = vector.load %arg4[%c0_4, %c0_5] : memref<128x64xbf16, #tpu.memory_space<vmem>>, vector<128x64xbf16>
    %cst = arith.constant dense<0.000000e+00> : vector<32x64xf32>
    %6 = tpu.matmul %4, %5, %cst {dimension_numbers = #tpu.dot_dimension_numbers<[1], [0], [0], [1], [0, 0, 1, 1], [], []>} : vector<32x128xbf16>, vector<128x64xbf16>, vector<32x64xf32> -> vector<32x64xf32>
    %7 = arith.addf %3, %6 : vector<32x64xf32>
    %c0_6 = arith.constant 0 : index
    %c0_7 = arith.constant 0 : index
    %8 = vector.load %arg7[%c0_6, %c0_7] : memref<32x64xf32, #tpu.memory_space<vmem>>, vector<32x64xf32>
    tpu.vector_store %arg7[%c0_6, %c0_7], %7 {strides = array<i32>} : memref<32x64xf32, #tpu.memory_space<vmem>>, vector<32x64xf32>,
    %c0_i32_8 = arith.constant 0 : i32
    %9 = arith.cmpi eq, %arg2, %c0_i32_8 : i32
    %10 = arith.extui %9 : i1 to i32
    %c0_i32_9 = arith.constant 0 : i32
    %11 = arith.cmpi ne, %10, %c0_i32_9 : i32
    scf.if %11 {
      %c0_10 = arith.constant 0 : index
      %c0_11 = arith.constant 0 : index
      %12 = vector.load %arg7[%c0_10, %c0_11] : memref<32x64xf32, #tpu.memory_space<vmem>>, vector<32x64xf32>
      %c0_12 = arith.constant 0 : index
      %c0_13 = arith.constant 0 : index
      %13 = vector.load %arg5[%c0_12, %c0_13] : memref<1x64xf32, #tpu.memory_space<vmem>>, vector<1x64xf32>
      %14 = vector.broadcast %13 : vector<1x64xf32> to vector<32x64xf32>
      %15 = arith.addf %12, %14 : vector<32x64xf32>
      %16 = arith.truncf %15 : vector<32x64xf32> to vector<32x64xbf16>
      %c0_14 = arith.constant 0 : index
      %c0_15 = arith.constant 0 : index
      %17 = vector.load %arg6[%c0_14, %c0_15] : memref<32x64xbf16, #tpu.memory_space<vmem>>, vector<32x64xbf16>
      tpu.vector_store %arg6[%c0_14, %c0_15], %16 {strides = array<i32>} : memref<32x64xbf16, #tpu.memory_space<vmem>>, vector<32x64xbf16>,
    } else {
    }
    return
  }
  func.func @transform_0(%arg0: i32, %arg1: i32, %arg2: i32) -> (i32, i32) {
    %c0_i32 = arith.constant 0 : i32
    return %arg0, %arg2 : i32, i32
  }
  func.func @transform_1(%arg0: i32, %arg1: i32, %arg2: i32) -> (i32, i32) {
    %c0_i32 = arith.constant 0 : i32
    return %arg2, %arg1 : i32, i32
  }
  func.func @transform_2(%arg0: i32, %arg1: i32, %arg2: i32) -> (i32, i32) {
    %c0_i32 = arith.constant 0 : i32
    %c0_i32_0 = arith.constant 0 : i32
    return %c0_i32, %arg1 : i32, i32
  }
  func.func @transform_3(%arg0: i32, %arg1: i32, %arg2: i32) -> (i32, i32) {
    %c0_i32 = arith.constant 0 : i32
    return %arg0, %arg1 : i32, i32
  }
}

module attributes {stable_mosaic.version = 11 : i64} {
  func.func @_mm_kernel(%arg0: i32, %arg1: i32, %arg2: i32, %arg3: memref<32x128xbf16, #tpu.memory_space<vmem>>, %arg4: memref<128x64xbf16, #tpu.memory_space<vmem>>, %arg5: memref<1x64xf32, #tpu.memory_space<vmem>>, %arg6: memref<32x64xbf16, #tpu.memory_space<vmem>>, %arg7: memref<32x64xf32, #tpu.memory_space<vmem>>) attributes {dimension_semantics = [#tpu.dimension_semantics<parallel>, #tpu.dimension_semantics<parallel>, #tpu.dimension_semantics<arbitrary>], iteration_bounds = array<i64: 1, 1, 1>, scalar_prefetch = 0 : i64, scratch_operands = 1 : i64, tpu.core_type = #tpu.core_type<tc>, window_params = [{transform_indices = @transform_0, window_bounds = array<i64: 32, 128>}, {transform_indices = @transform_1, window_bounds = array<i64: 128, 64>}, {transform_indices = @transform_2, window_bounds = array<i64: 1, 64>}, {transform_indices = @transform_3, window_bounds = array<i64: 32, 64>}]} {
    %c0_i32 = arith.constant 0 : i32
    %0 = arith.cmpi eq, %arg2, %c0_i32 : i32
    %1 = arith.extui %0 : i1 to i32
    %c0_i32_0 = arith.constant 0 : i32
    %2 = arith.cmpi ne, %1, %c0_i32_0 : i32
    scf.if %2 {
      %cst_10 = arith.constant 0.000000e+00 : f32
      %12 = vector.broadcast %cst_10 : f32 to vector<32x64xf32>
      %c0_11 = arith.constant 0 : index
      %c0_12 = arith.constant 0 : index
      %13 = vector.load %arg7[%c0_11, %c0_12] : memref<32x64xf32, #tpu.memory_space<vmem>>, vector<32x64xf32>
      tpu.vector_store %arg7[%c0_11, %c0_12], %12 {strides = array<i32>} : memref<32x64xf32, #tpu.memory_space<vmem>>, vector<32x64xf32>,
    } else {
    }
    %c0 = arith.constant 0 : index
    %c0_1 = arith.constant 0 : index
    %3 = vector.load %arg7[%c0, %c0_1] : memref<32x64xf32, #tpu.memory_space<vmem>>, vector<32x64xf32>
    %c0_2 = arith.constant 0 : index
    %c0_3 = arith.constant 0 : index
    %4 = vector.load %arg3[%c0_2, %c0_3] : memref<32x128xbf16, #tpu.memory_space<vmem>>, vector<32x128xbf16>
    %c0_4 = arith.constant 0 : index
    %c0_5 = arith.constant 0 : index
    %5 = vector.load %arg4[%c0_4, %c0_5] : memref<128x64xbf16, #tpu.memory_space<vmem>>, vector<128x64xbf16>
    %cst = arith.constant dense<0.000000e+00> : vector<32x64xf32>
    %6 = tpu.matmul %4, %5, %cst {dimension_numbers = #tpu.dot_dimension_numbers<[1], [0], [0], [1], [0, 0, 1, 1], [], []>} : vector<32x128xbf16>, vector<128x64xbf16>, vector<32x64xf32> -> vector<32x64xf32>
    %7 = arith.addf %3, %6 : vector<32x64xf32>
    %c0_6 = arith.constant 0 : index
    %c0_7 = arith.constant 0 : index
    %8 = vector.load %arg7[%c0_6, %c0_7] : memref<32x64xf32, #tpu.memory_space<vmem>>, vector<32x64xf32>
    tpu.vector_store %arg7[%c0_6, %c0_7], %7 {strides = array<i32>} : memref<32x64xf32, #tpu.memory_space<vmem>>, vector<32x64xf32>,
    %c0_i32_8 = arith.constant 0 : i32
    %9 = arith.cmpi eq, %arg2, %c0_i32_8 : i32
    %10 = arith.extui %9 : i1 to i32
    %c0_i32_9 = arith.constant 0 : i32
    %11 = arith.cmpi ne, %10, %c0_i32_9 : i32
    scf.if %11 {
      %c0_10 = arith.constant 0 : index
      %c0_11 = arith.constant 0 : index
      %12 = vector.load %arg7[%c0_10, %c0_11] : memref<32x64xf32, #tpu.memory_space<vmem>>, vector<32x64xf32>
      %c0_12 = arith.constant 0 : index
      %c0_13 = arith.constant 0 : index
      %13 = vector.load %arg5[%c0_12, %c0_13] : memref<1x64xf32, #tpu.memory_space<vmem>>, vector<1x64xf32>
      %14 = vector.broadcast %13 : vector<1x64xf32> to vector<32x64xf32>
      %15 = arith.addf %12, %14 : vector<32x64xf32>
      %cst_14 = arith.constant 0.000000e+00 : f32
      %16 = vector.broadcast %cst_14 : f32 to vector<32x64xf32>
      %17 = arith.maximumf %15, %16 : vector<32x64xf32>
      %18 = arith.truncf %17 : vector<32x64xf32> to vector<32x64xbf16>
      %c0_15 = arith.constant 0 : index
      %c0_16 = arith.constant 0 : index
      %19 = vector.load %arg6[%c0_15, %c0_16] : memref<32x64xbf16, #tpu.memory_space<vmem>>, vector<32x64xbf16>
      tpu.vector_store %arg6[%c0_15, %c0_16], %18 {strides = array<i32>} : memref<32x64xbf16, #tpu.memory_space<vmem>>, vector<32x64xbf16>,
    } else {
    }
    return
  }
  func.func @transform_0(%arg0: i32, %arg1: i32, %arg2: i32) -> (i32, i32) {
    %c0_i32 = arith.constant 0 : i32
    return %arg0, %arg2 : i32, i32
  }
  func.func @transform_1(%arg0: i32, %arg1: i32, %arg2: i32) -> (i32, i32) {
    %c0_i32 = arith.constant 0 : i32
    return %arg2, %arg1 : i32, i32
  }
  func.func @transform_2(%arg0: i32, %arg1: i32, %arg2: i32) -> (i32, i32) {
    %c0_i32 = arith.constant 0 : i32
    %c0_i32_0 = arith.constant 0 : i32
    return %c0_i32, %arg1 : i32, i32
  }
  func.func @transform_3(%arg0: i32, %arg1: i32, %arg2: i32) -> (i32, i32) {
    %c0_i32 = arith.constant 0 : i32
    return %arg0, %arg1 : i32, i32
  }
}

module attributes {stable_mosaic.version = 11 : i64} {
  func.func @_mm_kernel(%arg0: i32, %arg1: i32, %arg2: i32, %arg3: memref<32x576xbf16, #tpu.memory_space<vmem>>, %arg4: memref<576x64xbf16, #tpu.memory_space<vmem>>, %arg5: memref<1x64xf32, #tpu.memory_space<vmem>>, %arg6: memref<32x64xf32, #tpu.memory_space<vmem>>, %arg7: memref<32x64xf32, #tpu.memory_space<vmem>>) attributes {dimension_semantics = [#tpu.dimension_semantics<parallel>, #tpu.dimension_semantics<parallel>, #tpu.dimension_semantics<arbitrary>], iteration_bounds = array<i64: 1, 1, 1>, scalar_prefetch = 0 : i64, scratch_operands = 1 : i64, tpu.core_type = #tpu.core_type<tc>, window_params = [{transform_indices = @transform_0, window_bounds = array<i64: 32, 576>}, {transform_indices = @transform_1, window_bounds = array<i64: 576, 64>}, {transform_indices = @transform_2, window_bounds = array<i64: 1, 64>}, {transform_indices = @transform_3, window_bounds = array<i64: 32, 64>}]} {
    %c0_i32 = arith.constant 0 : i32
    %0 = arith.cmpi eq, %arg2, %c0_i32 : i32
    %1 = arith.extui %0 : i1 to i32
    %c0_i32_0 = arith.constant 0 : i32
    %2 = arith.cmpi ne, %1, %c0_i32_0 : i32
    scf.if %2 {
      %cst_10 = arith.constant 0.000000e+00 : f32
      %12 = vector.broadcast %cst_10 : f32 to vector<32x64xf32>
      %c0_11 = arith.constant 0 : index
      %c0_12 = arith.constant 0 : index
      %13 = vector.load %arg7[%c0_11, %c0_12] : memref<32x64xf32, #tpu.memory_space<vmem>>, vector<32x64xf32>
      tpu.vector_store %arg7[%c0_11, %c0_12], %12 {strides = array<i32>} : memref<32x64xf32, #tpu.memory_space<vmem>>, vector<32x64xf32>,
    } else {
    }
    %c0 = arith.constant 0 : index
    %c0_1 = arith.constant 0 : index
    %3 = vector.load %arg7[%c0, %c0_1] : memref<32x64xf32, #tpu.memory_space<vmem>>, vector<32x64xf32>
    %c0_2 = arith.constant 0 : index
    %c0_3 = arith.constant 0 : index
    %4 = vector.load %arg3[%c0_2, %c0_3] : memref<32x576xbf16, #tpu.memory_space<vmem>>, vector<32x576xbf16>
    %c0_4 = arith.constant 0 : index
    %c0_5 = arith.constant 0 : index
    %5 = vector.load %arg4[%c0_4, %c0_5] : memref<576x64xbf16, #tpu.memory_space<vmem>>, vector<576x64xbf16>
    %cst = arith.constant dense<0.000000e+00> : vector<32x64xf32>
    %6 = tpu.matmul %4, %5, %cst {dimension_numbers = #tpu.dot_dimension_numbers<[1], [0], [0], [1], [0, 0, 1, 1], [], []>} : vector<32x576xbf16>, vector<576x64xbf16>, vector<32x64xf32> -> vector<32x64xf32>
    %7 = arith.addf %3, %6 : vector<32x64xf32>
    %c0_6 = arith.constant 0 : index
    %c0_7 = arith.constant 0 : index
    %8 = vector.load %arg7[%c0_6, %c0_7] : memref<32x64xf32, #tpu.memory_space<vmem>>, vector<32x64xf32>
    tpu.vector_store %arg7[%c0_6, %c0_7], %7 {strides = array<i32>} : memref<32x64xf32, #tpu.memory_space<vmem>>, vector<32x64xf32>,
    %c0_i32_8 = arith.constant 0 : i32
    %9 = arith.cmpi eq, %arg2, %c0_i32_8 : i32
    %10 = arith.extui %9 : i1 to i32
    %c0_i32_9 = arith.constant 0 : i32
    %11 = arith.cmpi ne, %10, %c0_i32_9 : i32
    scf.if %11 {
      %c0_10 = arith.constant 0 : index
      %c0_11 = arith.constant 0 : index
      %12 = vector.load %arg7[%c0_10, %c0_11] : memref<32x64xf32, #tpu.memory_space<vmem>>, vector<32x64xf32>
      %c0_12 = arith.constant 0 : index
      %c0_13 = arith.constant 0 : index
      %13 = vector.load %arg5[%c0_12, %c0_13] : memref<1x64xf32, #tpu.memory_space<vmem>>, vector<1x64xf32>
      %14 = vector.broadcast %13 : vector<1x64xf32> to vector<32x64xf32>
      %15 = arith.addf %12, %14 : vector<32x64xf32>
      %c0_14 = arith.constant 0 : index
      %c0_15 = arith.constant 0 : index
      %16 = vector.load %arg6[%c0_14, %c0_15] : memref<32x64xf32, #tpu.memory_space<vmem>>, vector<32x64xf32>
      tpu.vector_store %arg6[%c0_14, %c0_15], %15 {strides = array<i32>} : memref<32x64xf32, #tpu.memory_space<vmem>>, vector<32x64xf32>,
    } else {
    }
    return
  }
  func.func @transform_0(%arg0: i32, %arg1: i32, %arg2: i32) -> (i32, i32) {
    %c0_i32 = arith.constant 0 : i32
    return %arg0, %arg2 : i32, i32
  }
  func.func @transform_1(%arg0: i32, %arg1: i32, %arg2: i32) -> (i32, i32) {
    %c0_i32 = arith.constant 0 : i32
    return %arg2, %arg1 : i32, i32
  }
  func.func @transform_2(%arg0: i32, %arg1: i32, %arg2: i32) -> (i32, i32) {
    %c0_i32 = arith.constant 0 : i32
    %c0_i32_0 = arith.constant 0 : i32
    return %c0_i32, %arg1 : i32, i32
  }
  func.func @transform_3(%arg0: i32, %arg1: i32, %arg2: i32) -> (i32, i32) {
    %c0_i32 = arith.constant 0 : i32
    return %arg0, %arg1 : i32, i32
  }
}

</mosaic_0001>

<bundles_post_ra>
// kernel: sam_adaptor_forward.34
= control target key start
LH: loop header
LB: loop body
LE: loop exit
PB: predicated region body
PF: predicated region fallthrough
CT: control target
= control target key end

     0   :  { %vm19_vm0 = vcmask 72704   ;;  %v244_v1 = vmov 0.0   ;;  %s322_s1 = inlined_call_operand.vmem [shape: bf16[128,9], index: 1, kind: input, shape index: {}]   ;;  %s323_s0 = inlined_call_operand.vmem [shape: bf16[32,128], index: 0, kind: input, shape index: {}]   ;;  %s324_s2 = inlined_call_operand.vmem [shape: f32[1,9], index: 2, kind: input, shape index: {}]   ;;  %s325_s3 = inlined_call_operand.vmem [shape: f32[32,9], index: 3, kind: output, shape index: {}]  }
   0x1   :  { %v234_v0 = vld [vmem:[%s322_s1] sm:$0xff]   ;;  %22 = vst.msk [vmem:[#allocation2 + $0x10] sm:$0xff] %vm19_vm0, %v244_v1  ;;  %20 = vst.msk [vmem:[#allocation2] sm:$0xff] %vm19_vm0, %v244_v1  ;;  %v235_v2 = vld [vmem:[%s322_s1 + $0x8] sm:$0xff]  }
   0x2   :  { %21 = vst.msk [vmem:[#allocation2 + $0x8] sm:$0xff] %vm19_vm0, %v244_v1  ;;  %23 = vst.msk [vmem:[#allocation2 + $0x18] sm:$0xff] %vm19_vm0, %v244_v1  ;;  %213 = vmatprep.subr.bf16.mxu0 %v234_v0  ;;  %v236_v3 = vld [vmem:[%s322_s1 + $0x10] sm:$0xff]   ;;  %v237_v4 = vld [vmem:[%s322_s1 + $0x18] sm:$0xff]  }
   0x3   :  { %214 = vmatpush3.bf16.msra.mxu0 %v234_v0  ;;  %v242_v5 = vld [vmem:[%s323_s0] sm:$0xff]   ;;  %v239_v7 = vld [vmem:[%s322_s1 + $0x28] sm:$0xff]   ;;  %v240_v8 = vld [vmem:[%s322_s1 + $0x30] sm:$0xff]  }
   0x4   :  { %215 = vmatprep.subr.bf16.mxu0 %v235_v2  ;;  %229 = vmatprep.mubr.bf16.mxu0 %v242_v5  ;;  %v238_v6 = vld [vmem:[%s322_s1 + $0x20] sm:$0xff]   ;;  %v241_v9 = vld [vmem:[%s322_s1 + $0x38] sm:$0xff]   ;;  %v243_v10 = vld [vmem:[%s323_s0 + $0x8] sm:$0xff]  }
   0x5   :  { %v202_v23 = vld [vmem:[%s324_s2] ss:$0 sm:$0xff] }
   0x7   :  { %216 = vmatpush3.bf16.msra.mxu0 %v235_v2 }
   0x8   :  { %217 = vmatprep.subr.bf16.mxu0 %v236_v3  ;;  %v26_v11 = vld [vmem:[#allocation2 + $0x10] sm:$0xff]  ;;  %v24_v12 = vld [vmem:[#allocation2] sm:$0xff] }
   0x9   :  { %v27_v14 = vld [vmem:[#allocation2 + $0x18] sm:$0xff]  ;;  %v25_v17 = vld [vmem:[#allocation2 + $0x8] sm:$0xff] }
   0xb   :  { %218 = vmatpush3.bf16.msra.mxu0 %v236_v3 }
   0xc   :  { %219 = vmatprep.subr.bf16.mxu0 %v237_v4 }
   0xf   :  { %220 = vmatpush3.bf16.msra.mxu0 %v237_v4 }
  0x10   :  { %221 = vmatprep.subr.bf16.mxu0 %v238_v6 }
  0x13   :  { %222 = vmatpush3.bf16.msra.mxu0 %v238_v6 }
  0x14   :  { %223 = vmatprep.subr.bf16.mxu0 %v239_v7 }
  0x17   :  { %224 = vmatpush3.bf16.msra.mxu0 %v239_v7 }
  0x18   :  { %225 = vmatprep.subr.bf16.mxu0 %v240_v8 }
  0x1b   :  { %226 = vmatpush3.bf16.msra.mxu0 %v240_v8 }
  0x1c   :  { %227 = vmatprep.subr.bf16.mxu0 %v241_v9 }
  0x1f   :  { %228 = vmatpush3.bf16.msra.mxu0 %v241_v9 }
  0x22   :  { %230 = vmatmul.mubr.bf16.vlgmr.msra.gmra.mrb[0].mxu0 %v243_v10 }
  0xf5   :  { %v231_v13 = vpop.f32.mrb[0].mxu0 }
  0xf6   :  { %v159_v15 = vadd.f32 %v231_v13, %v26_v11  ;;  %v142_v16 = vpop.f32.mrb[1].mxu0 }
  0xf7   :  { %v157_v18 = vadd.f32 %v142_v16, %v24_v12  ;;  %v232_v19 = vpop.f32.mrb[2].mxu0 }
  0xf8   :  { %164 = vst.msk [vmem:[#allocation2 + $0x10] sm:$0xff] %vm19_vm0, %v159_v15  ;;  %v160_v20 = vadd.f32 %v232_v19, %v27_v14  ;;  %v145_v21 = vpop.f32.mrb[3].mxu0 }
  0xf9   :  { %162 = vst.msk [vmem:[#allocation2] sm:$0xff] %vm19_vm0, %v157_v18  ;;  %v158_v22 = vadd.f32 %v145_v21, %v25_v17 }
  0xfa   :  { %165 = vst.msk [vmem:[#allocation2 + $0x18] sm:$0xff] %vm19_vm0, %v160_v20 }
  0xfb   :  { %163 = vst.msk [vmem:[#allocation2 + $0x8] sm:$0xff] %vm19_vm0, %v158_v22 }
  0xff   :  { %v171_v24 = vld [vmem:[#allocation2 + $0x10] sm:$0xff] }
 0x100   :  { %v182_v25 = vadd.f32 %v202_v23, %v171_v24  ;;  %v169_v26 = vld [vmem:[#allocation2] sm:$0xff] }
 0x101   :  { %v180_v27 = vadd.f32 %v202_v23, %v169_v26  ;;  %v172_v28 = vld [vmem:[#allocation2 + $0x18] sm:$0xff] }
 0x102   :  { %186 = vst.msk [vmem:[%s325_s3 + $0x10] sm:$0xff] %vm19_vm0, %v182_v25  ;;  %v183_v29 = vadd.f32 %v202_v23, %v172_v28  ;;  %v170_v30 = vld [vmem:[#allocation2 + $0x8] sm:$0xff] }
 0x103   :  { %184 = vst.msk [vmem:[%s325_s3] sm:$0xff] %vm19_vm0, %v180_v27  ;;  %v181_v31 = vadd.f32 %v202_v23, %v170_v30 }
 0x104   :  { %187 = vst.msk [vmem:[%s325_s3 + $0x18] sm:$0xff] %vm19_vm0, %v183_v29 }
 0x105   :  { %185 = vst.msk [vmem:[%s325_s3 + $0x8] sm:$0xff] %vm19_vm0, %v181_v31 }

// kernel: sam_adaptor_forward.29
= control target key start
LH: loop header
LB: loop body
LE: loop exit
PB: predicated region body
PF: predicated region fallthrough
CT: control target
= control target key end

     0   :  { %s1299_s15 = smov 0   ;;  %s1301_s16 = smov 0   ;;  %s1500_s0 = inlined_call_operand.vmem [shape: bf16[32,768], index: 0, kind: input, shape index: {}]   ;;  %s1501_s1 = inlined_call_operand.vmem [shape: bf16[768,128], index: 1, kind: input, shape index: {}]   ;;  %s1502_s2 = inlined_call_operand.vmem [shape: f32[1,128], index: 2, kind: input, shape index: {}]   ;;  %s1503_s3 = inlined_call_operand.vmem [shape: f32[16,128], index: 3, kind: input, shape index: {}]   ;;  %s1504_s4 = inlined_call_operand.vmem [shape: bf16[32,128], index: 4, kind: output, shape index: {}]  }
   0x1   :  { %s1303_s17 = smov 0  }
   0x2 LB: > { %s33_s18 = sadd.s32 1, %s1268_s16  ;;  %p1031_p0 = scmp.ge.s32.totalorder %s1272_s17, 1  ;;  %s1272_s17 = sphi %s1303_s17, %s14_s17   ;;  %s1268_s16 = sphi %s1301_s16, %s1506_s16   ;;  %s1264_s15 = sphi %s1299_s15, %s1505_s15  }
   0x3   : > { %p35_p1 = scmp.ge.s32.totalorder %s33_s18, 2  ;;  %p225_p2 = scmp.lt.s32.totalorder %s1272_s17, 3 }
   0x5   : > { %s1508_s18 = smov (%p35_p1, %s33_s18), 0  ;;  %p226_p3 = pnand %p1031_p0, %p225_p2 }
   0x6   : > { %v1193_v0 = vld [vmem:[%s1501_s1 + $0x40] sm:$0xff] (!%p226_p3)   ;;  %v1197_v4 = vld [vmem:[%s1501_s1 + $0x48] sm:$0xff] (!%p226_p3)   ;;  %v1201_v8 = vld [vmem:[%s1501_s1 + $0x50] sm:$0xff] (!%p226_p3)   ;;  %s1032_s27 = sshll.u32 (!%p226_p3), %s1264_s15, 1 }
   0x7   : > { %229 = sbr.rel (%p226_p3) target bundleno = 298 (0x12a), region = 36  ;;  %v1194_v1 = vld [vmem:[%s1501_s1 + $0xc0] sm:$0xff] (!%p226_p3)   ;;  %1102 = vmatprep.subr.bf16.mxu0 (!%p226_p3), %v1193_v0  ;;  %v1198_v5 = vld [vmem:[%s1501_s1 + $0xc8] sm:$0xff] (!%p226_p3)   ;;  %v1202_v9 = vld [vmem:[%s1501_s1 + $0xd0] sm:$0xff] (!%p226_p3)   ;;  %p276_p4 = scmp.lt.s32.totalorder (!%p226_p3), %s1032_s27, 3 }
   0x8   : > { %v1195_v2 = vld [vmem:[%s1501_s1] sm:$0xff] (!%p226_p3)   ;;  %1124 = vmatprep.subr.bf16.mxu1 (!%p226_p3), %v1194_v1  ;;  %v1199_v6 = vld [vmem:[%s1501_s1 + $0x8] sm:$0xff] (!%p226_p3)   ;;  %v1203_v10 = vld [vmem:[%s1501_s1 + $0x10] sm:$0xff] (!%p226_p3)  }
   0x9   : > { %v1196_v3 = vld [vmem:[%s1501_s1 + $0x80] sm:$0xff] (!%p226_p3)   ;;  %1103 = vmatpush3.bf16.msra.mxu0 (!%p226_p3), %v1195_v2  ;;  %v1200_v7 = vld [vmem:[%s1501_s1 + $0x88] sm:$0xff] (!%p226_p3)   ;;  %v1204_v11 = vld [vmem:[%s1501_s1 + $0x90] sm:$0xff] (!%p226_p3)  }
   0xa   : > { %1125 = vmatpush3.bf16.msra.mxu1 (!%p226_p3), %v1196_v3  ;;  %1104 = vmatprep.subr.bf16.mxu0 (!%p226_p3), %v1197_v4  ;;  %v1205_v12 = vld [vmem:[%s1501_s1 + $0x58] sm:$0xff] (!%p226_p3)   ;;  %v1209_v16 = vld [vmem:[%s1501_s1 + $0x60] sm:$0xff] (!%p226_p3)   ;;  %v1213_v20 = vld [vmem:[%s1501_s1 + $0x68] sm:$0xff] (!%p226_p3)  }
   0xb   : > { %1126 = vmatprep.subr.bf16.mxu1 (!%p226_p3), %v1198_v5  ;;  %v1206_v13 = vld [vmem:[%s1501_s1 + $0xd8] sm:$0xff] (!%p226_p3)   ;;  %v1210_v17 = vld [vmem:[%s1501_s1 + $0xe0] sm:$0xff] (!%p226_p3)   ;;  %v1214_v21 = vld [vmem:[%s1501_s1 + $0xe8] sm:$0xff] (!%p226_p3)  }
   0xc   : > { %v1207_v14 = vld [vmem:[%s1501_s1 + $0x18] sm:$0xff] (!%p226_p3)   ;;  %v1211_v18 = vld [vmem:[%s1501_s1 + $0x20] sm:$0xff] (!%p226_p3)   ;;  %v1215_v22 = vld [vmem:[%s1501_s1 + $0x28] sm:$0xff] (!%p226_p3)  }
   0xd   : > { %1105 = vmatpush3.bf16.msra.mxu0 (!%p226_p3), %v1199_v6  ;;  %v1208_v15 = vld [vmem:[%s1501_s1 + $0x98] sm:$0xff] (!%p226_p3)   ;;  %v1212_v19 = vld [vmem:[%s1501_s1 + $0xa0] sm:$0xff] (!%p226_p3)   ;;  %v1216_v23 = vld [vmem:[%s1501_s1 + $0xa8] sm:$0xff] (!%p226_p3)  }
   0xe   : > { %1127 = vmatpush3.bf16.msra.mxu1 %v1200_v7  ;;  %1106 = vmatprep.subr.bf16.mxu0 %v1201_v8  ;;  %s1510_s27 = smov (!%p276_p4, %s1032_s27), 3  ;;  %v1217_v24 = vld [vmem:[%s1501_s1 + $0x70] sm:$0xff]   ;;  %v1221_v28 = vld [vmem:[%s1501_s1 + $0x78] sm:$0xff]   ;;  %v1231_v36 = vld [vmem:[%s1501_s1 + $0x140] sm:$0xff]  }
   0xf   : > { %1128 = vmatprep.subr.bf16.mxu1 %v1202_v9  ;;  %v1218_v25 = vld [vmem:[%s1501_s1 + $0xf0] sm:$0xff]   ;;  %s1168_s28 = smul.u32 24, %s1510_s27  ;;  %v1222_v29 = vld [vmem:[%s1501_s1 + $0xf8] sm:$0xff]   ;;  %v1232_v37 = vld [vmem:[%s1501_s1 + $0x100] sm:$0xff]   ;;  %s1035_s11 = sshll.u32 %s1510_s27, 2 }
  0x10   : > { %v1219_v26 = vld [vmem:[%s1501_s1 + $0x30] sm:$0xff]   ;;  %v1223_v30 = vld [vmem:[%s1501_s1 + $0x38] sm:$0xff]   ;;  %v1233_v38 = vld [vmem:[%s1501_s1 + $0x148] sm:$0xff]   ;;  %s309_s19 = scalar_lea.vmem %s1504_s4, %s1035_s11 }
  0x11   : > { %1107 = vmatpush3.bf16.msra.mxu0 %v1203_v10  ;;  %v1220_v27 = vld [vmem:[%s1501_s1 + $0xb0] sm:$0xff]   ;;  %s1416_s12 = scalar_lea.vmem %s1500_s0, %s1168_s28  ;;  %v1224_v31 = vld [vmem:[%s1501_s1 + $0xb8] sm:$0xff]   ;;  %v1234_v39 = vld [vmem:[%s1501_s1 + $0x108] sm:$0xff]  }
  0x12   : > { %1129 = vmatpush3.bf16.msra.mxu1 %v1204_v11  ;;  %1108 = vmatprep.subr.bf16.mxu0 %v1205_v12  ;;  %v1225_v32 = vld [vmem:[%s1416_s12] ss:$24 sps:$4 sm:$0xff]   ;;  %v1227_v33 = vld [vmem:[%s1416_s12 + $0x4] ss:$24 sps:$4 sm:$0xff]   ;;  %v1235_v40 = vld [vmem:[%s1501_s1 + $0x150] sm:$0xff]  }
  0x13   : > { %1130 = vmatprep.subr.bf16.mxu1 %v1206_v13  ;;  %v1228_v34 = vld [vmem:[%s1416_s12 + $0x8] ss:$24 sps:$4 sm:$0xff]   ;;  %v1230_v35 = vld [vmem:[%s1416_s12 + $0xc] ss:$24 sps:$4 sm:$0xff]   ;;  %772 = vmatprep.mubr.bf16.mxu0 %v1227_v33  ;;  %v1236_v41 = vld [vmem:[%s1501_s1 + $0x110] sm:$0xff]  }
  0x14   : > { %813 = vmatprep.mubr.bf16.mxu1 %v1230_v35  ;;  %v1237_v42 = vld [vmem:[%s1501_s1 + $0x158] sm:$0xff]   ;;  %v1239_v44 = vld [vmem:[%s1501_s1 + $0x160] sm:$0xff]   ;;  %v1241_v46 = vld [vmem:[%s1501_s1 + $0x168] sm:$0xff]  }
  0x15   : > { %1109 = vmatpush3.bf16.msra.mxu0 %v1207_v14  ;;  %v1238_v43 = vld [vmem:[%s1501_s1 + $0x118] sm:$0xff]   ;;  %v1240_v45 = vld [vmem:[%s1501_s1 + $0x120] sm:$0xff]   ;;  %v1249_v47 = vld [vmem:[%s1416_s12 + $0x14] ss:$24 sps:$4 sm:$0xff]  }
  0x16   : > { %1131 = vmatpush3.bf16.msra.mxu1 %v1208_v15  ;;  %1110 = vmatprep.subr.bf16.mxu0 %v1209_v16  ;;  %v1242_v48 = vld [vmem:[%s1501_s1 + $0x128] sm:$0xff]   ;;  %v1243_v49 = vld [vmem:[%s1501_s1 + $0x170] sm:$0xff]   ;;  %v1245_v51 = vld [vmem:[%s1501_s1 + $0x178] sm:$0xff]  }
  0x17   : > { %1132 = vmatprep.subr.bf16.mxu1 %v1210_v17  ;;  %v1244_v50 = vld [vmem:[%s1501_s1 + $0x130] sm:$0xff]   ;;  %v1246_v52 = vld [vmem:[%s1501_s1 + $0x138] sm:$0xff]   ;;  %v1090_v8 = vld [vmem:[%s1502_s2] ss:$0 sm:$0xff] }
  0x18   : > { %v1247_v53 = vld [vmem:[%s1416_s12 + $0x10] ss:$24 sps:$4 sm:$0xff]   ;;  %v881_v14 = vld [vmem:[%s1503_s3] sm:$0xff] }
  0x19   : > { %1111 = vmatpush3.bf16.msra.mxu0 %v1211_v18  ;;  %v882_v15 = vld [vmem:[%s1503_s3 + $0x8] sm:$0xff] }
  0x1a   : > { %1133 = vmatpush3.bf16.msra.mxu1 %v1212_v19  ;;  %1112 = vmatprep.subr.bf16.mxu0 %v1213_v20 }
  0x1b   : > { %1134 = vmatprep.subr.bf16.mxu1 %v1214_v21 }
  0x1d   : > { %1113 = vmatpush3.bf16.msra.mxu0 %v1215_v22 }
  0x1e   : > { %1135 = vmatpush3.bf16.msra.mxu1 %v1216_v23  ;;  %1114 = vmatprep.subr.bf16.mxu0 %v1217_v24 }
  0x1f   : > { %1136 = vmatprep.subr.bf16.mxu1 %v1218_v25 }
  0x21   : > { %1115 = vmatpush3.bf16.msra.mxu0 %v1219_v26 }
  0x22   : > { %1137 = vmatpush3.bf16.msra.mxu1 %v1220_v27  ;;  %1116 = vmatprep.subr.bf16.mxu0 %v1221_v28 }
  0x23   : > { %1138 = vmatprep.subr.bf16.mxu1 %v1222_v29 }
  0x25   : > { %1117 = vmatpush3.bf16.msra.mxu0 %v1223_v30 }
  0x26   : > { %1139 = vmatpush3.bf16.msra.mxu1 %v1224_v31  ;;  %1146 = vmatprep.subr.bf16.mxu0 %v1231_v36 }
  0x28   : > { %773 = vmatmul.mubr.bf16.vlgmr.msra.gmra.mrb[0].mxu0 %v1225_v32 }
  0x29   : > { %814 = vmatmul.mubr.bf16.vlgmr.msra.gmra.mrb[0].mxu1 %v1228_v34  ;;  %1147 = vmatpush3.bf16.msra.mxu0 %v1232_v37 }
  0x2a   : > { %1148 = vmatprep.subr.bf16.mxu0 %v1233_v38  ;;  %854 = vmatprep.mubr.bf16.mxu0 %v1249_v47 }
  0x2d   : > { %1149 = vmatpush3.bf16.msra.mxu0 %v1234_v39 }
  0x2e   : > { %1150 = vmatprep.subr.bf16.mxu0 %v1235_v40 }
  0x31   : > { %1151 = vmatpush3.bf16.msra.mxu0 %v1236_v41 }
  0x32   : > { %1152 = vmatprep.subr.bf16.mxu0 %v1237_v42 }
  0x35   : > { %1153 = vmatpush3.bf16.msra.mxu0 %v1238_v43 }
  0x36   : > { %1154 = vmatprep.subr.bf16.mxu0 %v1239_v44 }
  0x39   : > { %1155 = vmatpush3.bf16.msra.mxu0 %v1240_v45 }
  0x3a   : > { %1156 = vmatprep.subr.bf16.mxu0 %v1241_v46 }
  0x3d   : > { %1157 = vmatpush3.bf16.msra.mxu0 %v1242_v48 }
  0x3e   : > { %1158 = vmatprep.subr.bf16.mxu0 %v1243_v49 }
  0x41   : > { %1159 = vmatpush3.bf16.msra.mxu0 %v1244_v50 }
  0x42   : > { %1160 = vmatprep.subr.bf16.mxu0 %v1245_v51 }
  0x45   : > { %1161 = vmatpush3.bf16.msra.mxu0 %v1246_v52 }
  0x48   : > { %855 = vmatmul.mubr.bf16.vlgmr.msra.gmra.mrb[4].mxu0 %v1247_v53 }
  0xfb   : > { %v1118_v54 = vpop.f32.mrb[0].mxu0 }
  0xfc   : > { %v1140_v55 = vpop.f32.mrb[0].mxu1  ;;  %v1119_v56 = vpop.f32.mrb[1].mxu0 }
  0xfd   : > { %v1120_v57 = vadd.f32 %v1119_v56, %v1118_v54  ;;  %v1141_v58 = vpop.f32.mrb[1].mxu1  ;;  %v1121_v59 = vpop.f32.mrb[2].mxu0 }
  0xfe   : > { %v1142_v60 = vadd.f32 %v1141_v58, %v1140_v55  ;;  %v1143_v61 = vpop.f32.mrb[2].mxu1  ;;  %v1122_v62 = vpop.f32.mrb[3].mxu0 }
  0xff   : > { %v1123_v63 = vadd.f32 %v1122_v62, %v1121_v59  ;;  %v1144_v0 = vpop.f32.mrb[3].mxu1 }
 0x100   : > { %v816_v1 = vadd.f32 %v1142_v60, %v1120_v57  ;;  %v1145_v2 = vadd.f32 %v1144_v0, %v1143_v61 }
 0x102   : > { %v819_v3 = vadd.f32 %v1145_v2, %v1123_v63 }
 0x11b   : > { %v1162_v4 = vpop.f32.mrb[4].mxu0 }
 0x11c   : > { %v1163_v5 = vpop.f32.mrb[5].mxu0 }
 0x11d   : > { %v1164_v6 = vadd.f32 %v1163_v5, %v1162_v4  ;;  %v1165_v7 = vpop.f32.mrb[6].mxu0 }
 0x11e   : > { %v1166_v9 = vpop.f32.mrb[7].mxu0 }
 0x11f   : > { %v857_v10 = vadd.f32 %v1164_v6, %v816_v1  ;;  %v1167_v11 = vadd.f32 %v1166_v9, %v1165_v7 }
 0x121   : > { %v879_v12 = vadd.f32 %v1090_v8, %v857_v10  ;;  %v860_v13 = vadd.f32 %v1167_v11, %v819_v3 }
 0x123   : > { %v880_v16 = vadd.f32 %v1090_v8, %v860_v13  ;;  %v883_v17 = vadd.f32 %v881_v14, %v879_v12 }
 0x125   : > { %v884_v18 = vadd.f32 %v882_v15, %v880_v16 }
 0x127   : > { %v1100_v19 = vpack.c.bf16 %v884_v18, %v883_v17 }
 0x129   : > { %1101 = vst [vmem:[%s309_s19] sm:$0xff] %v1100_v19  }
 0x12a PF: > { %s14_s17 = sadd.s32 1, %s1272_s17   ;;  %s1505_s15 = smov %s1268_s16 }
 0x12b   : > { %p11_p5 = scmp.ge.s32.totalorder %s14_s17, 4   ;;  %s1506_s16 = smov %s1508_s18 }
 0x12d   :  { %13 = sbr.rel (!%p11_p5) target bundleno = 2 (0x2), region = 83 }

// kernel: sam_adaptor_forward.30
= control target key start
LH: loop header
LB: loop body
LE: loop exit
PB: predicated region body
PF: predicated region fallthrough
CT: control target
= control target key end

     0   :  { %s1542_s12 = smov 0   ;;  %s1544_s13 = smov 0   ;;  %s1848_s0 = inlined_call_operand.vmem [shape: bf16[512,147], index: 0, kind: input, shape index: {}]   ;;  %s1849_s1 = inlined_call_operand.vmem [shape: bf16[147,32], index: 1, kind: input, shape index: {}]   ;;  %s1850_s2 = inlined_call_operand.vmem [shape: f32[1,32], index: 2, kind: input, shape index: {}]   ;;  %s1851_s3 = inlined_call_operand.vmem [shape: bf16[512,32], index: 3, kind: output, shape index: {}]  }
   0x1   :  { %s1546_s14 = smov 0  }
   0x2 LB: > { %s32_s15 = sadd.s32 1, %s1513_s13  ;;  %p1258_p0 = scmp.ge.s32.totalorder %s1517_s14, 1  ;;  %s1517_s14 = sphi %s1546_s14, %s13_s14   ;;  %s1513_s13 = sphi %s1544_s13, %s1853_s13   ;;  %s1509_s12 = sphi %s1542_s12, %s1852_s12  }
   0x3   : > { %p34_p1 = scmp.ge.s32.totalorder %s32_s15, 2  ;;  %p191_p2 = scmp.lt.s32.totalorder %s1517_s14, 3 }
   0x5   : > { %s1855_s15 = smov (%p34_p1, %s32_s15), 0  ;;  %p192_p3 = pnand %p1258_p0, %p191_p2 }
   0x6   : > { %v1437_v0 = vld [vmem:[%s1849_s1] sm:$0xff] (!%p192_p3)   ;;  %v1519_v1 = vmov (!%p192_p3), 0   ;;  %v1438_v2 = vld [vmem:[%s1849_s1 + $0x8] sm:$0xff] (!%p192_p3)   ;;  %v1439_v3 = vld [vmem:[%s1849_s1 + $0x10] sm:$0xff] (!%p192_p3)   ;;  %s1259_s22 = sshll.u32 (!%p192_p3), %s1509_s12, 5  ;;  %vm272_vm0 = vcmask (!%p192_p3), 261120  }
   0x7   : > { %195 = sbr.rel (%p192_p3) target bundleno = 337 (0x151), region = 32  ;;  %645 = vmatprep.subr.bf16.mxu0 (!%p192_p3), %v1519_v1  ;;  %1390 = vmatprep.subr.bf16.mxu1 (!%p192_p3), %v1519_v1  ;;  %p236_p4 = scmp.lt.s32.totalorder (!%p192_p3), %s1259_s22, 63  ;;  %v1440_v4 = vld [vmem:[%s1849_s1 + $0x18] sm:$0xff] (!%p192_p3)   ;;  %v1520_v5 = vmov (!%p192_p3), 0.0   ;;  %v1441_v6 = vld [vmem:[%s1849_s1 + $0x20] sm:$0xff] (!%p192_p3)   ;;  %vm589_vm1 = vcmask (!%p192_p3), 154624  }
   0x8   : > { %646 = vmatpush1.bf16.msra.mxu0 (!%p192_p3), %v1437_v0  ;;  %1400 = vmatpush1.bf16.msra.mxu1 (!%p192_p3), %v1437_v0  ;;  %273 = vst.msk [vmem:[#allocation2] sm:$0xff] (!%p192_p3), %vm272_vm0, %v1520_v5  ;;  %274 = vst.msk [vmem:[#allocation2 + $0x8] sm:$0xff] (!%p192_p3), %vm272_vm0, %v1520_v5  ;;  %v1442_v9 = vld [vmem:[%s1849_s1 + $0x28] sm:$0xff] (!%p192_p3)   ;;  %v1443_v10 = vld [vmem:[%s1849_s1 + $0x30] sm:$0xff] (!%p192_p3)   ;;  %vm638_vm2 = vcmask (!%p192_p3), 1040384   ;;  %vm639_vm3 = vcmask (!%p192_p3), 1041408  }
   0x9   : > { %647 = vmatprep.subr.bf16.mxu0 (!%p192_p3), %v1519_v1  ;;  %1391 = vmatprep.subr.bf16.mxu1 (!%p192_p3), %v1519_v1  ;;  %275 = vst.msk [vmem:[#allocation2 + $0x10] sm:$0xff] (!%p192_p3), %vm272_vm0, %v1520_v5  ;;  %276 = vst.msk [vmem:[#allocation2 + $0x18] sm:$0xff] (!%p192_p3), %vm272_vm0, %v1520_v5  ;;  %v1444_v11 = vld [vmem:[%s1849_s1 + $0x38] sm:$0xff] (!%p192_p3)   ;;  %v1521_v12 = vmov (!%p192_p3), 65535   ;;  %v1445_v14 = vld [vmem:[%s1849_s1 + $0x40] sm:$0xff] (!%p192_p3)   ;;  %vm1105_vm4 = vcmask (!%p192_p3), 257024  }
   0xa   : > { %277 = vst.msk [vmem:[#allocation2 + $0x20] sm:$0xff] (!%p192_p3), %vm272_vm0, %v1520_v5  ;;  %278 = vst.msk [vmem:[#allocation2 + $0x28] sm:$0xff] (!%p192_p3), %vm272_vm0, %v1520_v5  ;;  %v640_v13 = vsel (!%p192_p3), %vm638_vm2, 4294967295, %v1521_v12  ;;  %v1446_v15 = vld [vmem:[%s1849_s1 + $0x48] ss:$0 sps:$4 sm:$0x33] (!%p192_p3)  }
   0xb   : > { %279 = vst.msk [vmem:[#allocation2 + $0x30] sm:$0xff] (!%p192_p3), %vm272_vm0, %v1520_v5  ;;  %280 = vst.msk [vmem:[#allocation2 + $0x38] sm:$0xff] (!%p192_p3), %vm272_vm0, %v1520_v5  ;;  %v641_v16 = vsel (!%p192_p3), %vm639_vm3, %v640_v13, 0 }
   0xc   : > { %648 = vmatpush1.bf16.msra.mxu0 (!%p192_p3), %v1438_v2  ;;  %1401 = vmatpush1.bf16.msra.mxu1 (!%p192_p3), %v1438_v2  ;;  %281 = vst.msk [vmem:[#allocation2 + $0x40] sm:$0xff] (!%p192_p3), %vm272_vm0, %v1520_v5  ;;  %282 = vst.msk [vmem:[#allocation2 + $0x48] sm:$0xff] (!%p192_p3), %vm272_vm0, %v1520_v5  ;;  %v643_v17 = vand.u32 (!%p192_p3), %v1446_v15, %v641_v16  ;;  %v1707_v2 = vld [vmem:[%s1850_s2] ss:$0 sm:$0xff] (!%p192_p3) }
   0xd   : > { %649 = vmatprep.subr.bf16.mxu0 (!%p192_p3), %v1519_v1  ;;  %1392 = vmatprep.subr.bf16.mxu1 (!%p192_p3), %v1519_v1  ;;  %283 = vst.msk [vmem:[#allocation2 + $0x50] sm:$0xff] (!%p192_p3), %vm272_vm0, %v1520_v5  ;;  %284 = vst.msk [vmem:[#allocation2 + $0x58] sm:$0xff] (!%p192_p3), %vm272_vm0, %v1520_v5 }
   0xe   : > { %s1857_s22 = smov (!%p236_p4, %s1259_s22), 63  ;;  %285 = vst.msk [vmem:[#allocation2 + $0x60] sm:$0xff] %vm272_vm0, %v1520_v5  ;;  %286 = vst.msk [vmem:[#allocation2 + $0x68] sm:$0xff] %vm272_vm0, %v1520_v5 }
   0xf   : > { %s1357_s25 = sshll.u32 %s1857_s22, 3  ;;  %287 = vst.msk [vmem:[#allocation2 + $0x70] sm:$0xff] %vm272_vm0, %v1520_v5  ;;  %288 = vst.msk [vmem:[#allocation2 + $0x78] sm:$0xff] %vm272_vm0, %v1520_v5  ;;  %v305_v48 = vld [vmem:[#allocation2] sm:$0xff]  ;;  %v306_v52 = vld [vmem:[#allocation2 + $0x8] sm:$0xff]  ;;  %s1263_s19 = sshll.u32 %s1857_s22, 2 }
  0x10   : > { %650 = vmatpush1.bf16.msra.mxu0 %v1439_v3  ;;  %1402 = vmatpush1.bf16.msra.mxu1 %v1439_v3  ;;  %289 = vst.msk [vmem:[#allocation2 + $0x80] sm:$0xff] %vm272_vm0, %v1520_v5  ;;  %290 = vst.msk [vmem:[#allocation2 + $0x88] sm:$0xff] %vm272_vm0, %v1520_v5  ;;  %s1620_s28 = scalar_lea.vmem %s1848_s0, %s1357_s25  ;;  %v307_v0 = vld [vmem:[#allocation2 + $0x10] sm:$0xff]  ;;  %s1721_s22 = scalar_lea.vmem %s1851_s3, %s1263_s19 }
  0x11   : > { %651 = vmatprep.subr.bf16.mxu0 %v1519_v1  ;;  %1393 = vmatprep.subr.bf16.mxu1 %v1519_v1  ;;  %291 = vst.msk [vmem:[#allocation2 + $0x90] sm:$0xff] %vm272_vm0, %v1520_v5  ;;  %292 = vst.msk [vmem:[#allocation2 + $0x98] sm:$0xff] %vm272_vm0, %v1520_v5  ;;  %v1449_v7 = vld [vmem:[%s1620_s28 + $0x4] ss:$8 sps:$4 sm:$0xff]   ;;  %v1447_v18 = vld [vmem:[%s1620_s28] ss:$8 sps:$4 sm:$0xff]  }
  0x12   : > { %293 = vst.msk [vmem:[#allocation2 + $0xa0] sm:$0xff] %vm272_vm0, %v1520_v5  ;;  %294 = vst.msk [vmem:[#allocation2 + $0xa8] sm:$0xff] %vm272_vm0, %v1520_v5  ;;  %v1452_v8 = vld [vmem:[%s1620_s28 + $0x84] ss:$8 sps:$4 sm:$0xff]   ;;  %1306 = vmatprep.mubr.msk.bf16.mxu0 %vm589_vm1, %v1449_v7  ;;  %v1450_v19 = vld [vmem:[%s1620_s28 + $0x80] ss:$8 sps:$4 sm:$0xff]  }
  0x13   : > { %295 = vst.msk [vmem:[#allocation2 + $0xb0] sm:$0xff] %vm272_vm0, %v1520_v5  ;;  %296 = vst.msk [vmem:[#allocation2 + $0xb8] sm:$0xff] %vm272_vm0, %v1520_v5  ;;  %1314 = vmatprep.mubr.msk.bf16.mxu1 %vm589_vm1, %v1452_v8  ;;  %v1453_v20 = vld [vmem:[%s1620_s28 + $0x14] ss:$8 sps:$4 sm:$0xff]   ;;  %v1457_v22 = vld [vmem:[%s1620_s28 + $0x10] ss:$8 sps:$4 sm:$0xff]  }
  0x14   : > { %297 = vst.msk [vmem:[#allocation2 + $0xc0] sm:$0xff] %vm272_vm0, %v1520_v5  ;;  %298 = vst.msk [vmem:[#allocation2 + $0xc8] sm:$0xff] %vm272_vm0, %v1520_v5  ;;  %652 = vmatpush1.bf16.msra.mxu0 %v1440_v4  ;;  %1403 = vmatpush1.bf16.msra.mxu1 %v1440_v4  ;;  %v1455_v21 = vld [vmem:[%s1620_s28 + $0x94] ss:$8 sps:$4 sm:$0xff]   ;;  %v1458_v23 = vld [vmem:[%s1620_s28 + $0x90] ss:$8 sps:$4 sm:$0xff]  }
  0x15   : > { %299 = vst.msk [vmem:[#allocation2 + $0xd0] sm:$0xff] %vm272_vm0, %v1520_v5  ;;  %300 = vst.msk [vmem:[#allocation2 + $0xd8] sm:$0xff] %vm272_vm0, %v1520_v5  ;;  %653 = vmatprep.subr.bf16.mxu0 %v1519_v1  ;;  %1394 = vmatprep.subr.bf16.mxu1 %v1519_v1  ;;  %v1459_v24 = vld [vmem:[%s1620_s28 + $0x24] ss:$8 sps:$4 sm:$0xff]   ;;  %v1463_v26 = vld [vmem:[%s1620_s28 + $0x20] ss:$8 sps:$4 sm:$0xff]  }
  0x16   : > { %301 = vst.msk [vmem:[#allocation2 + $0xe0] sm:$0xff] %vm272_vm0, %v1520_v5  ;;  %302 = vst.msk [vmem:[#allocation2 + $0xe8] sm:$0xff] %vm272_vm0, %v1520_v5  ;;  %v1461_v25 = vld [vmem:[%s1620_s28 + $0xa4] ss:$8 sps:$4 sm:$0xff]   ;;  %v1464_v27 = vld [vmem:[%s1620_s28 + $0xa0] ss:$8 sps:$4 sm:$0xff]  }
  0x17   : > { %303 = vst.msk [vmem:[#allocation2 + $0xf0] sm:$0xff] %vm272_vm0, %v1520_v5  ;;  %304 = vst.msk [vmem:[#allocation2 + $0xf8] sm:$0xff] %vm272_vm0, %v1520_v5  ;;  %v1465_v28 = vld [vmem:[%s1620_s28 + $0x34] ss:$8 sps:$4 sm:$0xff]   ;;  %v1469_v30 = vld [vmem:[%s1620_s28 + $0x30] ss:$8 sps:$4 sm:$0xff]  }
  0x18   : > { %654 = vmatpush1.bf16.msra.mxu0 %v1441_v6  ;;  %1404 = vmatpush1.bf16.msra.mxu1 %v1441_v6  ;;  %v1467_v29 = vld [vmem:[%s1620_s28 + $0xb4] ss:$8 sps:$4 sm:$0xff]   ;;  %v1470_v31 = vld [vmem:[%s1620_s28 + $0xb0] ss:$8 sps:$4 sm:$0xff]   ;;  %v1471_v32 = vld [vmem:[%s1620_s28 + $0x44] ss:$8 sps:$4 sm:$0xff]  }
  0x19   : > { %655 = vmatprep.subr.bf16.mxu0 %v1519_v1  ;;  %1395 = vmatprep.subr.bf16.mxu1 %v1519_v1  ;;  %v1473_v33 = vld [vmem:[%s1620_s28 + $0xc4] ss:$8 sps:$4 sm:$0xff]   ;;  %v1475_v34 = vld [vmem:[%s1620_s28 + $0x40] ss:$8 sps:$4 sm:$0xff]   ;;  %v1477_v36 = vld [vmem:[%s1620_s28 + $0x54] ss:$8 sps:$4 sm:$0xff]  }
  0x1a   : > { %v1476_v35 = vld [vmem:[%s1620_s28 + $0xc0] ss:$8 sps:$4 sm:$0xff]   ;;  %v1479_v37 = vld [vmem:[%s1620_s28 + $0xd4] ss:$8 sps:$4 sm:$0xff]   ;;  %v1481_v38 = vld [vmem:[%s1620_s28 + $0x50] ss:$8 sps:$4 sm:$0xff]  }
  0x1b   : > { %v1482_v39 = vld [vmem:[%s1620_s28 + $0xd0] ss:$8 sps:$4 sm:$0xff]   ;;  %v1483_v40 = vld [vmem:[%s1620_s28 + $0x64] ss:$8 sps:$4 sm:$0xff]   ;;  %v1487_v42 = vld [vmem:[%s1620_s28 + $0x60] ss:$8 sps:$4 sm:$0xff]  }
  0x1c   : > { %656 = vmatpush1.bf16.msra.mxu0 %v1442_v9  ;;  %1405 = vmatpush1.bf16.msra.mxu1 %v1442_v9  ;;  %v1485_v41 = vld [vmem:[%s1620_s28 + $0xe4] ss:$8 sps:$4 sm:$0xff]   ;;  %v1488_v43 = vld [vmem:[%s1620_s28 + $0xe0] ss:$8 sps:$4 sm:$0xff]   ;;  %v1489_v44 = vld [vmem:[%s1620_s28 + $0x74] ss:$8 sps:$4 sm:$0xff]  }
  0x1d   : > { %657 = vmatprep.subr.bf16.mxu0 %v1519_v1  ;;  %1396 = vmatprep.subr.bf16.mxu1 %v1519_v1  ;;  %v1491_v45 = vld [vmem:[%s1620_s28 + $0xf4] ss:$8 sps:$4 sm:$0xff]   ;;  %v1493_v46 = vld [vmem:[%s1620_s28 + $0x70] ss:$8 sps:$4 sm:$0xff]   ;;  %v321_v49 = vld [vmem:[#allocation2 + $0x80] sm:$0xff] }
  0x1e   : > { %v1494_v47 = vld [vmem:[%s1620_s28 + $0xf0] ss:$8 sps:$4 sm:$0xff]   ;;  %v322_v53 = vld [vmem:[#allocation2 + $0x88] sm:$0xff] }
  0x1f   : > { %v308_v5 = vld [vmem:[#allocation2 + $0x18] sm:$0xff] }
  0x20   : > { %658 = vmatpush1.bf16.msra.mxu0 %v1443_v10  ;;  %1406 = vmatpush1.bf16.msra.mxu1 %v1443_v10  ;;  %v324_v6 = vld [vmem:[#allocation2 + $0x98] sm:$0xff] }
  0x21   : > { %659 = vmatprep.subr.bf16.mxu0 %v1519_v1  ;;  %1397 = vmatprep.subr.bf16.mxu1 %v1519_v1 }
  0x24   : > { %660 = vmatpush1.bf16.msra.mxu0 %v1444_v11  ;;  %1407 = vmatpush1.bf16.msra.mxu1 %v1444_v11 }
  0x25   : > { %661 = vmatprep.subr.bf16.mxu0 %v1519_v1  ;;  %1398 = vmatprep.subr.bf16.mxu1 %v1519_v1 }
  0x28   : > { %662 = vmatpush1.bf16.msra.mxu0 %v1445_v14  ;;  %1408 = vmatpush1.bf16.msra.mxu1 %v1445_v14 }
  0x29   : > { %663 = vmatprep.subr.bf16.mxu0 %v1519_v1  ;;  %1399 = vmatprep.subr.bf16.mxu1 %v1519_v1  ;;  %v323_v1 = vld [vmem:[#allocation2 + $0x90] sm:$0xff] }
  0x2c   : > { %664 = vmatpush1.bf16.msra.mxu0 %v643_v17  ;;  %1409 = vmatpush1.bf16.msra.mxu1 %v643_v17 }
  0x2f   : > { %678 = vmatmul.mubr.bf16.vlgmr.msra.gmra.mrb[0].mxu0 %v1447_v18  ;;  %742 = vmatmul.mubr.bf16.vlgmr.msra.gmra.mrb[0].mxu1 %v1450_v19 }
  0x30   : > { %1307 = vmatprep.mubr.msk.bf16.mxu0 %vm589_vm1, %v1453_v20  ;;  %1315 = vmatprep.mubr.msk.bf16.mxu1 %vm589_vm1, %v1455_v21 }
  0x37   : > { %686 = vmatmul.mubr.bf16.gmra.mrb[4].mxu0 %v1457_v22  ;;  %750 = vmatmul.mubr.bf16.gmra.mrb[4].mxu1 %v1458_v23 }
  0x38   : > { %1308 = vmatprep.mubr.msk.bf16.mxu0 %vm589_vm1, %v1459_v24  ;;  %1316 = vmatprep.mubr.msk.bf16.mxu1 %vm589_vm1, %v1461_v25 }
  0x3f   : > { %694 = vmatmul.mubr.bf16.gmra.mrb[8].mxu0 %v1463_v26  ;;  %758 = vmatmul.mubr.bf16.gmra.mrb[8].mxu1 %v1464_v27  ;;  %v309_v27 = vld [vmem:[#allocation2 + $0x20] sm:$0xff] }
  0x40   : > { %1309 = vmatprep.mubr.msk.bf16.mxu0 %vm589_vm1, %v1465_v28  ;;  %1317 = vmatprep.mubr.msk.bf16.mxu1 %vm589_vm1, %v1467_v29  ;;  %v325_v28 = vld [vmem:[#allocation2 + $0xa0] sm:$0xff] }
  0x47   : > { %702 = vmatmul.mubr.bf16.gmra.mrb[12].mxu0 %v1469_v30  ;;  %766 = vmatmul.mubr.bf16.gmra.mrb[12].mxu1 %v1470_v31 }
  0x48   : > { %1310 = vmatprep.mubr.msk.bf16.mxu0 %vm589_vm1, %v1471_v32  ;;  %1318 = vmatprep.mubr.msk.bf16.mxu1 %vm589_vm1, %v1473_v33 }
  0x4f   : > { %710 = vmatmul.mubr.bf16.gmra.mrb[16].mxu0 %v1475_v34  ;;  %774 = vmatmul.mubr.bf16.gmra.mrb[16].mxu1 %v1476_v35  ;;  %v310_v35 = vld [vmem:[#allocation2 + $0x28] sm:$0xff] }
  0x50   : > { %1311 = vmatprep.mubr.msk.bf16.mxu0 %vm589_vm1, %v1477_v36  ;;  %1319 = vmatprep.mubr.msk.bf16.mxu1 %vm589_vm1, %v1479_v37  ;;  %v326_v36 = vld [vmem:[#allocation2 + $0xa8] sm:$0xff] }
  0x57   : > { %718 = vmatmul.mubr.bf16.gmra.mrb[20].mxu0 %v1481_v38  ;;  %782 = vmatmul.mubr.bf16.gmra.mrb[20].mxu1 %v1482_v39 }
  0x58   : > { %1312 = vmatprep.mubr.msk.bf16.mxu0 %vm589_vm1, %v1483_v40  ;;  %1320 = vmatprep.mubr.msk.bf16.mxu1 %vm589_vm1, %v1485_v41 }
  0x5f   : > { %726 = vmatmul.mubr.bf16.gmra.mrb[24].mxu0 %v1487_v42  ;;  %790 = vmatmul.mubr.bf16.gmra.mrb[24].mxu1 %v1488_v43 }
  0x60   : > { %1313 = vmatprep.mubr.msk.bf16.mxu0 %vm589_vm1, %v1489_v44  ;;  %1321 = vmatprep.mubr.msk.bf16.mxu1 %vm589_vm1, %v1491_v45 }
  0x67   : > { %734 = vmatmul.mubr.bf16.gmra.mrb[28].mxu0 %v1493_v46  ;;  %798 = vmatmul.mubr.bf16.gmra.mrb[28].mxu1 %v1494_v47 }
 0x102   : > { %v679_v50 = vpop.f32.mrb[0].mxu0  ;;  %v743_v51 = vpop.f32.mrb[0].mxu1 }
 0x103   : > { %v806_v54 = vadd.f32 %v679_v50, %v305_v48  ;;  %v822_v55 = vadd.f32 %v743_v51, %v321_v49  ;;  %v681_v56 = vpop.f32.mrb[1].mxu0  ;;  %v745_v57 = vpop.f32.mrb[1].mxu1 }
 0x104   : > { %v682_v58 = vpop.f32.mrb[2].mxu0  ;;  %v746_v59 = vpop.f32.mrb[2].mxu1 }
 0x105   : > { %839 = vst.msk [vmem:[#allocation2] sm:$0xff] %vm272_vm0, %v806_v54  ;;  %855 = vst.msk [vmem:[#allocation2 + $0x80] sm:$0xff] %vm272_vm0, %v822_v55  ;;  %v807_v60 = vadd.f32 %v682_v58, %v306_v52  ;;  %v823_v61 = vadd.f32 %v746_v59, %v322_v53  ;;  %v684_v62 = vpop.f32.mrb[3].mxu0  ;;  %v748_v63 = vpop.f32.mrb[3].mxu1  ;;  %v311_v59 = vld [vmem:[#allocation2 + $0x30] sm:$0xff] }
 0x107   : > { %840 = vst.msk [vmem:[#allocation2 + $0x8] sm:$0xff] %vm272_vm0, %v807_v60  ;;  %856 = vst.msk [vmem:[#allocation2 + $0x88] sm:$0xff] %vm272_vm0, %v823_v61  ;;  %v327_v60 = vld [vmem:[#allocation2 + $0xb0] sm:$0xff] }
 0x10a   : > { %v687_v3 = vpop.f32.mrb[4].mxu0  ;;  %v751_v4 = vpop.f32.mrb[4].mxu1 }
 0x10b   : > { %v808_v7 = vadd.f32 %v687_v3, %v307_v0  ;;  %v824_v8 = vadd.f32 %v751_v4, %v323_v1  ;;  %v689_v9 = vpop.f32.mrb[5].mxu0  ;;  %v753_v10 = vpop.f32.mrb[5].mxu1  ;;  %v312_v4 = vld [vmem:[#allocation2 + $0x38] sm:$0xff] }
 0x10c   : > { %v874_v11 = vld [vmem:[#allocation2] sm:$0xff]  ;;  %v690_v13 = vpop.f32.mrb[6].mxu0  ;;  %v754_v14 = vpop.f32.mrb[6].mxu1 }
 0x10d   : > { %v890_v12 = vld [vmem:[#allocation2 + $0x80] sm:$0xff]  ;;  %v913_v15 = vadd.f32 %v1707_v2, %v874_v11  ;;  %841 = vst.msk [vmem:[#allocation2 + $0x10] sm:$0xff] %vm272_vm0, %v808_v7  ;;  %857 = vst.msk [vmem:[#allocation2 + $0x90] sm:$0xff] %vm272_vm0, %v824_v8  ;;  %v809_v17 = vadd.f32 %v690_v13, %v308_v5  ;;  %v825_v18 = vadd.f32 %v754_v14, %v324_v6  ;;  %v692_v19 = vpop.f32.mrb[7].mxu0  ;;  %v756_v20 = vpop.f32.mrb[7].mxu1  ;;  %v328_v5 = vld [vmem:[#allocation2 + $0xb8] sm:$0xff] }
 0x10e   : > { %v929_v16 = vadd.f32 %v1707_v2, %v890_v12  ;;  %v875_v21 = vld [vmem:[#allocation2 + $0x8] sm:$0xff] }
 0x10f   : > { %v891_v22 = vld [vmem:[#allocation2 + $0x88] sm:$0xff]  ;;  %v945_v23 = vmax.f32 %v913_v15, 0.0  ;;  %v914_v25 = vadd.f32 %v1707_v2, %v875_v21  ;;  %842 = vst.msk [vmem:[#allocation2 + $0x18] sm:$0xff] %vm272_vm0, %v809_v17  ;;  %858 = vst.msk [vmem:[#allocation2 + $0x98] sm:$0xff] %vm272_vm0, %v825_v18 }
 0x110   : > { %v961_v24 = vmax.f32 %v929_v16, 0.0  ;;  %v930_v26 = vadd.f32 %v1707_v2, %v891_v22 }
 0x111   : > { %v1358_v29 = vpack.c.bf16 %v945_v23, %v945_v23  ;;  %v946_v31 = vmax.f32 %v914_v25, 0.0 }
 0x112   : > { %v1374_v30 = vpack.c.bf16 %v961_v24, %v961_v24  ;;  %v962_v32 = vmax.f32 %v930_v26, 0.0  ;;  %v695_v33 = vpop.f32.mrb[8].mxu0  ;;  %v759_v34 = vpop.f32.mrb[8].mxu1 }
 0x113   : > { %1106 = vst.msk [vmem:[%s1721_s22] sm:$0xf] %vm1105_vm4, %v1358_v29  ;;  %v1359_v37 = vpack.c.bf16 %v946_v31, %v946_v31  ;;  %v810_v39 = vadd.f32 %v695_v33, %v309_v27  ;;  %v826_v40 = vadd.f32 %v759_v34, %v325_v28  ;;  %v697_v41 = vpop.f32.mrb[9].mxu0  ;;  %v761_v42 = vpop.f32.mrb[9].mxu1  ;;  %v313_v28 = vld [vmem:[#allocation2 + $0x40] sm:$0xff] }
 0x114   : > { %1122 = vst.msk [vmem:[%s1721_s22 + $0x40] sm:$0xf] %vm1105_vm4, %v1374_v30  ;;  %v1375_v38 = vpack.c.bf16 %v962_v32, %v962_v32  ;;  %v876_v43 = vld [vmem:[#allocation2 + $0x10] sm:$0xff]  ;;  %v698_v45 = vpop.f32.mrb[10].mxu0  ;;  %v762_v46 = vpop.f32.mrb[10].mxu1  ;;  %v329_v29 = vld [vmem:[#allocation2 + $0xc0] sm:$0xff] }
 0x115   : > { %v892_v44 = vld [vmem:[#allocation2 + $0x90] sm:$0xff]  ;;  %1107 = vst.msk [vmem:[%s1721_s22 + $0x4] sm:$0xf] %vm1105_vm4, %v1359_v37  ;;  %v915_v47 = vadd.f32 %v1707_v2, %v876_v43  ;;  %v811_v49 = vadd.f32 %v698_v45, %v310_v35  ;;  %v827_v50 = vadd.f32 %v762_v46, %v326_v36  ;;  %v700_v51 = vpop.f32.mrb[11].mxu0  ;;  %v764_v52 = vpop.f32.mrb[11].mxu1  ;;  %v314_v36 = vld [vmem:[#allocation2 + $0x48] sm:$0xff] }
 0x116   : > { %1123 = vst.msk [vmem:[%s1721_s22 + $0x44] sm:$0xf] %vm1105_vm4, %v1375_v38  ;;  %v931_v48 = vadd.f32 %v1707_v2, %v892_v44  ;;  %v877_v53 = vld [vmem:[#allocation2 + $0x18] sm:$0xff]  ;;  %v330_v37 = vld [vmem:[#allocation2 + $0xc8] sm:$0xff] }
 0x117   : > { %843 = vst.msk [vmem:[#allocation2 + $0x20] sm:$0xff] %vm272_vm0, %v810_v39  ;;  %859 = vst.msk [vmem:[#allocation2 + $0xa0] sm:$0xff] %vm272_vm0, %v826_v40  ;;  %v893_v54 = vld [vmem:[#allocation2 + $0x98] sm:$0xff]  ;;  %v947_v55 = vmax.f32 %v915_v47, 0.0  ;;  %v916_v57 = vadd.f32 %v1707_v2, %v877_v53 }
 0x118   : > { %v963_v56 = vmax.f32 %v931_v48, 0.0  ;;  %v932_v58 = vadd.f32 %v1707_v2, %v893_v54  ;;  %844 = vst.msk [vmem:[#allocation2 + $0x28] sm:$0xff] %vm272_vm0, %v811_v49  ;;  %860 = vst.msk [vmem:[#allocation2 + $0xa8] sm:$0xff] %vm272_vm0, %v827_v50 }
 0x119   : > { %v1360_v61 = vpack.c.bf16 %v947_v55, %v947_v55  ;;  %v948_v63 = vmax.f32 %v916_v57, 0.0 }
 0x11a   : > { %v1376_v62 = vpack.c.bf16 %v963_v56, %v963_v56  ;;  %v964_v0 = vmax.f32 %v932_v58, 0.0  ;;  %v703_v1 = vpop.f32.mrb[12].mxu0  ;;  %v767_v3 = vpop.f32.mrb[12].mxu1 }
 0x11b   : > { %1108 = vst.msk [vmem:[%s1721_s22 + $0x8] sm:$0xf] %vm1105_vm4, %v1360_v61  ;;  %v1361_v6 = vpack.c.bf16 %v948_v63, %v948_v63  ;;  %v812_v8 = vadd.f32 %v703_v1, %v311_v59  ;;  %v828_v9 = vadd.f32 %v767_v3, %v327_v60  ;;  %v705_v10 = vpop.f32.mrb[13].mxu0  ;;  %v769_v11 = vpop.f32.mrb[13].mxu1  ;;  %v315_v60 = vld [vmem:[#allocation2 + $0x50] sm:$0xff] }
 0x11c   : > { %1124 = vst.msk [vmem:[%s1721_s22 + $0x48] sm:$0xf] %vm1105_vm4, %v1376_v62  ;;  %v1377_v7 = vpack.c.bf16 %v964_v0, %v964_v0  ;;  %v706_v14 = vpop.f32.mrb[14].mxu0  ;;  %v770_v15 = vpop.f32.mrb[14].mxu1  ;;  %v331_v61 = vld [vmem:[#allocation2 + $0xd0] sm:$0xff] }
 0x11d   : > { %1109 = vst.msk [vmem:[%s1721_s22 + $0xc] sm:$0xf] %vm1105_vm4, %v1361_v6  ;;  %v813_v18 = vadd.f32 %v706_v14, %v312_v4  ;;  %v829_v19 = vadd.f32 %v770_v15, %v328_v5  ;;  %v708_v20 = vpop.f32.mrb[15].mxu0  ;;  %v772_v21 = vpop.f32.mrb[15].mxu1  ;;  %v316_v5 = vld [vmem:[#allocation2 + $0x58] sm:$0xff] }
 0x11e   : > { %v878_v12 = vld [vmem:[#allocation2 + $0x20] sm:$0xff]  ;;  %1125 = vst.msk [vmem:[%s1721_s22 + $0x4c] sm:$0xf] %vm1105_vm4, %v1377_v7  ;;  %v332_v6 = vld [vmem:[#allocation2 + $0xd8] sm:$0xff] }
 0x11f   : > { %v894_v13 = vld [vmem:[#allocation2 + $0xa0] sm:$0xff]  ;;  %v917_v16 = vadd.f32 %v1707_v2, %v878_v12  ;;  %845 = vst.msk [vmem:[#allocation2 + $0x30] sm:$0xff] %vm272_vm0, %v812_v8  ;;  %861 = vst.msk [vmem:[#allocation2 + $0xb0] sm:$0xff] %vm272_vm0, %v828_v9  ;;  %v879_v22 = vld [vmem:[#allocation2 + $0x28] sm:$0xff] }
 0x120   : > { %v933_v17 = vadd.f32 %v1707_v2, %v894_v13  ;;  %v895_v23 = vld [vmem:[#allocation2 + $0xa8] sm:$0xff]  ;;  %v918_v26 = vadd.f32 %v1707_v2, %v879_v22  ;;  %846 = vst.msk [vmem:[#allocation2 + $0x38] sm:$0xff] %vm272_vm0, %v813_v18  ;;  %862 = vst.msk [vmem:[#allocation2 + $0xb8] sm:$0xff] %vm272_vm0, %v829_v19 }
 0x121   : > { %v949_v24 = vmax.f32 %v917_v16, 0.0  ;;  %v934_v27 = vadd.f32 %v1707_v2, %v895_v23 }
 0x122   : > { %v965_v25 = vmax.f32 %v933_v17, 0.0  ;;  %v950_v32 = vmax.f32 %v918_v26, 0.0  ;;  %v711_v34 = vpop.f32.mrb[16].mxu0  ;;  %v775_v35 = vpop.f32.mrb[16].mxu1 }
 0x123   : > { %v1362_v30 = vpack.c.bf16 %v949_v24, %v949_v24  ;;  %v966_v33 = vmax.f32 %v934_v27, 0.0  ;;  %v814_v40 = vadd.f32 %v711_v34, %v313_v28  ;;  %v830_v41 = vadd.f32 %v775_v35, %v329_v29  ;;  %v713_v42 = vpop.f32.mrb[17].mxu0  ;;  %v777_v43 = vpop.f32.mrb[17].mxu1  ;;  %v317_v29 = vld [vmem:[#allocation2 + $0x60] sm:$0xff] }
 0x124   : > { %v1378_v31 = vpack.c.bf16 %v965_v25, %v965_v25  ;;  %v1363_v38 = vpack.c.bf16 %v950_v32, %v950_v32  ;;  %v714_v46 = vpop.f32.mrb[18].mxu0  ;;  %v778_v47 = vpop.f32.mrb[18].mxu1 }
 0x125   : > { %1110 = vst.msk [vmem:[%s1721_s22 + $0x10] sm:$0xf] %vm1105_vm4, %v1362_v30  ;;  %v1379_v39 = vpack.c.bf16 %v966_v33, %v966_v33  ;;  %v815_v50 = vadd.f32 %v714_v46, %v314_v36  ;;  %v831_v51 = vadd.f32 %v778_v47, %v330_v37  ;;  %v716_v52 = vpop.f32.mrb[19].mxu0  ;;  %v780_v53 = vpop.f32.mrb[19].mxu1  ;;  %v333_v30 = vld [vmem:[#allocation2 + $0xe0] sm:$0xff]  ;;  %v318_v37 = vld [vmem:[#allocation2 + $0x68] sm:$0xff] }
 0x126   : > { %1126 = vst.msk [vmem:[%s1721_s22 + $0x50] sm:$0xf] %vm1105_vm4, %v1378_v31  ;;  %v880_v44 = vld [vmem:[#allocation2 + $0x30] sm:$0xff]  ;;  %1111 = vst.msk [vmem:[%s1721_s22 + $0x14] sm:$0xf] %vm1105_vm4, %v1363_v38  ;;  %v334_v38 = vld [vmem:[#allocation2 + $0xe8] sm:$0xff] }
 0x127   : > { %v896_v45 = vld [vmem:[#allocation2 + $0xb0] sm:$0xff]  ;;  %1127 = vst.msk [vmem:[%s1721_s22 + $0x54] sm:$0xf] %vm1105_vm4, %v1379_v39  ;;  %v919_v48 = vadd.f32 %v1707_v2, %v880_v44  ;;  %v881_v54 = vld [vmem:[#allocation2 + $0x38] sm:$0xff] }
 0x128   : > { %v935_v49 = vadd.f32 %v1707_v2, %v896_v45  ;;  %847 = vst.msk [vmem:[#allocation2 + $0x40] sm:$0xff] %vm272_vm0, %v814_v40  ;;  %863 = vst.msk [vmem:[#allocation2 + $0xc0] sm:$0xff] %vm272_vm0, %v830_v41  ;;  %v897_v55 = vld [vmem:[#allocation2 + $0xb8] sm:$0xff]  ;;  %v920_v58 = vadd.f32 %v1707_v2, %v881_v54 }
 0x129   : > { %v951_v56 = vmax.f32 %v919_v48, 0.0  ;;  %v936_v59 = vadd.f32 %v1707_v2, %v897_v55  ;;  %848 = vst.msk [vmem:[#allocation2 + $0x48] sm:$0xff] %vm272_vm0, %v815_v50  ;;  %864 = vst.msk [vmem:[#allocation2 + $0xc8] sm:$0xff] %vm272_vm0, %v831_v51 }
 0x12a   : > { %v967_v57 = vmax.f32 %v935_v49, 0.0  ;;  %v952_v0 = vmax.f32 %v920_v58, 0.0  ;;  %v719_v3 = vpop.f32.mrb[20].mxu0  ;;  %v783_v4 = vpop.f32.mrb[20].mxu1 }
 0x12b   : > { %v1364_v62 = vpack.c.bf16 %v951_v56, %v951_v56  ;;  %v968_v1 = vmax.f32 %v936_v59, 0.0  ;;  %v816_v9 = vadd.f32 %v719_v3, %v315_v60  ;;  %v832_v10 = vadd.f32 %v783_v4, %v331_v61  ;;  %v721_v11 = vpop.f32.mrb[21].mxu0  ;;  %v785_v12 = vpop.f32.mrb[21].mxu1  ;;  %v319_v61 = vld [vmem:[#allocation2 + $0x70] sm:$0xff] }
 0x12c   : > { %v1380_v63 = vpack.c.bf16 %v967_v57, %v967_v57  ;;  %v1365_v7 = vpack.c.bf16 %v952_v0, %v952_v0  ;;  %v722_v15 = vpop.f32.mrb[22].mxu0  ;;  %v786_v16 = vpop.f32.mrb[22].mxu1 }
 0x12d   : > { %1112 = vst.msk [vmem:[%s1721_s22 + $0x18] sm:$0xf] %vm1105_vm4, %v1364_v62  ;;  %v1381_v8 = vpack.c.bf16 %v968_v1, %v968_v1  ;;  %v817_v19 = vadd.f32 %v722_v15, %v316_v5  ;;  %v833_v20 = vadd.f32 %v786_v16, %v332_v6  ;;  %v724_v21 = vpop.f32.mrb[23].mxu0  ;;  %v788_v22 = vpop.f32.mrb[23].mxu1  ;;  %v335_v62 = vld [vmem:[#allocation2 + $0xf0] sm:$0xff]  ;;  %v320_v6 = vld [vmem:[#allocation2 + $0x78] sm:$0xff] }
 0x12e   : > { %1128 = vst.msk [vmem:[%s1721_s22 + $0x58] sm:$0xf] %vm1105_vm4, %v1380_v63  ;;  %1113 = vst.msk [vmem:[%s1721_s22 + $0x1c] sm:$0xf] %vm1105_vm4, %v1365_v7  ;;  %v336_v7 = vld [vmem:[#allocation2 + $0xf8] sm:$0xff] }
 0x12f   : > { %v882_v13 = vld [vmem:[#allocation2 + $0x40] sm:$0xff]  ;;  %1129 = vst.msk [vmem:[%s1721_s22 + $0x5c] sm:$0xf] %vm1105_vm4, %v1381_v8 }
 0x130   : > { %v898_v14 = vld [vmem:[#allocation2 + $0xc0] sm:$0xff]  ;;  %v921_v17 = vadd.f32 %v1707_v2, %v882_v13  ;;  %849 = vst.msk [vmem:[#allocation2 + $0x50] sm:$0xff] %vm272_vm0, %v816_v9  ;;  %865 = vst.msk [vmem:[#allocation2 + $0xd0] sm:$0xff] %vm272_vm0, %v832_v10  ;;  %v883_v23 = vld [vmem:[#allocation2 + $0x48] sm:$0xff] }
 0x131   : > { %v937_v18 = vadd.f32 %v1707_v2, %v898_v14  ;;  %v899_v24 = vld [vmem:[#allocation2 + $0xc8] sm:$0xff]  ;;  %v922_v27 = vadd.f32 %v1707_v2, %v883_v23  ;;  %850 = vst.msk [vmem:[#allocation2 + $0x58] sm:$0xff] %vm272_vm0, %v817_v19  ;;  %866 = vst.msk [vmem:[#allocation2 + $0xd8] sm:$0xff] %vm272_vm0, %v833_v20 }
 0x132   : > { %v953_v25 = vmax.f32 %v921_v17, 0.0  ;;  %v938_v28 = vadd.f32 %v1707_v2, %v899_v24  ;;  %v727_v35 = vpop.f32.mrb[24].mxu0  ;;  %v791_v36 = vpop.f32.mrb[24].mxu1 }
 0x133   : > { %v969_v26 = vmax.f32 %v937_v18, 0.0  ;;  %v954_v33 = vmax.f32 %v922_v27, 0.0  ;;  %v818_v41 = vadd.f32 %v727_v35, %v317_v29  ;;  %v834_v42 = vadd.f32 %v791_v36, %v333_v30  ;;  %v729_v43 = vpop.f32.mrb[25].mxu0  ;;  %v793_v44 = vpop.f32.mrb[25].mxu1 }
 0x134   : > { %v1366_v31 = vpack.c.bf16 %v953_v25, %v953_v25  ;;  %v970_v34 = vmax.f32 %v938_v28, 0.0  ;;  %v730_v47 = vpop.f32.mrb[26].mxu0  ;;  %v794_v48 = vpop.f32.mrb[26].mxu1 }
 0x135   : > { %v1382_v32 = vpack.c.bf16 %v969_v26, %v969_v26  ;;  %v1367_v39 = vpack.c.bf16 %v954_v33, %v954_v33  ;;  %851 = vst.msk [vmem:[#allocation2 + $0x60] sm:$0xff] %vm272_vm0, %v818_v41  ;;  %867 = vst.msk [vmem:[#allocation2 + $0xe0] sm:$0xff] %vm272_vm0, %v834_v42  ;;  %v819_v51 = vadd.f32 %v730_v47, %v318_v37  ;;  %v732_v53 = vpop.f32.mrb[27].mxu0  ;;  %v796_v54 = vpop.f32.mrb[27].mxu1 }
 0x136   : > { %1114 = vst.msk [vmem:[%s1721_s22 + $0x20] sm:$0xf] %vm1105_vm4, %v1366_v31  ;;  %v1383_v40 = vpack.c.bf16 %v970_v34, %v970_v34  ;;  %v835_v52 = vadd.f32 %v794_v48, %v334_v38 }
 0x137   : > { %1130 = vst.msk [vmem:[%s1721_s22 + $0x60] sm:$0xf] %vm1105_vm4, %v1382_v32  ;;  %v884_v45 = vld [vmem:[#allocation2 + $0x50] sm:$0xff]  ;;  %1115 = vst.msk [vmem:[%s1721_s22 + $0x24] sm:$0xf] %vm1105_vm4, %v1367_v39 }
 0x138   : > { %v900_v46 = vld [vmem:[#allocation2 + $0xd0] sm:$0xff]  ;;  %1131 = vst.msk [vmem:[%s1721_s22 + $0x64] sm:$0xf] %vm1105_vm4, %v1383_v40  ;;  %v923_v49 = vadd.f32 %v1707_v2, %v884_v45  ;;  %v885_v55 = vld [vmem:[#allocation2 + $0x58] sm:$0xff] }
 0x139   : > { %v939_v50 = vadd.f32 %v1707_v2, %v900_v46  ;;  %v901_v56 = vld [vmem:[#allocation2 + $0xd8] sm:$0xff]  ;;  %v924_v59 = vadd.f32 %v1707_v2, %v885_v55  ;;  %852 = vst.msk [vmem:[#allocation2 + $0x68] sm:$0xff] %vm272_vm0, %v819_v51  ;;  %868 = vst.msk [vmem:[#allocation2 + $0xe8] sm:$0xff] %vm272_vm0, %v835_v52 }
 0x13a   : > { %v955_v57 = vmax.f32 %v923_v49, 0.0  ;;  %v940_v60 = vadd.f32 %v1707_v2, %v901_v56  ;;  %v735_v4 = vpop.f32.mrb[28].mxu0  ;;  %v799_v5 = vpop.f32.mrb[28].mxu1 }
 0x13b   : > { %v971_v58 = vmax.f32 %v939_v50, 0.0  ;;  %v956_v1 = vmax.f32 %v924_v59, 0.0  ;;  %v820_v10 = vadd.f32 %v735_v4, %v319_v61  ;;  %v836_v11 = vadd.f32 %v799_v5, %v335_v62  ;;  %v737_v12 = vpop.f32.mrb[29].mxu0  ;;  %v801_v13 = vpop.f32.mrb[29].mxu1 }
 0x13c   : > { %v1368_v63 = vpack.c.bf16 %v955_v57, %v955_v57  ;;  %v972_v3 = vmax.f32 %v940_v60, 0.0  ;;  %v886_v14 = vld [vmem:[#allocation2 + $0x60] sm:$0xff]  ;;  %v738_v16 = vpop.f32.mrb[30].mxu0  ;;  %v802_v17 = vpop.f32.mrb[30].mxu1 }
 0x13d   : > { %v1384_v0 = vpack.c.bf16 %v971_v58, %v971_v58  ;;  %v1369_v8 = vpack.c.bf16 %v956_v1, %v956_v1  ;;  %v902_v15 = vld [vmem:[#allocation2 + $0xe0] sm:$0xff]  ;;  %v925_v18 = vadd.f32 %v1707_v2, %v886_v14  ;;  %853 = vst.msk [vmem:[#allocation2 + $0x70] sm:$0xff] %vm272_vm0, %v820_v10  ;;  %869 = vst.msk [vmem:[#allocation2 + $0xf0] sm:$0xff] %vm272_vm0, %v836_v11  ;;  %v740_v22 = vpop.f32.mrb[31].mxu0  ;;  %v804_v23 = vpop.f32.mrb[31].mxu1 }
 0x13e   : > { %1116 = vst.msk [vmem:[%s1721_s22 + $0x28] sm:$0xf] %vm1105_vm4, %v1368_v63  ;;  %v1385_v9 = vpack.c.bf16 %v972_v3, %v972_v3  ;;  %v941_v19 = vadd.f32 %v1707_v2, %v902_v15  ;;  %v821_v20 = vadd.f32 %v738_v16, %v320_v6  ;;  %v837_v21 = vadd.f32 %v802_v17, %v336_v7 }
 0x13f   : > { %1132 = vst.msk [vmem:[%s1721_s22 + $0x68] sm:$0xf] %vm1105_vm4, %v1384_v0  ;;  %1117 = vst.msk [vmem:[%s1721_s22 + $0x2c] sm:$0xf] %vm1105_vm4, %v1369_v8  ;;  %v957_v26 = vmax.f32 %v925_v18, 0.0 }
 0x140   : > { %1133 = vst.msk [vmem:[%s1721_s22 + $0x6c] sm:$0xf] %vm1105_vm4, %v1385_v9  ;;  %v887_v24 = vld [vmem:[#allocation2 + $0x68] sm:$0xff]  ;;  %v973_v27 = vmax.f32 %v941_v19, 0.0 }
 0x141   : > { %v903_v25 = vld [vmem:[#allocation2 + $0xe8] sm:$0xff]  ;;  %v926_v28 = vadd.f32 %v1707_v2, %v887_v24  ;;  %854 = vst.msk [vmem:[#allocation2 + $0x78] sm:$0xff] %vm272_vm0, %v821_v20  ;;  %870 = vst.msk [vmem:[#allocation2 + $0xf8] sm:$0xff] %vm272_vm0, %v837_v21  ;;  %v1370_v30 = vpack.c.bf16 %v957_v26, %v957_v26 }
 0x142   : > { %v942_v29 = vadd.f32 %v1707_v2, %v903_v25  ;;  %v1386_v31 = vpack.c.bf16 %v973_v27, %v973_v27 }
 0x143   : > { %v958_v32 = vmax.f32 %v926_v28, 0.0  ;;  %1118 = vst.msk [vmem:[%s1721_s22 + $0x30] sm:$0xf] %vm1105_vm4, %v1370_v30 }
 0x144   : > { %v974_v33 = vmax.f32 %v942_v29, 0.0  ;;  %1134 = vst.msk [vmem:[%s1721_s22 + $0x70] sm:$0xf] %vm1105_vm4, %v1386_v31  ;;  %v888_v36 = vld [vmem:[#allocation2 + $0x70] sm:$0xff] }
 0x145   : > { %v1371_v34 = vpack.c.bf16 %v958_v32, %v958_v32  ;;  %v904_v37 = vld [vmem:[#allocation2 + $0xf0] sm:$0xff]  ;;  %v927_v38 = vadd.f32 %v1707_v2, %v888_v36 }
 0x146   : > { %v1387_v35 = vpack.c.bf16 %v974_v33, %v974_v33  ;;  %v943_v39 = vadd.f32 %v1707_v2, %v904_v37 }
 0x147   : > { %1119 = vst.msk [vmem:[%s1721_s22 + $0x34] sm:$0xf] %vm1105_vm4, %v1371_v34  ;;  %v959_v42 = vmax.f32 %v927_v38, 0.0 }
 0x148   : > { %1135 = vst.msk [vmem:[%s1721_s22 + $0x74] sm:$0xf] %vm1105_vm4, %v1387_v35  ;;  %v889_v40 = vld [vmem:[#allocation2 + $0x78] sm:$0xff]  ;;  %v975_v43 = vmax.f32 %v943_v39, 0.0 }
 0x149   : > { %v905_v41 = vld [vmem:[#allocation2 + $0xf8] sm:$0xff]  ;;  %v928_v44 = vadd.f32 %v1707_v2, %v889_v40  ;;  %v1372_v46 = vpack.c.bf16 %v959_v42, %v959_v42 }
 0x14a   : > { %v944_v45 = vadd.f32 %v1707_v2, %v905_v41  ;;  %v1388_v47 = vpack.c.bf16 %v975_v43, %v975_v43 }
 0x14b   : > { %v960_v48 = vmax.f32 %v928_v44, 0.0  ;;  %1120 = vst.msk [vmem:[%s1721_s22 + $0x38] sm:$0xf] %vm1105_vm4, %v1372_v46 }
 0x14c   : > { %v976_v49 = vmax.f32 %v944_v45, 0.0  ;;  %1136 = vst.msk [vmem:[%s1721_s22 + $0x78] sm:$0xf] %vm1105_vm4, %v1388_v47 }
 0x14d   : > { %v1373_v50 = vpack.c.bf16 %v960_v48, %v960_v48 }
 0x14e   : > { %v1389_v51 = vpack.c.bf16 %v976_v49, %v976_v49 }
 0x14f   : > { %1121 = vst.msk [vmem:[%s1721_s22 + $0x3c] sm:$0xf] %vm1105_vm4, %v1373_v50 }
 0x150   : > { %1137 = vst.msk [vmem:[%s1721_s22 + $0x7c] sm:$0xf] %vm1105_vm4, %v1389_v51 }
 0x151 PF: > { %s13_s14 = sadd.s32 1, %s1517_s14   ;;  %s1852_s12 = smov %s1513_s13 }
 0x152   : > { %p10_p5 = scmp.ge.s32.totalorder %s13_s14, 4   ;;  %s1853_s13 = smov %s1855_s15 }
 0x154   :  { %12 = sbr.rel (!%p10_p5) target bundleno = 2 (0x2), region = 76 }

// kernel: sam_adaptor_forward.31
= control target key start
LH: loop header
LB: loop body
LE: loop exit
PB: predicated region body
PF: predicated region fallthrough
CT: control target
= control target key end

     0   :  { %vm19_vm0 = vcmask 261120   ;;  %v986_v42 = vmov 0.0   ;;  %vm721_vm1 = vcmask 257024   ;;  %s1273_s1 = inlined_call_operand.vmem [shape: bf16[288,32], index: 1, kind: input, shape index: {}]   ;;  %s1274_s0 = inlined_call_operand.vmem [shape: bf16[128,288], index: 0, kind: input, shape index: {}]   ;;  %s1275_s2 = inlined_call_operand.vmem [shape: f32[1,32], index: 2, kind: input, shape index: {}]   ;;  %s1276_s3 = inlined_call_operand.vmem [shape: bf16[128,32], index: 3, kind: output, shape index: {}]  }
   0x1   :  { %v936_v0 = vld [vmem:[%s1273_s1 + $0x40] sm:$0xff]   ;;  %v938_v2 = vld [vmem:[%s1273_s1 + $0x48] sm:$0xff]   ;;  %v940_v4 = vld [vmem:[%s1273_s1 + $0x50] sm:$0xff]   ;;  %22 = vst.msk [vmem:[#allocation2 + $0x10] sm:$0xff] %vm19_vm0, %v986_v42 }
   0x2   :  { %v937_v1 = vld [vmem:[%s1273_s1] sm:$0xff]   ;;  %825 = vmatprep.subr.bf16.mxu0 %v936_v0  ;;  %919 = vmatprep.subr.bf16.mxu1 %v936_v0  ;;  %v939_v3 = vld [vmem:[%s1273_s1 + $0x8] sm:$0xff]   ;;  %v941_v5 = vld [vmem:[%s1273_s1 + $0x10] sm:$0xff]   ;;  %20 = vst.msk [vmem:[#allocation2] sm:$0xff] %vm19_vm0, %v986_v42 }
   0x3   :  { %826 = vmatpush3.bf16.msra.mxu0 %v937_v1  ;;  %927 = vmatpush3.bf16.msra.mxu1 %v937_v1  ;;  %v942_v6 = vld [vmem:[%s1273_s1 + $0x58] sm:$0xff]   ;;  %v944_v8 = vld [vmem:[%s1273_s1 + $0x60] sm:$0xff]   ;;  %v946_v10 = vld [vmem:[%s1273_s1 + $0x68] sm:$0xff]   ;;  %21 = vst.msk [vmem:[#allocation2 + $0x8] sm:$0xff] %vm19_vm0, %v986_v42 }
   0x4   :  { %827 = vmatprep.subr.bf16.mxu0 %v938_v2  ;;  %920 = vmatprep.subr.bf16.mxu1 %v938_v2  ;;  %v943_v7 = vld [vmem:[%s1273_s1 + $0x18] sm:$0xff]   ;;  %v945_v9 = vld [vmem:[%s1273_s1 + $0x20] sm:$0xff]   ;;  %v947_v13 = vld [vmem:[%s1273_s1 + $0x28] sm:$0xff]   ;;  %23 = vst.msk [vmem:[#allocation2 + $0x18] sm:$0xff] %vm19_vm0, %v986_v42 }
   0x5   :  { %v954_v11 = vld [vmem:[%s1274_s0 + $0x4] ss:$12 sps:$4 sm:$0xff]   ;;  %v957_v12 = vld [vmem:[%s1274_s0 + $0x94] ss:$12 sps:$4 sm:$0xff]   ;;  %v950_v16 = vld [vmem:[%s1273_s1 + $0x78] sm:$0xff]   ;;  %24 = vst.msk [vmem:[#allocation2 + $0x20] sm:$0xff] %vm19_vm0, %v986_v42 }
   0x6   :  { %v948_v14 = vld [vmem:[%s1273_s1 + $0x70] sm:$0xff]   ;;  %405 = vmatprep.mubr.bf16.mxu0 %v954_v11  ;;  %453 = vmatprep.mubr.bf16.mxu1 %v957_v12  ;;  %v951_v17 = vld [vmem:[%s1273_s1 + $0x38] sm:$0xff]   ;;  %v952_v18 = vld [vmem:[%s1274_s0] ss:$12 sps:$4 sm:$0xff]   ;;  %25 = vst.msk [vmem:[#allocation2 + $0x28] sm:$0xff] %vm19_vm0, %v986_v42 }
   0x7   :  { %828 = vmatpush3.bf16.msra.mxu0 %v939_v3  ;;  %928 = vmatpush3.bf16.msra.mxu1 %v939_v3  ;;  %v949_v15 = vld [vmem:[%s1273_s1 + $0x30] sm:$0xff]   ;;  %v958_v19 = vld [vmem:[%s1273_s1 + $0x80] sm:$0xff]   ;;  %v959_v21 = vld [vmem:[%s1274_s0 + $0x1c] ss:$12 sps:$4 sm:$0xff]   ;;  %26 = vst.msk [vmem:[#allocation2 + $0x30] sm:$0xff] %vm19_vm0, %v986_v42 }
   0x8   :  { %829 = vmatprep.subr.bf16.mxu0 %v940_v4  ;;  %921 = vmatprep.subr.bf16.mxu1 %v940_v4  ;;  %v955_v20 = vld [vmem:[%s1274_s0 + $0x90] ss:$12 sps:$4 sm:$0xff]   ;;  %v961_v22 = vld [vmem:[%s1274_s0 + $0xac] ss:$12 sps:$4 sm:$0xff]   ;;  %v964_v25 = vld [vmem:[%s1274_s0 + $0xa8] ss:$12 sps:$4 sm:$0xff]  }
   0x9   :  { %v965_v23 = vld [vmem:[%s1273_s1 + $0x88] sm:$0xff]   ;;  %v963_v24 = vld [vmem:[%s1274_s0 + $0x18] ss:$12 sps:$4 sm:$0xff]   ;;  %v966_v26 = vld [vmem:[%s1274_s0 + $0x34] ss:$12 sps:$4 sm:$0xff]   ;;  %27 = vst.msk [vmem:[#allocation2 + $0x38] sm:$0xff] %vm19_vm0, %v986_v42 }
   0xa   :  { %v968_v27 = vld [vmem:[%s1274_s0 + $0x8] ss:$12 sps:$4 sm:$0xff]   ;;  %v969_v28 = vld [vmem:[%s1274_s0 + $0x30] ss:$12 sps:$4 sm:$0xff]   ;;  %v970_v29 = vld [vmem:[%s1274_s0 + $0x20] ss:$12 sps:$4 sm:$0xff]  }
   0xb   :  { %830 = vmatpush3.bf16.msra.mxu0 %v941_v5  ;;  %929 = vmatpush3.bf16.msra.mxu1 %v941_v5  ;;  %v971_v30 = vld [vmem:[%s1274_s0 + $0x4c] ss:$12 sps:$4 sm:$0xff]   ;;  %v974_v32 = vld [vmem:[%s1274_s0 + $0x48] ss:$12 sps:$4 sm:$0xff]   ;;  %v975_v33 = vld [vmem:[%s1274_s0 + $0x50] ss:$12 sps:$4 sm:$0xff]  }
   0xc   :  { %831 = vmatprep.subr.bf16.mxu0 %v942_v6  ;;  %922 = vmatprep.subr.bf16.mxu1 %v942_v6  ;;  %v973_v31 = vld [vmem:[%s1274_s0 + $0x38] ss:$12 sps:$4 sm:$0xff]   ;;  %v978_v35 = vld [vmem:[%s1274_s0 + $0x68] ss:$12 sps:$4 sm:$0xff]   ;;  %v979_v36 = vld [vmem:[%s1274_s0 + $0x60] ss:$12 sps:$4 sm:$0xff]  }
   0xd   :  { %v976_v34 = vld [vmem:[%s1274_s0 + $0x64] ss:$12 sps:$4 sm:$0xff]   ;;  %v980_v37 = vld [vmem:[%s1274_s0 + $0x80] ss:$12 sps:$4 sm:$0xff]   ;;  %v981_v38 = vld [vmem:[%s1274_s0 + $0x7c] ss:$12 sps:$4 sm:$0xff]  }
   0xe   :  { %v983_v39 = vld [vmem:[%s1274_s0 + $0x98] ss:$12 sps:$4 sm:$0xff]   ;;  %v985_v41 = vld [vmem:[%s1274_s0 + $0xb0] ss:$12 sps:$4 sm:$0xff]   ;;  %28 = vst.msk [vmem:[#allocation2 + $0x40] sm:$0xff] %vm19_vm0, %v986_v42  ;;  %29 = vst.msk [vmem:[#allocation2 + $0x48] sm:$0xff] %vm19_vm0, %v986_v42 }
   0xf   :  { %832 = vmatpush3.bf16.msra.mxu0 %v943_v7  ;;  %930 = vmatpush3.bf16.msra.mxu1 %v943_v7  ;;  %v984_v40 = vld [vmem:[%s1274_s0 + $0x78] ss:$12 sps:$4 sm:$0xff]   ;;  %30 = vst.msk [vmem:[#allocation2 + $0x50] sm:$0xff] %vm19_vm0, %v986_v42  ;;  %31 = vst.msk [vmem:[#allocation2 + $0x58] sm:$0xff] %vm19_vm0, %v986_v42  ;;  %v38_v4 = vld [vmem:[#allocation2 + $0x10] sm:$0xff] }
  0x10   :  { %833 = vmatprep.subr.bf16.mxu0 %v944_v8  ;;  %923 = vmatprep.subr.bf16.mxu1 %v944_v8  ;;  %32 = vst.msk [vmem:[#allocation2 + $0x60] sm:$0xff] %vm19_vm0, %v986_v42  ;;  %33 = vst.msk [vmem:[#allocation2 + $0x68] sm:$0xff] %vm19_vm0, %v986_v42  ;;  %v36_v8 = vld [vmem:[#allocation2] sm:$0xff] }
  0x11   :  { %34 = vst.msk [vmem:[#allocation2 + $0x70] sm:$0xff] %vm19_vm0, %v986_v42  ;;  %35 = vst.msk [vmem:[#allocation2 + $0x78] sm:$0xff] %vm19_vm0, %v986_v42 }
  0x13   :  { %834 = vmatpush3.bf16.msra.mxu0 %v945_v9  ;;  %931 = vmatpush3.bf16.msra.mxu1 %v945_v9 }
  0x14   :  { %835 = vmatprep.subr.bf16.mxu0 %v946_v10  ;;  %924 = vmatprep.subr.bf16.mxu1 %v946_v10 }
  0x17   :  { %836 = vmatpush3.bf16.msra.mxu0 %v947_v13  ;;  %932 = vmatpush3.bf16.msra.mxu1 %v947_v13  ;;  %v39_v13 = vld [vmem:[#allocation2 + $0x18] sm:$0xff] }
  0x18   :  { %837 = vmatprep.subr.bf16.mxu0 %v948_v14  ;;  %925 = vmatprep.subr.bf16.mxu1 %v948_v14 }
  0x1b   :  { %838 = vmatpush3.bf16.msra.mxu0 %v949_v15  ;;  %933 = vmatpush3.bf16.msra.mxu1 %v949_v15 }
  0x1c   :  { %839 = vmatprep.subr.bf16.mxu0 %v950_v16  ;;  %926 = vmatprep.subr.bf16.mxu1 %v950_v16 }
  0x1f   :  { %840 = vmatpush3.bf16.msra.mxu0 %v951_v17  ;;  %934 = vmatpush3.bf16.msra.mxu1 %v951_v17 }
  0x20   :  { %899 = vmatprep.subr.bf16.mxu1 %v958_v19 }
  0x22   :  { %406 = vmatmul.mubr.bf16.vlgmr.msra.gmra.mrb[0].mxu0 %v952_v18  ;;  %454 = vmatmul.mubr.bf16.vlgmr.msra.gmra.mrb[0].mxu1 %v955_v20  ;;  %v37_v18 = vld [vmem:[#allocation2 + $0x8] sm:$0xff] }
  0x23   :  { %900 = vmatpush3.bf16.msra.mxu1 %v958_v19  ;;  %413 = vmatprep.mubr.bf16.mxu0 %v959_v21 }
  0x24   :  { %461 = vmatprep.mubr.bf16.mxu1 %v961_v22  ;;  %901 = vmatprep.subr.bf16.mxu1 %v965_v23 }
  0x27   :  { %902 = vmatpush3.bf16.msra.mxu1 %v965_v23 }
  0x2a   :  { %414 = vmatmul.mubr.bf16.gmra.mrb[4].mxu0 %v963_v24  ;;  %462 = vmatmul.mubr.bf16.gmra.mrb[4].mxu1 %v964_v25 }
  0x2b   :  { %421 = vmatprep.mubr.bf16.mxu0 %v966_v26  ;;  %903 = vmatprep.mubr.msk.bf16.mxu1 %vm19_vm0, %v968_v27 }
  0x32   :  { %422 = vmatmul.mubr.bf16.gmra.mrb[8].mxu0 %v969_v28  ;;  %904 = vmatmul.mubr.msk.bf16.vlgmr.msra.gmra.mrb[8].mxu1 %vm19_vm0, %v970_v29  ;;  %v40_v28 = vld [vmem:[#allocation2 + $0x20] sm:$0xff] }
  0x33   :  { %429 = vmatprep.mubr.bf16.mxu0 %v971_v30  ;;  %907 = vmatprep.mubr.msk.bf16.mxu1 %vm19_vm0, %v973_v31  ;;  %v1172_v30 = vld [vmem:[%s1275_s2] ss:$0 sm:$0xff] }
  0x3a   :  { %430 = vmatmul.mubr.bf16.gmra.mrb[12].mxu0 %v974_v32  ;;  %908 = vmatmul.mubr.msk.bf16.gmra.mrb[12].mxu1 %vm19_vm0, %v975_v33 }
  0x3b   :  { %437 = vmatprep.mubr.bf16.mxu0 %v976_v34  ;;  %911 = vmatprep.mubr.msk.bf16.mxu1 %vm19_vm0, %v978_v35  ;;  %v42_v35 = vld [vmem:[#allocation2 + $0x30] sm:$0xff] }
  0x42   :  { %438 = vmatmul.mubr.bf16.gmra.mrb[16].mxu0 %v979_v36  ;;  %912 = vmatmul.mubr.msk.bf16.gmra.mrb[16].mxu1 %vm19_vm0, %v980_v37  ;;  %v41_v37 = vld [vmem:[#allocation2 + $0x28] sm:$0xff] }
  0x43   :  { %445 = vmatprep.mubr.bf16.mxu0 %v981_v38  ;;  %915 = vmatprep.mubr.msk.bf16.mxu1 %vm19_vm0, %v983_v39 }
  0x4a   :  { %446 = vmatmul.mubr.bf16.gmra.mrb[20].mxu0 %v984_v40  ;;  %916 = vmatmul.mubr.msk.bf16.gmra.mrb[20].mxu1 %vm19_vm0, %v985_v41 }
  0xf5   :  { %v841_v43 = vpop.f32.mrb[0].mxu0  ;;  %v877_v44 = vpop.f32.mrb[0].mxu1 }
  0xf6   :  { %v842_v45 = vpop.f32.mrb[1].mxu0  ;;  %v878_v46 = vpop.f32.mrb[1].mxu1 }
  0xf7   :  { %v843_v47 = vadd.f32 %v842_v45, %v841_v43  ;;  %v1157_v48 = vadd.f32 %v878_v46, %v877_v44  ;;  %v844_v49 = vpop.f32.mrb[2].mxu0  ;;  %v880_v50 = vpop.f32.mrb[2].mxu1  ;;  %v43_v46 = vld [vmem:[#allocation2 + $0x38] sm:$0xff] }
  0xf8   :  { %v845_v51 = vpop.f32.mrb[3].mxu0  ;;  %v881_v52 = vpop.f32.mrb[3].mxu1 }
  0xf9   :  { %v846_v53 = vadd.f32 %v845_v51, %v844_v49  ;;  %v1159_v54 = vadd.f32 %v881_v52, %v880_v50 }
  0xfd   :  { %v847_v55 = vpop.f32.mrb[4].mxu0  ;;  %v883_v56 = vpop.f32.mrb[4].mxu1 }
  0xfe   :  { %v848_v57 = vpop.f32.mrb[5].mxu0  ;;  %v884_v58 = vpop.f32.mrb[5].mxu1 }
  0xff   :  { %v849_v59 = vadd.f32 %v848_v57, %v847_v55  ;;  %v1161_v60 = vadd.f32 %v884_v58, %v883_v56  ;;  %v850_v61 = vpop.f32.mrb[6].mxu0  ;;  %v886_v62 = vpop.f32.mrb[6].mxu1 }
 0x100   :  { %v851_v63 = vpop.f32.mrb[7].mxu0  ;;  %v887_v0 = vpop.f32.mrb[7].mxu1 }
 0x101   :  { %v852_v1 = vadd.f32 %v851_v63, %v850_v61  ;;  %v1163_v2 = vadd.f32 %v887_v0, %v886_v62 }
 0x105   :  { %v853_v3 = vpop.f32.mrb[8].mxu0  ;;  %v905_v5 = vpop.f32.mrb[8].mxu1 }
 0x106   :  { %v513_v6 = vadd.f32 %v905_v5, %v849_v59  ;;  %v854_v7 = vpop.f32.mrb[9].mxu0  ;;  %v504_v9 = vpop.f32.mrb[9].mxu1 }
 0x107   :  { %v855_v10 = vadd.f32 %v854_v7, %v853_v3  ;;  %v505_v11 = vadd.f32 %v843_v47, %v504_v9  ;;  %v856_v12 = vpop.f32.mrb[10].mxu0  ;;  %v906_v14 = vpop.f32.mrb[10].mxu1 }
 0x108   :  { %v569_v15 = vadd.f32 %v513_v6, %v38_v4  ;;  %v516_v16 = vadd.f32 %v906_v14, %v852_v1  ;;  %v857_v17 = vpop.f32.mrb[11].mxu0  ;;  %v507_v19 = vpop.f32.mrb[11].mxu1 }
 0x109   :  { %v567_v20 = vadd.f32 %v505_v11, %v36_v8  ;;  %v858_v21 = vadd.f32 %v857_v17, %v856_v12  ;;  %v508_v22 = vadd.f32 %v846_v53, %v507_v19  ;;  %v45_v17 = vld [vmem:[#allocation2 + $0x48] sm:$0xff] }
 0x10a   :  { %585 = vst.msk [vmem:[#allocation2 + $0x10] sm:$0xff] %vm19_vm0, %v569_v15  ;;  %v570_v23 = vadd.f32 %v516_v16, %v39_v13 }
 0x10b   :  { %583 = vst.msk [vmem:[#allocation2] sm:$0xff] %vm19_vm0, %v567_v20  ;;  %v568_v24 = vadd.f32 %v508_v22, %v37_v18 }
 0x10c   :  { %586 = vst.msk [vmem:[#allocation2 + $0x18] sm:$0xff] %vm19_vm0, %v570_v23 }
 0x10d   :  { %584 = vst.msk [vmem:[#allocation2 + $0x8] sm:$0xff] %vm19_vm0, %v568_v24  ;;  %v859_v25 = vpop.f32.mrb[12].mxu0  ;;  %v909_v26 = vpop.f32.mrb[12].mxu1 }
 0x10e   :  { %v860_v27 = vpop.f32.mrb[13].mxu0  ;;  %v520_v29 = vpop.f32.mrb[13].mxu1 }
 0x10f   :  { %v861_v31 = vadd.f32 %v860_v27, %v859_v25  ;;  %v521_v32 = vadd.f32 %v855_v10, %v520_v29  ;;  %v862_v33 = vpop.f32.mrb[14].mxu0  ;;  %v910_v34 = vpop.f32.mrb[14].mxu1  ;;  %v44_v10 = vld [vmem:[#allocation2 + $0x40] sm:$0xff] }
 0x110   :  { %v863_v36 = vpop.f32.mrb[15].mxu0  ;;  %v523_v38 = vpop.f32.mrb[15].mxu1 }
 0x111   :  { %v604_v39 = vld [vmem:[#allocation2 + $0x10] sm:$0xff]  ;;  %v529_v40 = vadd.f32 %v909_v26, %v861_v31  ;;  %v571_v41 = vadd.f32 %v521_v32, %v40_v28  ;;  %v864_v42 = vadd.f32 %v863_v36, %v862_v33  ;;  %v524_v43 = vadd.f32 %v858_v21, %v523_v38 }
 0x112   :  { %v627_v44 = vadd.f32 %v1172_v30, %v604_v39  ;;  %v602_v45 = vld [vmem:[#allocation2] sm:$0xff]  ;;  %v50_v28 = vld [vmem:[#allocation2 + $0x70] sm:$0xff] }
 0x113   :  { %v625_v47 = vadd.f32 %v1172_v30, %v602_v45  ;;  %v605_v49 = vld [vmem:[#allocation2 + $0x18] sm:$0xff]  ;;  %v573_v50 = vadd.f32 %v529_v40, %v42_v35  ;;  %587 = vst.msk [vmem:[#allocation2 + $0x20] sm:$0xff] %vm19_vm0, %v571_v41  ;;  %v532_v51 = vadd.f32 %v910_v34, %v864_v42  ;;  %v572_v52 = vadd.f32 %v524_v43, %v41_v37  ;;  %v48_v39 = vld [vmem:[#allocation2 + $0x60] sm:$0xff] }
 0x114   :  { %v643_v53 = vmax.f32 %v627_v44, 0.0  ;;  %v628_v55 = vadd.f32 %v1172_v30, %v605_v49  ;;  %v603_v56 = vld [vmem:[#allocation2 + $0x8] sm:$0xff]  ;;  %v51_v41 = vld [vmem:[#allocation2 + $0x78] sm:$0xff] }
 0x115   :  { %v641_v57 = vmax.f32 %v625_v47, 0.0  ;;  %v626_v58 = vadd.f32 %v1172_v30, %v603_v56  ;;  %589 = vst.msk [vmem:[#allocation2 + $0x30] sm:$0xff] %vm19_vm0, %v573_v50  ;;  %v574_v59 = vadd.f32 %v532_v51, %v43_v46  ;;  %588 = vst.msk [vmem:[#allocation2 + $0x28] sm:$0xff] %vm19_vm0, %v572_v52  ;;  %v865_v61 = vpop.f32.mrb[16].mxu0  ;;  %v1181_v62 = vpop.f32.mrb[16].mxu1  ;;  %v46_v52 = vld [vmem:[#allocation2 + $0x50] sm:$0xff] }
 0x116   :  { %v811_v63 = vpack.c.bf16 %v643_v53, %v643_v53  ;;  %v644_v0 = vmax.f32 %v628_v55, 0.0  ;;  %v866_v1 = vpop.f32.mrb[17].mxu0  ;;  %v536_v3 = vpop.f32.mrb[17].mxu1  ;;  %v49_v55 = vld [vmem:[#allocation2 + $0x68] sm:$0xff] }
 0x117   :  { %v809_v4 = vpack.c.bf16 %v641_v57, %v641_v57  ;;  %v642_v5 = vmax.f32 %v626_v58, 0.0  ;;  %590 = vst.msk [vmem:[#allocation2 + $0x38] sm:$0xff] %vm19_vm0, %v574_v59  ;;  %v867_v6 = vadd.f32 %v866_v1, %v865_v61  ;;  %v868_v7 = vpop.f32.mrb[18].mxu0  ;;  %v914_v8 = vpop.f32.mrb[18].mxu1 }
 0x118   :  { %724 = vst.msk [vmem:[%s1276_s3 + $0x8] sm:$0xf] %vm721_vm1, %v811_v63  ;;  %v812_v9 = vpack.c.bf16 %v644_v0, %v644_v0  ;;  %v869_v11 = vpop.f32.mrb[19].mxu0  ;;  %v539_v12 = vpop.f32.mrb[19].mxu1 }
 0x119   :  { %722 = vst.msk [vmem:[%s1276_s3] sm:$0xf] %vm721_vm1, %v809_v4  ;;  %v810_v13 = vpack.c.bf16 %v642_v5, %v642_v5  ;;  %v537_v14 = vadd.f32 %v867_v6, %v536_v3  ;;  %v870_v15 = vadd.f32 %v869_v11, %v868_v7 }
 0x11a   :  { %725 = vst.msk [vmem:[%s1276_s3 + $0xc] sm:$0xf] %vm721_vm1, %v812_v9  ;;  %v606_v16 = vld [vmem:[#allocation2 + $0x20] sm:$0xff] }
 0x11b   :  { %723 = vst.msk [vmem:[%s1276_s3 + $0x4] sm:$0xf] %vm721_vm1, %v810_v13  ;;  %v629_v18 = vadd.f32 %v1172_v30, %v606_v16  ;;  %v575_v19 = vadd.f32 %v537_v14, %v44_v10  ;;  %v540_v20 = vadd.f32 %v870_v15, %v539_v12 }
 0x11c   :  { %v608_v21 = vld [vmem:[#allocation2 + $0x30] sm:$0xff]  ;;  %v607_v22 = vld [vmem:[#allocation2 + $0x28] sm:$0xff] }
 0x11d   :  { %v631_v23 = vadd.f32 %v1172_v30, %v608_v21  ;;  %v645_v24 = vmax.f32 %v629_v18, 0.0  ;;  %v630_v25 = vadd.f32 %v1172_v30, %v607_v22  ;;  %591 = vst.msk [vmem:[#allocation2 + $0x40] sm:$0xff] %vm19_vm0, %v575_v19  ;;  %v576_v26 = vadd.f32 %v540_v20, %v45_v17  ;;  %v871_v27 = vpop.f32.mrb[20].mxu0  ;;  %v917_v29 = vpop.f32.mrb[20].mxu1 }
 0x11e   :  { %v609_v31 = vld [vmem:[#allocation2 + $0x38] sm:$0xff]  ;;  %v561_v32 = vadd.f32 %v917_v29, %v1161_v60  ;;  %v872_v33 = vpop.f32.mrb[21].mxu0  ;;  %v552_v34 = vpop.f32.mrb[21].mxu1 }
 0x11f   :  { %v647_v35 = vmax.f32 %v631_v23, 0.0  ;;  %v813_v36 = vpack.c.bf16 %v645_v24, %v645_v24  ;;  %v632_v37 = vadd.f32 %v1172_v30, %v609_v31  ;;  %v646_v38 = vmax.f32 %v630_v25, 0.0  ;;  %592 = vst.msk [vmem:[#allocation2 + $0x48] sm:$0xff] %vm19_vm0, %v576_v26  ;;  %v874_v40 = vpop.f32.mrb[22].mxu0  ;;  %v918_v42 = vpop.f32.mrb[22].mxu1 }
 0x120   :  { %v581_v43 = vadd.f32 %v561_v32, %v50_v28  ;;  %v873_v44 = vadd.f32 %v872_v33, %v871_v27  ;;  %v553_v45 = vadd.f32 %v1157_v48, %v552_v34  ;;  %v564_v46 = vadd.f32 %v918_v42, %v1163_v2  ;;  %v875_v60 = vpop.f32.mrb[23].mxu0  ;;  %v555_v47 = vpop.f32.mrb[23].mxu1  ;;  %v47_v2 = vld [vmem:[#allocation2 + $0x58] sm:$0xff] }
 0x121   :  { %v815_v49 = vpack.c.bf16 %v647_v35, %v647_v35  ;;  %726 = vst.msk [vmem:[%s1276_s3 + $0x10] sm:$0xf] %vm721_vm1, %v813_v36  ;;  %v648_v50 = vmax.f32 %v632_v37, 0.0  ;;  %v814_v51 = vpack.c.bf16 %v646_v38, %v646_v38  ;;  %v876_v53 = vadd.f32 %v875_v60, %v874_v40 }
 0x122   :  { %597 = vst.msk [vmem:[#allocation2 + $0x70] sm:$0xff] %vm19_vm0, %v581_v43  ;;  %v545_v56 = vadd.f32 %v1181_v62, %v873_v44  ;;  %v579_v48 = vadd.f32 %v553_v45, %v48_v39  ;;  %v582_v57 = vadd.f32 %v564_v46, %v51_v41  ;;  %v556_v58 = vadd.f32 %v1159_v54, %v555_v47 }
 0x123   :  { %728 = vst.msk [vmem:[%s1276_s3 + $0x18] sm:$0xf] %vm721_vm1, %v815_v49  ;;  %v816_v59 = vpack.c.bf16 %v648_v50, %v648_v50  ;;  %727 = vst.msk [vmem:[%s1276_s3 + $0x14] sm:$0xf] %vm721_vm1, %v814_v51  ;;  %v548_v61 = vadd.f32 %v914_v8, %v876_v53 }
 0x124   :  { %v610_v63 = vld [vmem:[#allocation2 + $0x40] sm:$0xff]  ;;  %v577_v0 = vadd.f32 %v545_v56, %v46_v52  ;;  %595 = vst.msk [vmem:[#allocation2 + $0x60] sm:$0xff] %vm19_vm0, %v579_v48  ;;  %598 = vst.msk [vmem:[#allocation2 + $0x78] sm:$0xff] %vm19_vm0, %v582_v57  ;;  %v580_v62 = vadd.f32 %v556_v58, %v49_v55 }
 0x125   :  { %729 = vst.msk [vmem:[%s1276_s3 + $0x1c] sm:$0xf] %vm721_vm1, %v816_v59  ;;  %v633_v54 = vadd.f32 %v1172_v30, %v610_v63  ;;  %v578_v1 = vadd.f32 %v548_v61, %v47_v2 }
 0x126   :  { %v611_v3 = vld [vmem:[#allocation2 + $0x48] sm:$0xff]  ;;  %593 = vst.msk [vmem:[#allocation2 + $0x50] sm:$0xff] %vm19_vm0, %v577_v0  ;;  %596 = vst.msk [vmem:[#allocation2 + $0x68] sm:$0xff] %vm19_vm0, %v580_v62 }
 0x127   :  { %v649_v4 = vmax.f32 %v633_v54, 0.0  ;;  %v634_v5 = vadd.f32 %v1172_v30, %v611_v3  ;;  %594 = vst.msk [vmem:[#allocation2 + $0x58] sm:$0xff] %vm19_vm0, %v578_v1 }
 0x129   :  { %v817_v6 = vpack.c.bf16 %v649_v4, %v649_v4  ;;  %v650_v7 = vmax.f32 %v634_v5, 0.0  ;;  %v616_v8 = vld [vmem:[#allocation2 + $0x70] sm:$0xff] }
 0x12a   :  { %v639_v9 = vadd.f32 %v1172_v30, %v616_v8 }
 0x12b   :  { %730 = vst.msk [vmem:[%s1276_s3 + $0x20] sm:$0xf] %vm721_vm1, %v817_v6  ;;  %v818_v10 = vpack.c.bf16 %v650_v7, %v650_v7  ;;  %v614_v11 = vld [vmem:[#allocation2 + $0x60] sm:$0xff]  ;;  %v617_v12 = vld [vmem:[#allocation2 + $0x78] sm:$0xff] }
 0x12c   :  { %v655_v13 = vmax.f32 %v639_v9, 0.0  ;;  %v637_v14 = vadd.f32 %v1172_v30, %v614_v11  ;;  %v640_v15 = vadd.f32 %v1172_v30, %v617_v12 }
 0x12d   :  { %731 = vst.msk [vmem:[%s1276_s3 + $0x24] sm:$0xf] %vm721_vm1, %v818_v10  ;;  %v612_v16 = vld [vmem:[#allocation2 + $0x50] sm:$0xff]  ;;  %v615_v17 = vld [vmem:[#allocation2 + $0x68] sm:$0xff] }
 0x12e   :  { %v823_v18 = vpack.c.bf16 %v655_v13, %v655_v13  ;;  %v635_v19 = vadd.f32 %v1172_v30, %v612_v16  ;;  %v653_v20 = vmax.f32 %v637_v14, 0.0  ;;  %v656_v21 = vmax.f32 %v640_v15, 0.0  ;;  %v613_v22 = vld [vmem:[#allocation2 + $0x58] sm:$0xff] }
 0x12f   :  { %v636_v23 = vadd.f32 %v1172_v30, %v613_v22  ;;  %v638_v24 = vadd.f32 %v1172_v30, %v615_v17 }
 0x130   :  { %736 = vst.msk [vmem:[%s1276_s3 + $0x38] sm:$0xf] %vm721_vm1, %v823_v18  ;;  %v651_v25 = vmax.f32 %v635_v19, 0.0  ;;  %v821_v26 = vpack.c.bf16 %v653_v20, %v653_v20  ;;  %v824_v27 = vpack.c.bf16 %v656_v21, %v656_v21 }
 0x131   :  { %v652_v28 = vmax.f32 %v636_v23, 0.0  ;;  %v654_v29 = vmax.f32 %v638_v24, 0.0 }
 0x132   :  { %v819_v31 = vpack.c.bf16 %v651_v25, %v651_v25  ;;  %734 = vst.msk [vmem:[%s1276_s3 + $0x30] sm:$0xf] %vm721_vm1, %v821_v26  ;;  %737 = vst.msk [vmem:[%s1276_s3 + $0x3c] sm:$0xf] %vm721_vm1, %v824_v27 }
 0x133   :  { %v820_v30 = vpack.c.bf16 %v652_v28, %v652_v28  ;;  %v822_v32 = vpack.c.bf16 %v654_v29, %v654_v29 }
 0x134   :  { %732 = vst.msk [vmem:[%s1276_s3 + $0x28] sm:$0xf] %vm721_vm1, %v819_v31 }
 0x135   :  { %733 = vst.msk [vmem:[%s1276_s3 + $0x2c] sm:$0xf] %vm721_vm1, %v820_v30  ;;  %735 = vst.msk [vmem:[%s1276_s3 + $0x34] sm:$0xf] %vm721_vm1, %v822_v32 }

// kernel: sam_adaptor_forward.32
= control target key start
LH: loop header
LB: loop body
LE: loop exit
PB: predicated region body
PF: predicated region fallthrough
CT: control target
= control target key end

     0   :  { %vm19_vm0 = vcmask 261120   ;;  %v472_v24 = vmov 0.0   ;;  %vm361_vm1 = vcmask 257024   ;;  %s590_s1 = inlined_call_operand.vmem [shape: bf16[288,32], index: 1, kind: input, shape index: {}]   ;;  %s591_s0 = inlined_call_operand.vmem [shape: bf16[32,288], index: 0, kind: input, shape index: {}]   ;;  %s592_s2 = inlined_call_operand.vmem [shape: f32[1,32], index: 2, kind: input, shape index: {}]   ;;  %s593_s3 = inlined_call_operand.vmem [shape: bf16[32,32], index: 3, kind: output, shape index: {}]  }
   0x1   :  { %v446_v0 = vld [vmem:[%s590_s1 + $0x40] sm:$0xff]   ;;  %v448_v2 = vld [vmem:[%s590_s1 + $0x48] sm:$0xff]   ;;  %v450_v4 = vld [vmem:[%s590_s1 + $0x50] sm:$0xff]   ;;  %20 = vst.msk [vmem:[#allocation2] sm:$0xff] %vm19_vm0, %v472_v24 }
   0x2   :  { %v447_v1 = vld [vmem:[%s590_s1] sm:$0xff]   ;;  %405 = vmatprep.subr.bf16.mxu0 %v446_v0  ;;  %v449_v3 = vld [vmem:[%s590_s1 + $0x8] sm:$0xff]   ;;  %v451_v5 = vld [vmem:[%s590_s1 + $0x10] sm:$0xff]   ;;  %21 = vst.msk [vmem:[#allocation2 + $0x8] sm:$0xff] %vm19_vm0, %v472_v24 }
   0x3   :  { %406 = vmatpush3.bf16.msra.mxu0 %v447_v1  ;;  %v452_v6 = vld [vmem:[%s590_s1 + $0x58] sm:$0xff]   ;;  %v454_v8 = vld [vmem:[%s590_s1 + $0x60] sm:$0xff]   ;;  %v456_v11 = vld [vmem:[%s590_s1 + $0x68] sm:$0xff]   ;;  %22 = vst.msk [vmem:[#allocation2 + $0x10] sm:$0xff] %vm19_vm0, %v472_v24 }
   0x4   :  { %407 = vmatprep.subr.bf16.mxu0 %v448_v2  ;;  %v453_v7 = vld [vmem:[%s590_s1 + $0x18] sm:$0xff]   ;;  %v460_v9 = vld [vmem:[%s590_s1 + $0x80] sm:$0xff]   ;;  %v457_v12 = vld [vmem:[%s590_s1 + $0x28] sm:$0xff]   ;;  %23 = vst.msk [vmem:[#allocation2 + $0x18] sm:$0xff] %vm19_vm0, %v472_v24 }
   0x5   :  { %v455_v10 = vld [vmem:[%s590_s1 + $0x20] sm:$0xff]   ;;  %437 = vmatprep.subr.bf16.mxu1 %v460_v9  ;;  %v463_v13 = vld [vmem:[%s590_s1 + $0x88] sm:$0xff]   ;;  %v458_v14 = vld [vmem:[%s590_s1 + $0x70] sm:$0xff]  }
   0x6   :  { %438 = vmatpush3.bf16.msra.mxu1 %v460_v9  ;;  %v466_v15 = vld [vmem:[%s591_s0 + $0x4] ss:$12 sps:$4 sm:$0xff]   ;;  %v467_v16 = vld [vmem:[%s591_s0 + $0x8] ss:$12 sps:$4 sm:$0xff]   ;;  %v468_v17 = vld [vmem:[%s591_s0 + $0x20] ss:$12 sps:$4 sm:$0xff]  }
   0x7   :  { %408 = vmatpush3.bf16.msra.mxu0 %v449_v3  ;;  %439 = vmatprep.subr.bf16.mxu1 %v463_v13  ;;  %v459_v18 = vld [vmem:[%s590_s1 + $0x30] sm:$0xff]   ;;  %v461_v19 = vld [vmem:[%s590_s1 + $0x78] sm:$0xff]   ;;  %v464_v21 = vld [vmem:[%s591_s0] ss:$12 sps:$4 sm:$0xff]  }
   0x8   :  { %409 = vmatprep.subr.bf16.mxu0 %v450_v4  ;;  %249 = vmatprep.mubr.bf16.mxu0 %v466_v15  ;;  %v462_v20 = vld [vmem:[%s590_s1 + $0x38] sm:$0xff]   ;;  %v24_v34 = vld [vmem:[#allocation2] sm:$0xff] }
   0x9   :  { %441 = vmatprep.mubr.msk.bf16.mxu1 %vm19_vm0, %v467_v16  ;;  %v469_v22 = vld [vmem:[%s591_s0 + $0x1c] ss:$12 sps:$4 sm:$0xff]   ;;  %v471_v23 = vld [vmem:[%s591_s0 + $0x18] ss:$12 sps:$4 sm:$0xff]   ;;  %v396_v49 = vld [vmem:[%s592_s2] ss:$0 sm:$0xff] }
   0xa   :  { %440 = vmatpush3.bf16.msra.mxu1 %v463_v13  ;;  %v25_v37 = vld [vmem:[#allocation2 + $0x8] sm:$0xff]  ;;  %v26_v45 = vld [vmem:[#allocation2 + $0x10] sm:$0xff] }
   0xb   :  { %410 = vmatpush3.bf16.msra.mxu0 %v451_v5  ;;  %v27_v50 = vld [vmem:[#allocation2 + $0x18] sm:$0xff] }
   0xc   :  { %411 = vmatprep.subr.bf16.mxu0 %v452_v6 }
   0xd   :  { %442 = vmatmul.mubr.msk.bf16.vlgmr.msra.gmra.mrb[0].mxu1 %vm19_vm0, %v468_v17 }
   0xf   :  { %412 = vmatpush3.bf16.msra.mxu0 %v453_v7 }
  0x10   :  { %413 = vmatprep.subr.bf16.mxu0 %v454_v8 }
  0x13   :  { %414 = vmatpush3.bf16.msra.mxu0 %v455_v10 }
  0x14   :  { %415 = vmatprep.subr.bf16.mxu0 %v456_v11 }
  0x17   :  { %416 = vmatpush3.bf16.msra.mxu0 %v457_v12 }
  0x18   :  { %417 = vmatprep.subr.bf16.mxu0 %v458_v14 }
  0x1b   :  { %418 = vmatpush3.bf16.msra.mxu0 %v459_v18 }
  0x1c   :  { %419 = vmatprep.subr.bf16.mxu0 %v461_v19 }
  0x1f   :  { %420 = vmatpush3.bf16.msra.mxu0 %v462_v20 }
  0x22   :  { %250 = vmatmul.mubr.bf16.vlgmr.msra.gmra.mrb[0].mxu0 %v464_v21 }
  0x23   :  { %257 = vmatprep.mubr.bf16.mxu0 %v469_v22 }
  0x2a   :  { %258 = vmatmul.mubr.bf16.gmra.mrb[4].mxu0 %v471_v23 }
  0xe0   :  { %v443_v25 = vpop.f32.mrb[0].mxu1 }
  0xe1   :  { %v300_v26 = vpop.f32.mrb[1].mxu1 }
  0xe2   :  { %v444_v27 = vpop.f32.mrb[2].mxu1 }
  0xe3   :  { %v303_v28 = vpop.f32.mrb[3].mxu1 }
  0xf5   :  { %v421_v29 = vpop.f32.mrb[0].mxu0 }
  0xf6   :  { %v422_v30 = vpop.f32.mrb[1].mxu0 }
  0xf7   :  { %v423_v31 = vadd.f32 %v422_v30, %v421_v29  ;;  %v424_v32 = vpop.f32.mrb[2].mxu0 }
  0xf8   :  { %v425_v33 = vpop.f32.mrb[3].mxu0 }
  0xf9   :  { %v426_v35 = vadd.f32 %v425_v33, %v424_v32  ;;  %v301_v36 = vadd.f32 %v423_v31, %v300_v26 }
  0xfb   :  { %v315_v38 = vadd.f32 %v301_v36, %v24_v34  ;;  %v304_v39 = vadd.f32 %v426_v35, %v303_v28 }
  0xfd   :  { %319 = vst.msk [vmem:[#allocation2] sm:$0xff] %vm19_vm0, %v315_v38  ;;  %v316_v40 = vadd.f32 %v304_v39, %v25_v37  ;;  %v427_v41 = vpop.f32.mrb[4].mxu0 }
  0xfe   :  { %v428_v42 = vpop.f32.mrb[5].mxu0 }
  0xff   :  { %320 = vst.msk [vmem:[#allocation2 + $0x8] sm:$0xff] %vm19_vm0, %v316_v40  ;;  %v429_v43 = vadd.f32 %v428_v42, %v427_v41  ;;  %v430_v44 = vpop.f32.mrb[6].mxu0 }
 0x100   :  { %v431_v46 = vpop.f32.mrb[7].mxu0 }
 0x101   :  { %v309_v47 = vadd.f32 %v443_v25, %v429_v43  ;;  %v432_v48 = vadd.f32 %v431_v46, %v430_v44 }
 0x103   :  { %v317_v51 = vadd.f32 %v309_v47, %v26_v45  ;;  %v312_v52 = vadd.f32 %v444_v27, %v432_v48 }
 0x104   :  { %v326_v53 = vld [vmem:[#allocation2] sm:$0xff] }
 0x105   :  { %v337_v54 = vadd.f32 %v396_v49, %v326_v53  ;;  %321 = vst.msk [vmem:[#allocation2 + $0x10] sm:$0xff] %vm19_vm0, %v317_v51  ;;  %v318_v55 = vadd.f32 %v312_v52, %v27_v50 }
 0x106   :  { %v327_v56 = vld [vmem:[#allocation2 + $0x8] sm:$0xff] }
 0x107   :  { %v341_v57 = vmax.f32 %v337_v54, 0.0  ;;  %v338_v58 = vadd.f32 %v396_v49, %v327_v56  ;;  %322 = vst.msk [vmem:[#allocation2 + $0x18] sm:$0xff] %vm19_vm0, %v318_v55 }
 0x109   :  { %v401_v59 = vpack.c.bf16 %v341_v57, %v341_v57  ;;  %v342_v60 = vmax.f32 %v338_v58, 0.0 }
 0x10b   :  { %362 = vst.msk [vmem:[%s593_s3] sm:$0xf] %vm361_vm1, %v401_v59  ;;  %v402_v61 = vpack.c.bf16 %v342_v60, %v342_v60 }
 0x10c   :  { %v328_v62 = vld [vmem:[#allocation2 + $0x10] sm:$0xff] }
 0x10d   :  { %363 = vst.msk [vmem:[%s593_s3 + $0x4] sm:$0xf] %vm361_vm1, %v402_v61  ;;  %v339_v63 = vadd.f32 %v396_v49, %v328_v62 }
 0x10e   :  { %v329_v0 = vld [vmem:[#allocation2 + $0x18] sm:$0xff] }
 0x10f   :  { %v343_v1 = vmax.f32 %v339_v63, 0.0  ;;  %v340_v2 = vadd.f32 %v396_v49, %v329_v0 }
 0x111   :  { %v403_v3 = vpack.c.bf16 %v343_v1, %v343_v1  ;;  %v344_v4 = vmax.f32 %v340_v2, 0.0 }
 0x113   :  { %364 = vst.msk [vmem:[%s593_s3 + $0x8] sm:$0xf] %vm361_vm1, %v403_v3  ;;  %v404_v5 = vpack.c.bf16 %v344_v4, %v344_v4 }
 0x115   :  { %365 = vst.msk [vmem:[%s593_s3 + $0xc] sm:$0xf] %vm361_vm1, %v404_v5 }

// kernel: sam_adaptor_forward.33
= control target key start
LH: loop header
LB: loop body
LE: loop exit
PB: predicated region body
PF: predicated region fallthrough
CT: control target
= control target key end

     0   :  { %vm57_vm0 = vcmask 261120   ;;  %s250_s1 = inlined_call_operand.vmem [shape: bf16[32,128], index: 1, kind: input, shape index: {}]   ;;  %s251_s0 = inlined_call_operand.vmem [shape: bf16[32,32], index: 0, kind: input, shape index: {}]   ;;  %s252_s2 = inlined_call_operand.vmem [shape: f32[1,128], index: 2, kind: input, shape index: {}]   ;;  %s253_s3 = inlined_call_operand.vmem [shape: bf16[32,128], index: 3, kind: output, shape index: {}]  }
   0x1   :  { %v205_v0 = vld [vmem:[%s250_s1] sm:$0xff]   ;;  %v206_v1 = vld [vmem:[%s250_s1 + $0x8] sm:$0xff]  }
   0x2   :  { %197 = vmatprep.subr.bf16.mxu0 %v205_v0  ;;  %v207_v2 = vld [vmem:[%s251_s0] sm:$0xff]   ;;  %v208_v3 = vld [vmem:[%s251_s0 + $0x8] sm:$0xff]  }
   0x3   :  { %198 = vmatpush3.bf16.msra.mxu0 %v205_v0  ;;  %201 = vmatprep.mubr.msk.bf16.mxu0 %vm57_vm0, %v207_v2  ;;  %v173_v4 = vld [vmem:[%s252_s2] ss:$0 sm:$0xff] }
   0x4   :  { %199 = vmatprep.subr.bf16.mxu0 %v206_v1 }
   0x7   :  { %200 = vmatpush3.bf16.msra.mxu0 %v206_v1 }
   0xa   :  { %202 = vmatmul.mubr.msk.bf16.vlgmr.msra.gmra.mrb[0].mxu0 %vm57_vm0, %v208_v3 }
  0xdd   :  { %v203_v5 = vpop.f32.mrb[0].mxu0 }
  0xde   :  { %v137_v6 = vadd.f32 %v203_v5, %v173_v4  ;;  %v98_v7 = vpop.f32.mrb[1].mxu0 }
  0xdf   :  { %v135_v8 = vadd.f32 %v173_v4, %v98_v7  ;;  %v204_v9 = vpop.f32.mrb[2].mxu0 }
  0xe0   :  { %v138_v10 = vadd.f32 %v204_v9, %v173_v4  ;;  %v101_v11 = vpop.f32.mrb[3].mxu0  ;;  %v141_v13 = vmax.f32 %v137_v6, 0.0 }
  0xe1   :  { %v136_v12 = vadd.f32 %v173_v4, %v101_v11  ;;  %v139_v15 = vmax.f32 %v135_v8, 0.0 }
  0xe2   :  { %v142_v14 = vmax.f32 %v138_v10, 0.0 }
  0xe3   :  { %v140_v16 = vmax.f32 %v136_v12, 0.0 }
  0xe4   :  { %v190_v17 = vpack.c.bf16 %v142_v14, %v141_v13 }
  0xe5   :  { %v185_v18 = vpack.c.bf16 %v140_v16, %v139_v15 }
  0xe6   :  { %192 = vst [vmem:[%s253_s3 + $0x8] sm:$0xff] %v190_v17  }
  0xe7   :  { %186 = vst [vmem:[%s253_s3] sm:$0xff] %v185_v18  }

// kernel: sam_adaptor_forward.36
= control target key start
LH: loop header
LB: loop body
LE: loop exit
PB: predicated region body
PF: predicated region fallthrough
CT: control target
= control target key end

     0   :  { %v170_v0 = vmov 0   ;;  %s221_s0 = inlined_call_operand.vmem [shape: f32[32,1], index: 0, kind: input, shape index: {}]   ;;  %s222_s2 = inlined_call_operand.vmem [shape: bf16[32,128], index: 2, kind: input, shape index: {}]   ;;  %s223_s1 = inlined_call_operand.vmem [shape: bf16[32,128], index: 1, kind: input, shape index: {}]   ;;  %s224_s3 = inlined_call_operand.vmem [shape: bf16[32,128], index: 3, kind: output, shape index: {}]  }
   0x1   :  { %153 = vset.pattern.permute.xlu1 %v170_v0  ;;  %152 = vset.pattern.permute.xlu0 %v170_v0  ;;  %v16_v1 = vld [vmem:[%s221_s0 + $0x10] sm:$0xff]  ;;  %v17_v2 = vld [vmem:[%s221_s0 + $0x18] sm:$0xff]  ;;  %v15_v3 = vld [vmem:[%s221_s0 + $0x8] sm:$0xff] }
   0x2   :  { %v112_v4 = vmul.f32 -1.442695, %v16_v1  ;;  %v113_v5 = vmul.f32 -1.442695, %v17_v2  ;;  %v111_v6 = vmul.f32 -1.442695, %v15_v3 }
   0x3   :  { %v14_v7 = vld [vmem:[%s221_s0] sm:$0xff]  ;;  %v149_v21 = vld [vmem:[%s222_s2 + $0x8] sm:$0xff]  }
   0x4   :  { %154 = vpow2.f32 %v112_v4  ;;  %v110_v8 = vmul.f32 -1.442695, %v14_v7  ;;  %v136_v22 = vunpack.c.l.bf16 %v149_v21  ;;  %v131_v23 = vld [vmem:[%s222_s2] sm:$0xff]   ;;  %v148_v24 = vld [vmem:[%s223_s1 + $0x8] sm:$0xff]   ;;  %v137_v26 = vunpack.c.h.bf16 %v149_v21 }
   0x5   :  { %156 = vpow2.f32 %v113_v5  ;;  %v132_v27 = vunpack.c.l.bf16 %v131_v23  ;;  %v128_v28 = vunpack.c.l.bf16 %v148_v24  ;;  %v123_v30 = vld [vmem:[%s223_s1] sm:$0xff]   ;;  %v129_v32 = vunpack.c.h.bf16 %v148_v24 }
   0x6   :  { %158 = vpow2.f32 %v111_v6  ;;  %v133_v34 = vunpack.c.h.bf16 %v131_v23  ;;  %v124_v36 = vunpack.c.l.bf16 %v123_v30  ;;  %v125_v38 = vunpack.c.h.bf16 %v123_v30 }
   0x7   :  { %160 = vpow2.f32 %v110_v8 }
   0xe   :  { %v155_v9 = vpop.eup %154 }
   0xf   :  { %v157_v10 = vpop.eup %156  ;;  %v32_v11 = vadd.f32 1.0, %v155_v9 }
  0x10   :  { %v159_v12 = vpop.eup %158  ;;  %v33_v13 = vadd.f32 1.0, %v157_v10 }
  0x11   :  { %v161_v14 = vpop.eup %160  ;;  %162 = vrcp.f32 %v32_v11  ;;  %v31_v16 = vadd.f32 1.0, %v159_v12 }
  0x12   :  { %v30_v15 = vadd.f32 1.0, %v161_v14  ;;  %164 = vrcp.f32 %v33_v13 }
  0x14   :  { %166 = vrcp.f32 %v30_v15 }
  0x15   :  { %168 = vrcp.f32 %v31_v16 }
  0x1b   :  { %v163_v17 = vpop.eup %162 }
  0x1c   :  { %70 = vperm.xlu1 %153, %v163_v17   ;;  %v165_v18 = vpop.eup %164 }
  0x1e   :  { %v167_v19 = vpop.eup %166 }
  0x1f   :  { %60 = vperm.xlu0 %152, %v167_v19   ;;  %v169_v20 = vpop.eup %168 }
  0x20   :  { %75 = vperm.xlu1 %153, %v165_v18  }
  0x23   :  { %65 = vperm.xlu0 %152, %v169_v20  }
  0x9b   :  { %v71_v25 = vpop.permute.xlu1 %70 }
  0x9c   :  { %v80_v29 = vmul.f32 %v136_v22, %v71_v25 }
  0x9e   :  { %v61_v31 = vpop.permute.xlu0 %60  ;;  %v84_v39 = vadd.f32 %v128_v28, %v80_v29 }
  0x9f   :  { %v76_v33 = vpop.permute.xlu1 %75  ;;  %v78_v37 = vmul.f32 %v132_v27, %v61_v31 }
  0xa0   :  { %v81_v35 = vmul.f32 %v137_v26, %v76_v33 }
  0xa1   :  { %v82_v44 = vadd.f32 %v124_v36, %v78_v37 }
  0xa2   :  { %v85_v40 = vadd.f32 %v129_v32, %v81_v35  ;;  %v66_v41 = vpop.permute.xlu0 %65 }
  0xa3   :  { %v79_v42 = vmul.f32 %v133_v34, %v66_v41 }
  0xa4   :  { %v146_v43 = vpack.c.bf16 %v85_v40, %v84_v39 }
  0xa5   :  { %v83_v45 = vadd.f32 %v125_v38, %v79_v42 }
  0xa6   :  { %150 = vst [vmem:[%s224_s3 + $0x8] sm:$0xff] %v146_v43  }
  0xa7   :  { %v141_v46 = vpack.c.bf16 %v83_v45, %v82_v44 }
  0xa9   :  { %142 = vst [vmem:[%s224_s3] sm:$0xff] %v141_v46  }

// kernel: sam_adaptor_forward.38
= control target key start
LH: loop header
LB: loop body
LE: loop exit
PB: predicated region body
PF: predicated region fallthrough
CT: control target
= control target key end

     0   :  { %s542_s1 = inlined_call_operand.vmem [shape: bf16[128,128], index: 1, kind: input, shape index: {}]   ;;  %s543_s0 = inlined_call_operand.vmem [shape: bf16[32,128], index: 0, kind: input, shape index: {}, may-alias: {0,3}]   ;;  %s544_s2 = inlined_call_operand.vmem [shape: bf16[128,128], index: 2, kind: input, shape index: {}]   ;;  %s545_s3 = inlined_call_operand.vmem [shape: bf16[32,128], index: 3, kind: output, shape index: {}, may-alias: {0,3}]  }
   0x1   :  { %v424_v0 = vld [vmem:[%s542_s1] sm:$0xff]   ;;  %v425_v1 = vld [vmem:[%s542_s1 + $0x8] sm:$0xff]   ;;  %v426_v2 = vld [vmem:[%s542_s1 + $0x10] sm:$0xff]  }
   0x2   :  { %384 = vmatprep.subr.bf16.mxu0 %v424_v0  ;;  %v427_v3 = vld [vmem:[%s542_s1 + $0x18] sm:$0xff]   ;;  %v487_v4 = vld [vmem:[%s543_s0] sm:$0xff]   ;;  %v429_v6 = vld [vmem:[%s542_s1 + $0x28] sm:$0xff]  }
   0x3   :  { %385 = vmatpush3.bf16.msra.mxu0 %v424_v0  ;;  %400 = vmatprep.mubr.bf16.mxu0 %v487_v4  ;;  %v428_v5 = vld [vmem:[%s542_s1 + $0x20] sm:$0xff]   ;;  %v430_v7 = vld [vmem:[%s542_s1 + $0x30] sm:$0xff]   ;;  %v431_v8 = vld [vmem:[%s542_s1 + $0x38] sm:$0xff]   ;;  %v295_v63 = vunpack.c.l.bf16 %v487_v4  ;;  %v296_v0 = vunpack.c.h.bf16 %v487_v4 }
   0x4   :  { %386 = vmatprep.subr.bf16.mxu0 %v425_v1  ;;  %v505_v9 = vld [vmem:[%s543_s0 + $0x8] sm:$0xff]   ;;  %v434_v10 = vld [vmem:[%s544_s2] sm:$0xff]   ;;  %v436_v12 = vld [vmem:[%s544_s2 + $0x10] sm:$0xff]  }
   0x5   :  { %404 = vmatprep.subr.bf16.mxu1 %v434_v10  ;;  %v435_v11 = vld [vmem:[%s544_s2 + $0x8] sm:$0xff]   ;;  %v437_v13 = vld [vmem:[%s544_s2 + $0x18] sm:$0xff]   ;;  %v438_v14 = vld [vmem:[%s544_s2 + $0x20] sm:$0xff]   ;;  %v297_v60 = vunpack.c.l.bf16 %v505_v9  ;;  %v298_v61 = vunpack.c.h.bf16 %v505_v9 }
   0x6   :  { %405 = vmatpush3.bf16.msra.mxu1 %v434_v10  ;;  %v439_v15 = vld [vmem:[%s544_s2 + $0x28] sm:$0xff]   ;;  %v440_v16 = vld [vmem:[%s544_s2 + $0x30] sm:$0xff]   ;;  %v441_v17 = vld [vmem:[%s544_s2 + $0x38] sm:$0xff]  }
   0x7   :  { %387 = vmatpush3.bf16.msra.mxu0 %v425_v1  ;;  %406 = vmatprep.subr.bf16.mxu1 %v435_v11 }
   0x8   :  { %388 = vmatprep.subr.bf16.mxu0 %v426_v2 }
   0xa   :  { %407 = vmatpush3.bf16.msra.mxu1 %v435_v11 }
   0xb   :  { %389 = vmatpush3.bf16.msra.mxu0 %v426_v2  ;;  %408 = vmatprep.subr.bf16.mxu1 %v436_v12 }
   0xc   :  { %390 = vmatprep.subr.bf16.mxu0 %v427_v3 }
   0xe   :  { %409 = vmatpush3.bf16.msra.mxu1 %v436_v12 }
   0xf   :  { %391 = vmatpush3.bf16.msra.mxu0 %v427_v3  ;;  %410 = vmatprep.subr.bf16.mxu1 %v437_v13 }
  0x10   :  { %392 = vmatprep.subr.bf16.mxu0 %v428_v5 }
  0x12   :  { %411 = vmatpush3.bf16.msra.mxu1 %v437_v13 }
  0x13   :  { %393 = vmatpush3.bf16.msra.mxu0 %v428_v5  ;;  %412 = vmatprep.subr.bf16.mxu1 %v438_v14 }
  0x14   :  { %394 = vmatprep.subr.bf16.mxu0 %v429_v6 }
  0x16   :  { %413 = vmatpush3.bf16.msra.mxu1 %v438_v14 }
  0x17   :  { %395 = vmatpush3.bf16.msra.mxu0 %v429_v6  ;;  %414 = vmatprep.subr.bf16.mxu1 %v439_v15 }
  0x18   :  { %396 = vmatprep.subr.bf16.mxu0 %v430_v7 }
  0x1a   :  { %415 = vmatpush3.bf16.msra.mxu1 %v439_v15 }
  0x1b   :  { %397 = vmatpush3.bf16.msra.mxu0 %v430_v7  ;;  %416 = vmatprep.subr.bf16.mxu1 %v440_v16 }
  0x1c   :  { %398 = vmatprep.subr.bf16.mxu0 %v431_v8 }
  0x1e   :  { %417 = vmatpush3.bf16.msra.mxu1 %v440_v16 }
  0x1f   :  { %399 = vmatpush3.bf16.msra.mxu0 %v431_v8  ;;  %418 = vmatprep.subr.bf16.mxu1 %v441_v17 }
  0x22   :  { %401 = vmatmul.mubr.bf16.vlgmr.msra.gmra.mrb[0].mxu0 %v505_v9  ;;  %419 = vmatpush3.bf16.msra.mxu1 %v441_v17 }
  0xf5   :  { %v402_v18 = vpop.f32.mrb[0].mxu0 }
  0xf6   :  { %v146_v19 = vmul.f32 %v402_v18, %v402_v18  ;;  %v129_v20 = vpop.f32.mrb[1].mxu0 }
  0xf7   :  { %v144_v21 = vmul.f32 %v129_v20, %v129_v20  ;;  %v403_v22 = vpop.f32.mrb[2].mxu0 }
  0xf8   :  { %v150_v23 = vmul.f32 %v402_v18, %v146_v19  ;;  %v147_v24 = vmul.f32 %v403_v22, %v403_v22  ;;  %v132_v25 = vpop.f32.mrb[3].mxu0 }
  0xf9   :  { %v148_v26 = vmul.f32 %v144_v21, %v129_v20  ;;  %v145_v27 = vmul.f32 %v132_v25, %v132_v25 }
  0xfa   :  { %v154_v28 = vmul.f32 0.044715, %v150_v23  ;;  %v151_v29 = vmul.f32 %v403_v22, %v147_v24 }
  0xfb   :  { %v152_v30 = vmul.f32 0.044715, %v148_v26  ;;  %v149_v31 = vmul.f32 %v145_v27, %v132_v25 }
  0xfc   :  { %v158_v32 = vadd.f32 %v402_v18, %v154_v28  ;;  %v155_v33 = vmul.f32 0.044715, %v151_v29 }
  0xfd   :  { %v156_v34 = vadd.f32 %v152_v30, %v129_v20  ;;  %v153_v35 = vmul.f32 0.044715, %v149_v31 }
  0xfe   :  { %v162_v36 = vmul.f32 0.7978846, %v158_v32  ;;  %v159_v37 = vadd.f32 %v403_v22, %v155_v33 }
  0xff   :  { %v160_v38 = vmul.f32 0.7978846, %v156_v34  ;;  %v157_v39 = vadd.f32 %v153_v35, %v132_v25 }
 0x100   :  { %444 = vtanh.f32 %v162_v36  ;;  %v163_v40 = vmul.f32 0.7978846, %v159_v37 }
 0x101   :  { %446 = vtanh.f32 %v160_v38  ;;  %v161_v41 = vmul.f32 0.7978846, %v157_v39 }
 0x102   :  { %448 = vtanh.f32 %v163_v40 }
 0x103   :  { %450 = vtanh.f32 %v161_v41 }
 0x10a   :  { %v445_v42 = vpop.eup %444 }
 0x10b   :  { %v447_v43 = vpop.eup %446  ;;  %v170_v44 = vadd.f32 1.0, %v445_v42 }
 0x10c   :  { %v449_v45 = vpop.eup %448  ;;  %v168_v46 = vadd.f32 1.0, %v447_v43 }
 0x10d   :  { %v451_v47 = vpop.eup %450  ;;  %v174_v48 = vmul.f32 0.5, %v170_v44  ;;  %v171_v49 = vadd.f32 1.0, %v449_v45 }
 0x10e   :  { %v169_v50 = vadd.f32 1.0, %v451_v47  ;;  %v172_v51 = vmul.f32 0.5, %v168_v46 }
 0x10f   :  { %v175_v52 = vmul.f32 0.5, %v171_v49  ;;  %v178_v54 = vmul.f32 %v402_v18, %v174_v48 }
 0x110   :  { %v173_v53 = vmul.f32 0.5, %v169_v50  ;;  %v176_v56 = vmul.f32 %v172_v51, %v129_v20 }
 0x111   :  { %v179_v55 = vmul.f32 %v403_v22, %v175_v52 }
 0x112   :  { %v177_v57 = vmul.f32 %v173_v53, %v132_v25 }
 0x113   :  { %v181_v58 = vpack.c.bf16 %v179_v55, %v178_v54 }
 0x114   :  { %v180_v59 = vpack.c.bf16 %v177_v57, %v176_v56 }
 0x116   :  { %420 = vmatprep.mubr.bf16.mxu1 %v180_v59 }
 0x117   :  { %421 = vmatmul.mubr.bf16.vlgmr.msra.gmra.mrb[0].mxu1 %v181_v58 }
 0x1ea   :  { %v422_v62 = vpop.f32.mrb[0].mxu1 }
 0x1eb   :  { %v280_v1 = vpop.f32.mrb[1].mxu1  ;;  %v301_v3 = vadd.f32 %v422_v62, %v297_v60 }
 0x1ec   :  { %v423_v2 = vpop.f32.mrb[2].mxu1  ;;  %v299_v7 = vadd.f32 %v295_v63, %v280_v1 }
 0x1ed   :  { %v302_v5 = vadd.f32 %v423_v2, %v298_v61  ;;  %v283_v6 = vpop.f32.mrb[3].mxu1 }
 0x1ee   :  { %v300_v8 = vadd.f32 %v296_v0, %v283_v6 }
 0x1ef   :  { %v361_v10 = vpack.c.bf16 %v302_v5, %v301_v3 }
 0x1f0   :  { %v356_v11 = vpack.c.bf16 %v300_v8, %v299_v7 }
 0x1f1   :  { %363 = vst [vmem:[%s545_s3 + $0x8] sm:$0xff] %v361_v10  }
 0x1f2   :  { %357 = vst [vmem:[%s545_s3] sm:$0xff] %v356_v11  }

// kernel: sam_adaptor_forward.39
= control target key start
LH: loop header
LB: loop body
LE: loop exit
PB: predicated region body
PF: predicated region fallthrough
CT: control target
= control target key end

     0   :  { %vm19_vm0 = vcmask 261120   ;;  %v273_v1 = vmov 0.0   ;;  %vm204_vm1 = vcmask 257024   ;;  %s347_s1 = inlined_call_operand.vmem [shape: bf16[128,32], index: 1, kind: input, shape index: {}]   ;;  %s348_s0 = inlined_call_operand.vmem [shape: bf16[32,128], index: 0, kind: input, shape index: {}]   ;;  %s349_s2 = inlined_call_operand.vmem [shape: f32[1,32], index: 2, kind: input, shape index: {}]   ;;  %s350_s3 = inlined_call_operand.vmem [shape: bf16[32,32], index: 3, kind: output, shape index: {}]  }
   0x1   :  { %v263_v0 = vld [vmem:[%s347_s1] sm:$0xff]   ;;  %22 = vst.msk [vmem:[#allocation2 + $0x10] sm:$0xff] %vm19_vm0, %v273_v1  ;;  %20 = vst.msk [vmem:[#allocation2] sm:$0xff] %vm19_vm0, %v273_v1  ;;  %v264_v2 = vld [vmem:[%s347_s1 + $0x8] sm:$0xff]  }
   0x2   :  { %21 = vst.msk [vmem:[#allocation2 + $0x8] sm:$0xff] %vm19_vm0, %v273_v1  ;;  %23 = vst.msk [vmem:[#allocation2 + $0x18] sm:$0xff] %vm19_vm0, %v273_v1  ;;  %242 = vmatprep.subr.bf16.mxu0 %v263_v0  ;;  %v265_v3 = vld [vmem:[%s347_s1 + $0x10] sm:$0xff]   ;;  %v266_v4 = vld [vmem:[%s347_s1 + $0x18] sm:$0xff]  }
   0x3   :  { %243 = vmatpush3.bf16.msra.mxu0 %v263_v0  ;;  %v271_v5 = vld [vmem:[%s348_s0] sm:$0xff]   ;;  %v268_v7 = vld [vmem:[%s347_s1 + $0x28] sm:$0xff]   ;;  %v269_v8 = vld [vmem:[%s347_s1 + $0x30] sm:$0xff]  }
   0x4   :  { %244 = vmatprep.subr.bf16.mxu0 %v264_v2  ;;  %258 = vmatprep.mubr.bf16.mxu0 %v271_v5  ;;  %v267_v6 = vld [vmem:[%s347_s1 + $0x20] sm:$0xff]   ;;  %v270_v9 = vld [vmem:[%s347_s1 + $0x38] sm:$0xff]   ;;  %v272_v10 = vld [vmem:[%s348_s0 + $0x8] sm:$0xff]  }
   0x5   :  { %v223_v23 = vld [vmem:[%s349_s2] ss:$0 sm:$0xff] }
   0x7   :  { %245 = vmatpush3.bf16.msra.mxu0 %v264_v2 }
   0x8   :  { %246 = vmatprep.subr.bf16.mxu0 %v265_v3  ;;  %v26_v11 = vld [vmem:[#allocation2 + $0x10] sm:$0xff]  ;;  %v24_v12 = vld [vmem:[#allocation2] sm:$0xff] }
   0x9   :  { %v27_v14 = vld [vmem:[#allocation2 + $0x18] sm:$0xff]  ;;  %v25_v17 = vld [vmem:[#allocation2 + $0x8] sm:$0xff] }
   0xb   :  { %247 = vmatpush3.bf16.msra.mxu0 %v265_v3 }
   0xc   :  { %248 = vmatprep.subr.bf16.mxu0 %v266_v4 }
   0xf   :  { %249 = vmatpush3.bf16.msra.mxu0 %v266_v4 }
  0x10   :  { %250 = vmatprep.subr.bf16.mxu0 %v267_v6 }
  0x13   :  { %251 = vmatpush3.bf16.msra.mxu0 %v267_v6 }
  0x14   :  { %252 = vmatprep.subr.bf16.mxu0 %v268_v7 }
  0x17   :  { %253 = vmatpush3.bf16.msra.mxu0 %v268_v7 }
  0x18   :  { %254 = vmatprep.subr.bf16.mxu0 %v269_v8 }
  0x1b   :  { %255 = vmatpush3.bf16.msra.mxu0 %v269_v8 }
  0x1c   :  { %256 = vmatprep.subr.bf16.mxu0 %v270_v9 }
  0x1f   :  { %257 = vmatpush3.bf16.msra.mxu0 %v270_v9 }
  0x22   :  { %259 = vmatmul.mubr.bf16.vlgmr.msra.gmra.mrb[0].mxu0 %v272_v10 }
  0xf5   :  { %v260_v13 = vpop.f32.mrb[0].mxu0 }
  0xf6   :  { %v159_v15 = vadd.f32 %v260_v13, %v26_v11  ;;  %v142_v16 = vpop.f32.mrb[1].mxu0 }
  0xf7   :  { %v157_v18 = vadd.f32 %v142_v16, %v24_v12  ;;  %v261_v19 = vpop.f32.mrb[2].mxu0 }
  0xf8   :  { %164 = vst.msk [vmem:[#allocation2 + $0x10] sm:$0xff] %vm19_vm0, %v159_v15  ;;  %v160_v20 = vadd.f32 %v261_v19, %v27_v14  ;;  %v145_v21 = vpop.f32.mrb[3].mxu0 }
  0xf9   :  { %162 = vst.msk [vmem:[#allocation2] sm:$0xff] %vm19_vm0, %v157_v18  ;;  %v158_v22 = vadd.f32 %v145_v21, %v25_v17 }
  0xfa   :  { %165 = vst.msk [vmem:[#allocation2 + $0x18] sm:$0xff] %vm19_vm0, %v160_v20 }
  0xfb   :  { %163 = vst.msk [vmem:[#allocation2 + $0x8] sm:$0xff] %vm19_vm0, %v158_v22 }
  0xff   :  { %v171_v24 = vld [vmem:[#allocation2 + $0x10] sm:$0xff] }
 0x100   :  { %v182_v25 = vadd.f32 %v223_v23, %v171_v24  ;;  %v169_v26 = vld [vmem:[#allocation2] sm:$0xff] }
 0x101   :  { %v180_v27 = vadd.f32 %v223_v23, %v169_v26  ;;  %v172_v28 = vld [vmem:[#allocation2 + $0x18] sm:$0xff] }
 0x102   :  { %v186_v29 = vmax.f32 %v182_v25, 0.0  ;;  %v183_v30 = vadd.f32 %v223_v23, %v172_v28  ;;  %v170_v31 = vld [vmem:[#allocation2 + $0x8] sm:$0xff] }
 0x103   :  { %v184_v32 = vmax.f32 %v180_v27, 0.0  ;;  %v181_v33 = vadd.f32 %v223_v23, %v170_v31 }
 0x104   :  { %v230_v34 = vpack.c.bf16 %v186_v29, %v186_v29  ;;  %v187_v35 = vmax.f32 %v183_v30, 0.0 }
 0x105   :  { %v228_v36 = vpack.c.bf16 %v184_v32, %v184_v32  ;;  %v185_v37 = vmax.f32 %v181_v33, 0.0 }
 0x106   :  { %207 = vst.msk [vmem:[%s350_s3 + $0x8] sm:$0xf] %vm204_vm1, %v230_v34  ;;  %v231_v38 = vpack.c.bf16 %v187_v35, %v187_v35 }
 0x107   :  { %205 = vst.msk [vmem:[%s350_s3] sm:$0xf] %vm204_vm1, %v228_v36  ;;  %v229_v39 = vpack.c.bf16 %v185_v37, %v185_v37 }
 0x108   :  { %208 = vst.msk [vmem:[%s350_s3 + $0xc] sm:$0xf] %vm204_vm1, %v231_v38 }
 0x109   :  { %206 = vst.msk [vmem:[%s350_s3 + $0x4] sm:$0xf] %vm204_vm1, %v229_v39 }

// kernel: sam_adaptor_forward.41
= control target key start
LH: loop header
LB: loop body
LE: loop exit
PB: predicated region body
PF: predicated region fallthrough
CT: control target
= control target key end

     0   :  { %vm60_vm0 = vcmask 261120   ;;  %s285_s1 = inlined_call_operand.vmem [shape: bf16[32,128], index: 1, kind: input, shape index: {}]   ;;  %s286_s0 = inlined_call_operand.vmem [shape: bf16[32,32], index: 0, kind: input, shape index: {}]   ;;  %s287_s2 = inlined_call_operand.vmem [shape: f32[1,128], index: 2, kind: input, shape index: {}]   ;;  %s288_s3 = inlined_call_operand.vmem [shape: bf16[32,128], index: 3, kind: input, shape index: {}, may-alias: {3,4}]   ;;  %s289_s4 = inlined_call_operand.vmem [shape: bf16[32,128], index: 4, kind: output, shape index: {}, may-alias: {3,4}]  }
   0x1   :  { %v229_v0 = vld [vmem:[%s285_s1] sm:$0xff]   ;;  %v230_v1 = vld [vmem:[%s285_s1 + $0x8] sm:$0xff]  }
   0x2   :  { %221 = vmatprep.subr.bf16.mxu0 %v229_v0  ;;  %v231_v2 = vld [vmem:[%s286_s0] sm:$0xff]   ;;  %v232_v3 = vld [vmem:[%s286_s0 + $0x8] sm:$0xff]  }
   0x3   :  { %222 = vmatpush3.bf16.msra.mxu0 %v229_v0  ;;  %225 = vmatprep.mubr.msk.bf16.mxu0 %vm60_vm0, %v231_v2  ;;  %v188_v4 = vld [vmem:[%s287_s2] ss:$0 sm:$0xff]  ;;  %v215_v6 = vld [vmem:[%s288_s3 + $0x8] sm:$0xff]  }
   0x4   :  { %223 = vmatprep.subr.bf16.mxu0 %v230_v1  ;;  %v198_v9 = vld [vmem:[%s288_s3] sm:$0xff]   ;;  %v203_v13 = vunpack.c.l.bf16 %v215_v6  ;;  %v204_v15 = vunpack.c.h.bf16 %v215_v6 }
   0x5   :  { %v199_v18 = vunpack.c.l.bf16 %v198_v9  ;;  %v200_v20 = vunpack.c.h.bf16 %v198_v9 }
   0x7   :  { %224 = vmatpush3.bf16.msra.mxu0 %v230_v1 }
   0xa   :  { %226 = vmatmul.mubr.msk.bf16.vlgmr.msra.gmra.mrb[0].mxu0 %vm60_vm0, %v232_v3 }
  0xdd   :  { %v227_v5 = vpop.f32.mrb[0].mxu0 }
  0xde   :  { %v140_v7 = vadd.f32 %v227_v5, %v188_v4  ;;  %v101_v8 = vpop.f32.mrb[1].mxu0 }
  0xdf   :  { %v138_v10 = vadd.f32 %v188_v4, %v101_v8  ;;  %v228_v11 = vpop.f32.mrb[2].mxu0 }
  0xe0   :  { %v144_v12 = vmax.f32 %v140_v7, 0.0  ;;  %v141_v14 = vadd.f32 %v228_v11, %v188_v4  ;;  %v104_v16 = vpop.f32.mrb[3].mxu0 }
  0xe1   :  { %v142_v17 = vmax.f32 %v138_v10, 0.0  ;;  %v139_v19 = vadd.f32 %v188_v4, %v104_v16 }
  0xe2   :  { %v145_v21 = vmax.f32 %v141_v14, 0.0  ;;  %v156_v23 = vadd.f32 %v203_v13, %v144_v12 }
  0xe3   :  { %v143_v22 = vmax.f32 %v139_v19, 0.0  ;;  %v154_v25 = vadd.f32 %v199_v18, %v142_v17 }
  0xe4   :  { %v157_v24 = vadd.f32 %v204_v15, %v145_v21 }
  0xe5   :  { %v155_v26 = vadd.f32 %v200_v20, %v143_v22 }
  0xe6   :  { %v213_v27 = vpack.c.bf16 %v157_v24, %v156_v23 }
  0xe7   :  { %v208_v28 = vpack.c.bf16 %v155_v26, %v154_v25 }
  0xe8   :  { %216 = vst [vmem:[%s289_s4 + $0x8] sm:$0xff] %v213_v27  }
  0xe9   :  { %209 = vst [vmem:[%s289_s4] sm:$0xff] %v208_v28  }

// kernel: sam_adaptor_forward.54
= control target key start
LH: loop header
LB: loop body
LE: loop exit
PB: predicated region body
PF: predicated region fallthrough
CT: control target
= control target key end

     0   :  { %vm19_vm0 = vcmask 523264   ;;  %v269_v1 = vmov 0.0   ;;  %vm200_vm1 = vcmask 519168   ;;  %s343_s1 = inlined_call_operand.vmem [shape: bf16[128,64], index: 1, kind: input, shape index: {}]   ;;  %s344_s0 = inlined_call_operand.vmem [shape: bf16[32,128], index: 0, kind: input, shape index: {}]   ;;  %s345_s2 = inlined_call_operand.vmem [shape: f32[1,64], index: 2, kind: input, shape index: {}]   ;;  %s346_s3 = inlined_call_operand.vmem [shape: bf16[32,64], index: 3, kind: output, shape index: {}]  }
   0x1   :  { %v259_v0 = vld [vmem:[%s343_s1] sm:$0xff]   ;;  %22 = vst.msk [vmem:[#allocation2 + $0x10] sm:$0xff] %vm19_vm0, %v269_v1  ;;  %20 = vst.msk [vmem:[#allocation2] sm:$0xff] %vm19_vm0, %v269_v1  ;;  %v260_v2 = vld [vmem:[%s343_s1 + $0x8] sm:$0xff]  }
   0x2   :  { %21 = vst.msk [vmem:[#allocation2 + $0x8] sm:$0xff] %vm19_vm0, %v269_v1  ;;  %23 = vst.msk [vmem:[#allocation2 + $0x18] sm:$0xff] %vm19_vm0, %v269_v1  ;;  %238 = vmatprep.subr.bf16.mxu0 %v259_v0  ;;  %v261_v3 = vld [vmem:[%s343_s1 + $0x10] sm:$0xff]   ;;  %v262_v4 = vld [vmem:[%s343_s1 + $0x18] sm:$0xff]  }
   0x3   :  { %239 = vmatpush3.bf16.msra.mxu0 %v259_v0  ;;  %v267_v5 = vld [vmem:[%s344_s0] sm:$0xff]   ;;  %v264_v7 = vld [vmem:[%s343_s1 + $0x28] sm:$0xff]   ;;  %v265_v8 = vld [vmem:[%s343_s1 + $0x30] sm:$0xff]  }
   0x4   :  { %240 = vmatprep.subr.bf16.mxu0 %v260_v2  ;;  %254 = vmatprep.mubr.bf16.mxu0 %v267_v5  ;;  %v263_v6 = vld [vmem:[%s343_s1 + $0x20] sm:$0xff]   ;;  %v266_v9 = vld [vmem:[%s343_s1 + $0x38] sm:$0xff]   ;;  %v268_v10 = vld [vmem:[%s344_s0 + $0x8] sm:$0xff]  }
   0x5   :  { %v219_v23 = vld [vmem:[%s345_s2] ss:$0 sm:$0xff] }
   0x7   :  { %241 = vmatpush3.bf16.msra.mxu0 %v260_v2 }
   0x8   :  { %242 = vmatprep.subr.bf16.mxu0 %v261_v3  ;;  %v26_v11 = vld [vmem:[#allocation2 + $0x10] sm:$0xff]  ;;  %v24_v12 = vld [vmem:[#allocation2] sm:$0xff] }
   0x9   :  { %v27_v14 = vld [vmem:[#allocation2 + $0x18] sm:$0xff]  ;;  %v25_v17 = vld [vmem:[#allocation2 + $0x8] sm:$0xff] }
   0xb   :  { %243 = vmatpush3.bf16.msra.mxu0 %v261_v3 }
   0xc   :  { %244 = vmatprep.subr.bf16.mxu0 %v262_v4 }
   0xf   :  { %245 = vmatpush3.bf16.msra.mxu0 %v262_v4 }
  0x10   :  { %246 = vmatprep.subr.bf16.mxu0 %v263_v6 }
  0x13   :  { %247 = vmatpush3.bf16.msra.mxu0 %v263_v6 }
  0x14   :  { %248 = vmatprep.subr.bf16.mxu0 %v264_v7 }
  0x17   :  { %249 = vmatpush3.bf16.msra.mxu0 %v264_v7 }
  0x18   :  { %250 = vmatprep.subr.bf16.mxu0 %v265_v8 }
  0x1b   :  { %251 = vmatpush3.bf16.msra.mxu0 %v265_v8 }
  0x1c   :  { %252 = vmatprep.subr.bf16.mxu0 %v266_v9 }
  0x1f   :  { %253 = vmatpush3.bf16.msra.mxu0 %v266_v9 }
  0x22   :  { %255 = vmatmul.mubr.bf16.vlgmr.msra.gmra.mrb[0].mxu0 %v268_v10 }
  0xf5   :  { %v256_v13 = vpop.f32.mrb[0].mxu0 }
  0xf6   :  { %v159_v15 = vadd.f32 %v256_v13, %v26_v11  ;;  %v142_v16 = vpop.f32.mrb[1].mxu0 }
  0xf7   :  { %v157_v18 = vadd.f32 %v142_v16, %v24_v12  ;;  %v257_v19 = vpop.f32.mrb[2].mxu0 }
  0xf8   :  { %164 = vst.msk [vmem:[#allocation2 + $0x10] sm:$0xff] %vm19_vm0, %v159_v15  ;;  %v160_v20 = vadd.f32 %v257_v19, %v27_v14  ;;  %v145_v21 = vpop.f32.mrb[3].mxu0 }
  0xf9   :  { %162 = vst.msk [vmem:[#allocation2] sm:$0xff] %vm19_vm0, %v157_v18  ;;  %v158_v22 = vadd.f32 %v145_v21, %v25_v17 }
  0xfa   :  { %165 = vst.msk [vmem:[#allocation2 + $0x18] sm:$0xff] %vm19_vm0, %v160_v20 }
  0xfb   :  { %163 = vst.msk [vmem:[#allocation2 + $0x8] sm:$0xff] %vm19_vm0, %v158_v22 }
  0xff   :  { %v171_v24 = vld [vmem:[#allocation2 + $0x10] sm:$0xff] }
 0x100   :  { %v182_v25 = vadd.f32 %v219_v23, %v171_v24  ;;  %v169_v26 = vld [vmem:[#allocation2] sm:$0xff] }
 0x101   :  { %v180_v27 = vadd.f32 %v219_v23, %v169_v26  ;;  %v172_v28 = vld [vmem:[#allocation2 + $0x18] sm:$0xff] }
 0x102   :  { %v226_v29 = vpack.c.bf16 %v182_v25, %v182_v25  ;;  %v183_v30 = vadd.f32 %v219_v23, %v172_v28  ;;  %v170_v31 = vld [vmem:[#allocation2 + $0x8] sm:$0xff] }
 0x103   :  { %v224_v32 = vpack.c.bf16 %v180_v27, %v180_v27  ;;  %v181_v33 = vadd.f32 %v219_v23, %v170_v31 }
 0x104   :  { %203 = vst.msk [vmem:[%s346_s3 + $0x8] sm:$0xf] %vm200_vm1, %v226_v29  ;;  %v227_v34 = vpack.c.bf16 %v183_v30, %v183_v30 }
 0x105   :  { %201 = vst.msk [vmem:[%s346_s3] sm:$0xf] %vm200_vm1, %v224_v32  ;;  %v225_v35 = vpack.c.bf16 %v181_v33, %v181_v33 }
 0x106   :  { %204 = vst.msk [vmem:[%s346_s3 + $0xc] sm:$0xf] %vm200_vm1, %v227_v34 }
 0x107   :  { %202 = vst.msk [vmem:[%s346_s3 + $0x4] sm:$0xf] %vm200_vm1, %v225_v35 }

// kernel: sam_adaptor_forward.56
= control target key start
LH: loop header
LB: loop body
LE: loop exit
PB: predicated region body
PF: predicated region fallthrough
CT: control target
= control target key end

     0   :  { %vm19_vm0 = vcmask 523264   ;;  %v273_v1 = vmov 0.0   ;;  %vm204_vm1 = vcmask 519168   ;;  %s347_s1 = inlined_call_operand.vmem [shape: bf16[128,64], index: 1, kind: input, shape index: {}]   ;;  %s348_s0 = inlined_call_operand.vmem [shape: bf16[32,128], index: 0, kind: input, shape index: {}]   ;;  %s349_s2 = inlined_call_operand.vmem [shape: f32[1,64], index: 2, kind: input, shape index: {}]   ;;  %s350_s3 = inlined_call_operand.vmem [shape: bf16[32,64], index: 3, kind: output, shape index: {}]  }
   0x1   :  { %v263_v0 = vld [vmem:[%s347_s1] sm:$0xff]   ;;  %22 = vst.msk [vmem:[#allocation2 + $0x10] sm:$0xff] %vm19_vm0, %v273_v1  ;;  %20 = vst.msk [vmem:[#allocation2] sm:$0xff] %vm19_vm0, %v273_v1  ;;  %v264_v2 = vld [vmem:[%s347_s1 + $0x8] sm:$0xff]  }
   0x2   :  { %21 = vst.msk [vmem:[#allocation2 + $0x8] sm:$0xff] %vm19_vm0, %v273_v1  ;;  %23 = vst.msk [vmem:[#allocation2 + $0x18] sm:$0xff] %vm19_vm0, %v273_v1  ;;  %242 = vmatprep.subr.bf16.mxu0 %v263_v0  ;;  %v265_v3 = vld [vmem:[%s347_s1 + $0x10] sm:$0xff]   ;;  %v266_v4 = vld [vmem:[%s347_s1 + $0x18] sm:$0xff]  }
   0x3   :  { %243 = vmatpush3.bf16.msra.mxu0 %v263_v0  ;;  %v271_v5 = vld [vmem:[%s348_s0] sm:$0xff]   ;;  %v268_v7 = vld [vmem:[%s347_s1 + $0x28] sm:$0xff]   ;;  %v269_v8 = vld [vmem:[%s347_s1 + $0x30] sm:$0xff]  }
   0x4   :  { %244 = vmatprep.subr.bf16.mxu0 %v264_v2  ;;  %258 = vmatprep.mubr.bf16.mxu0 %v271_v5  ;;  %v267_v6 = vld [vmem:[%s347_s1 + $0x20] sm:$0xff]   ;;  %v270_v9 = vld [vmem:[%s347_s1 + $0x38] sm:$0xff]   ;;  %v272_v10 = vld [vmem:[%s348_s0 + $0x8] sm:$0xff]  }
   0x5   :  { %v223_v23 = vld [vmem:[%s349_s2] ss:$0 sm:$0xff] }
   0x7   :  { %245 = vmatpush3.bf16.msra.mxu0 %v264_v2 }
   0x8   :  { %246 = vmatprep.subr.bf16.mxu0 %v265_v3  ;;  %v26_v11 = vld [vmem:[#allocation2 + $0x10] sm:$0xff]  ;;  %v24_v12 = vld [vmem:[#allocation2] sm:$0xff] }
   0x9   :  { %v27_v14 = vld [vmem:[#allocation2 + $0x18] sm:$0xff]  ;;  %v25_v17 = vld [vmem:[#allocation2 + $0x8] sm:$0xff] }
   0xb   :  { %247 = vmatpush3.bf16.msra.mxu0 %v265_v3 }
   0xc   :  { %248 = vmatprep.subr.bf16.mxu0 %v266_v4 }
   0xf   :  { %249 = vmatpush3.bf16.msra.mxu0 %v266_v4 }
  0x10   :  { %250 = vmatprep.subr.bf16.mxu0 %v267_v6 }
  0x13   :  { %251 = vmatpush3.bf16.msra.mxu0 %v267_v6 }
  0x14   :  { %252 = vmatprep.subr.bf16.mxu0 %v268_v7 }
  0x17   :  { %253 = vmatpush3.bf16.msra.mxu0 %v268_v7 }
  0x18   :  { %254 = vmatprep.subr.bf16.mxu0 %v269_v8 }
  0x1b   :  { %255 = vmatpush3.bf16.msra.mxu0 %v269_v8 }
  0x1c   :  { %256 = vmatprep.subr.bf16.mxu0 %v270_v9 }
  0x1f   :  { %257 = vmatpush3.bf16.msra.mxu0 %v270_v9 }
  0x22   :  { %259 = vmatmul.mubr.bf16.vlgmr.msra.gmra.mrb[0].mxu0 %v272_v10 }
  0xf5   :  { %v260_v13 = vpop.f32.mrb[0].mxu0 }
  0xf6   :  { %v159_v15 = vadd.f32 %v260_v13, %v26_v11  ;;  %v142_v16 = vpop.f32.mrb[1].mxu0 }
  0xf7   :  { %v157_v18 = vadd.f32 %v142_v16, %v24_v12  ;;  %v261_v19 = vpop.f32.mrb[2].mxu0 }
  0xf8   :  { %164 = vst.msk [vmem:[#allocation2 + $0x10] sm:$0xff] %vm19_vm0, %v159_v15  ;;  %v160_v20 = vadd.f32 %v261_v19, %v27_v14  ;;  %v145_v21 = vpop.f32.mrb[3].mxu0 }
  0xf9   :  { %162 = vst.msk [vmem:[#allocation2] sm:$0xff] %vm19_vm0, %v157_v18  ;;  %v158_v22 = vadd.f32 %v145_v21, %v25_v17 }
  0xfa   :  { %165 = vst.msk [vmem:[#allocation2 + $0x18] sm:$0xff] %vm19_vm0, %v160_v20 }
  0xfb   :  { %163 = vst.msk [vmem:[#allocation2 + $0x8] sm:$0xff] %vm19_vm0, %v158_v22 }
  0xff   :  { %v171_v24 = vld [vmem:[#allocation2 + $0x10] sm:$0xff] }
 0x100   :  { %v182_v25 = vadd.f32 %v223_v23, %v171_v24  ;;  %v169_v26 = vld [vmem:[#allocation2] sm:$0xff] }
 0x101   :  { %v180_v27 = vadd.f32 %v223_v23, %v169_v26  ;;  %v172_v28 = vld [vmem:[#allocation2 + $0x18] sm:$0xff] }
 0x102   :  { %v186_v29 = vmax.f32 %v182_v25, 0.0  ;;  %v183_v30 = vadd.f32 %v223_v23, %v172_v28  ;;  %v170_v31 = vld [vmem:[#allocation2 + $0x8] sm:$0xff] }
 0x103   :  { %v184_v32 = vmax.f32 %v180_v27, 0.0  ;;  %v181_v33 = vadd.f32 %v223_v23, %v170_v31 }
 0x104   :  { %v230_v34 = vpack.c.bf16 %v186_v29, %v186_v29  ;;  %v187_v35 = vmax.f32 %v183_v30, 0.0 }
 0x105   :  { %v228_v36 = vpack.c.bf16 %v184_v32, %v184_v32  ;;  %v185_v37 = vmax.f32 %v181_v33, 0.0 }
 0x106   :  { %207 = vst.msk [vmem:[%s350_s3 + $0x8] sm:$0xf] %vm204_vm1, %v230_v34  ;;  %v231_v38 = vpack.c.bf16 %v187_v35, %v187_v35 }
 0x107   :  { %205 = vst.msk [vmem:[%s350_s3] sm:$0xf] %vm204_vm1, %v228_v36  ;;  %v229_v39 = vpack.c.bf16 %v185_v37, %v185_v37 }
 0x108   :  { %208 = vst.msk [vmem:[%s350_s3 + $0xc] sm:$0xf] %vm204_vm1, %v231_v38 }
 0x109   :  { %206 = vst.msk [vmem:[%s350_s3 + $0x4] sm:$0xf] %vm204_vm1, %v229_v39 }

// kernel: sam_adaptor_forward.55
= control target key start
LH: loop header
LB: loop body
LE: loop exit
PB: predicated region body
PF: predicated region fallthrough
CT: control target
= control target key end

     0   :  { %vm20_vm0 = vcmask 523264   ;;  %s971_s0 = inlined_call_operand.vmem [shape: bf16[32,576], index: 0, kind: input, shape index: {}]   ;;  %s972_s1 = inlined_call_operand.vmem [shape: bf16[576,64], index: 1, kind: input, shape index: {}]   ;;  %s973_s2 = inlined_call_operand.vmem [shape: f32[1,64], index: 2, kind: input, shape index: {}]   ;;  %s974_s3 = inlined_call_operand.hbm [shape: f32[32,64], index: 3, kind: output, shape index: {}]  }
   0x1   :  { %v706_v0 = vld [vmem:[%s972_s1 + $0x40] sm:$0xff]   ;;  %v710_v4 = vld [vmem:[%s972_s1 + $0x48] sm:$0xff]   ;;  %v714_v8 = vld [vmem:[%s972_s1 + $0x50] sm:$0xff]  }
   0x2   :  { %v707_v1 = vld [vmem:[%s972_s1 + $0xc0] sm:$0xff]   ;;  %628 = vmatprep.subr.bf16.mxu0 %v706_v0  ;;  %v711_v5 = vld [vmem:[%s972_s1 + $0xc8] sm:$0xff]   ;;  %v715_v9 = vld [vmem:[%s972_s1 + $0xd0] sm:$0xff]  }
   0x3   :  { %v708_v2 = vld [vmem:[%s972_s1] sm:$0xff]   ;;  %656 = vmatprep.subr.bf16.mxu1 %v707_v1  ;;  %v712_v6 = vld [vmem:[%s972_s1 + $0x8] sm:$0xff]   ;;  %v716_v10 = vld [vmem:[%s972_s1 + $0x10] sm:$0xff]  }
   0x4   :  { %v709_v3 = vld [vmem:[%s972_s1 + $0x80] sm:$0xff]   ;;  %629 = vmatpush3.bf16.msra.mxu0 %v708_v2  ;;  %v713_v7 = vld [vmem:[%s972_s1 + $0x88] sm:$0xff]   ;;  %v717_v11 = vld [vmem:[%s972_s1 + $0x90] sm:$0xff]  }
   0x5   :  { %657 = vmatpush3.bf16.msra.mxu1 %v709_v3  ;;  %630 = vmatprep.subr.bf16.mxu0 %v710_v4  ;;  %v718_v12 = vld [vmem:[%s972_s1 + $0x58] sm:$0xff]   ;;  %v722_v16 = vld [vmem:[%s972_s1 + $0x60] sm:$0xff]   ;;  %v726_v20 = vld [vmem:[%s972_s1 + $0x68] sm:$0xff]  }
   0x6   :  { %658 = vmatprep.subr.bf16.mxu1 %v711_v5  ;;  %v719_v13 = vld [vmem:[%s972_s1 + $0xd8] sm:$0xff]   ;;  %v723_v17 = vld [vmem:[%s972_s1 + $0xe0] sm:$0xff]   ;;  %v727_v21 = vld [vmem:[%s972_s1 + $0xe8] sm:$0xff]  }
   0x7   :  { %v720_v14 = vld [vmem:[%s972_s1 + $0x18] sm:$0xff]   ;;  %v724_v18 = vld [vmem:[%s972_s1 + $0x20] sm:$0xff]   ;;  %v728_v22 = vld [vmem:[%s972_s1 + $0x28] sm:$0xff]  }
   0x8   :  { %631 = vmatpush3.bf16.msra.mxu0 %v712_v6  ;;  %v721_v15 = vld [vmem:[%s972_s1 + $0x98] sm:$0xff]   ;;  %v725_v19 = vld [vmem:[%s972_s1 + $0xa0] sm:$0xff]   ;;  %v729_v23 = vld [vmem:[%s972_s1 + $0xa8] sm:$0xff]  }
   0x9   :  { %659 = vmatpush3.bf16.msra.mxu1 %v713_v7  ;;  %632 = vmatprep.subr.bf16.mxu0 %v714_v8  ;;  %v730_v24 = vld [vmem:[%s972_s1 + $0x70] sm:$0xff]   ;;  %v734_v28 = vld [vmem:[%s972_s1 + $0x78] sm:$0xff]   ;;  %v743_v35 = vld [vmem:[%s971_s0 + $0xc] ss:$20 sps:$4 sm:$0xff]  }
   0xa   :  { %660 = vmatprep.subr.bf16.mxu1 %v715_v9  ;;  %v731_v25 = vld [vmem:[%s972_s1 + $0xf0] sm:$0xff]   ;;  %v735_v29 = vld [vmem:[%s972_s1 + $0xf8] sm:$0xff]   ;;  %v744_v36 = vld [vmem:[%s972_s1 + $0x100] sm:$0xff]   ;;  %467 = vmatprep.mubr.bf16.mxu1 %v743_v35 }
   0xb   :  { %v732_v26 = vld [vmem:[%s972_s1 + $0x30] sm:$0xff]   ;;  %v736_v30 = vld [vmem:[%s972_s1 + $0x38] sm:$0xff]   ;;  %v745_v37 = vld [vmem:[%s972_s1 + $0x108] sm:$0xff]  }
   0xc   :  { %633 = vmatpush3.bf16.msra.mxu0 %v716_v10  ;;  %v733_v27 = vld [vmem:[%s972_s1 + $0xb0] sm:$0xff]   ;;  %v737_v31 = vld [vmem:[%s972_s1 + $0xb8] sm:$0xff]   ;;  %v746_v38 = vld [vmem:[%s971_s0 + $0x2c] ss:$20 sps:$4 sm:$0xff]  }
   0xd   :  { %661 = vmatpush3.bf16.msra.mxu1 %v717_v11  ;;  %634 = vmatprep.subr.bf16.mxu0 %v718_v12  ;;  %v738_v32 = vld [vmem:[%s971_s0] ss:$20 sps:$4 sm:$0xff]   ;;  %v740_v33 = vld [vmem:[%s971_s0 + $0x4] ss:$20 sps:$4 sm:$0xff]   ;;  %v741_v34 = vld [vmem:[%s971_s0 + $0x8] ss:$20 sps:$4 sm:$0xff]  }
   0xe   :  { %662 = vmatprep.subr.bf16.mxu1 %v719_v13  ;;  %418 = vmatprep.mubr.bf16.mxu0 %v740_v33  ;;  %v748_v39 = vld [vmem:[%s971_s0 + $0x34] ss:$20 sps:$4 sm:$0xff]   ;;  %v751_v42 = vld [vmem:[%s971_s0 + $0x30] ss:$20 sps:$4 sm:$0xff]   ;;  %v753_v44 = vld [vmem:[%s972_s1 + $0x118] sm:$0xff]  }
   0xf   :  { %v750_v40 = vld [vmem:[%s971_s0 + $0x28] ss:$20 sps:$4 sm:$0xff]   ;;  %v752_v41 = vld [vmem:[%s972_s1 + $0x110] sm:$0xff]  }
  0x10   :  { %635 = vmatpush3.bf16.msra.mxu0 %v720_v14  ;;  %v754_v43 = vld [vmem:[%s971_s0 + $0x10] ss:$20 sps:$4 sm:$0xff]  }
  0x11   :  { %663 = vmatpush3.bf16.msra.mxu1 %v721_v15  ;;  %636 = vmatprep.subr.bf16.mxu0 %v722_v16 }
  0x12   :  { %664 = vmatprep.subr.bf16.mxu1 %v723_v17 }
  0x14   :  { %637 = vmatpush3.bf16.msra.mxu0 %v724_v18 }
  0x15   :  { %665 = vmatpush3.bf16.msra.mxu1 %v725_v19  ;;  %638 = vmatprep.subr.bf16.mxu0 %v726_v20 }
  0x16   :  { %666 = vmatprep.subr.bf16.mxu1 %v727_v21 }
  0x18   :  { %639 = vmatpush3.bf16.msra.mxu0 %v728_v22 }
  0x19   :  { %667 = vmatpush3.bf16.msra.mxu1 %v729_v23  ;;  %640 = vmatprep.subr.bf16.mxu0 %v730_v24 }
  0x1a   :  { %668 = vmatprep.subr.bf16.mxu1 %v731_v25 }
  0x1c   :  { %641 = vmatpush3.bf16.msra.mxu0 %v732_v26 }
  0x1d   :  { %669 = vmatpush3.bf16.msra.mxu1 %v733_v27  ;;  %642 = vmatprep.subr.bf16.mxu0 %v734_v28 }
  0x1e   :  { %670 = vmatprep.subr.bf16.mxu1 %v735_v29 }
  0x20   :  { %643 = vmatpush3.bf16.msra.mxu0 %v736_v30 }
  0x21   :  { %671 = vmatpush3.bf16.msra.mxu1 %v737_v31  ;;  %690 = vmatprep.subr.bf16.mxu0 %v744_v36 }
  0x23   :  { %419 = vmatmul.mubr.bf16.vlgmr.msra.gmra.mrb[0].mxu0 %v738_v32 }
  0x24   :  { %468 = vmatmul.mubr.bf16.vlgmr.msra.gmra.mrb[0].mxu1 %v741_v34  ;;  %691 = vmatpush3.bf16.msra.mxu0 %v744_v36 }
  0x25   :  { %692 = vmatprep.subr.bf16.mxu0 %v745_v37  ;;  %426 = vmatprep.mubr.bf16.mxu0 %v746_v38 }
  0x26   :  { %475 = vmatprep.mubr.bf16.mxu1 %v748_v39 }
  0x28   :  { %693 = vmatpush3.bf16.msra.mxu0 %v745_v37 }
  0x29   :  { %694 = vmatprep.subr.bf16.mxu0 %v752_v41 }
  0x2a   :  { %8 = vsyncpa [#allocation4], 0  ;;  %v755_v45 = vld [vmem:[%s971_s0 + $0x38] ss:$20 sps:$4 sm:$0xff]   ;;  %v780_v46 = vmov 0.0   ;;  %s781_s23 = smov [#allocation3]  }
  0x2b   :  { %427 = vmatmul.mubr.bf16.gmra.mrb[4].mxu0 %v750_v40  ;;  %23 = vst.msk [vmem:[#allocation2 + $0x10] sm:$0xff] %vm20_vm0, %v780_v46  ;;  %21 = vst.msk [vmem:[#allocation2] sm:$0xff] %vm20_vm0, %v780_v46  ;;  %v627_v27 = vld [vmem:[%s973_s2] ss:$0 sm:$0xff]  ;;  %s568_s24 = sshll.u32 %s781_s23, 4  ;;  %s569_s24 = int_to_ptr.vmem [resolvable:$true] %s568_s24 }
  0x2c   :  { %476 = vmatmul.mubr.bf16.gmra.mrb[4].mxu1 %v751_v42  ;;  %698 = vmatprep.mubr.msk.bf16.mxu0 %vm20_vm0, %v754_v43  ;;  %22 = vst.msk [vmem:[#allocation2 + $0x8] sm:$0xff] %vm20_vm0, %v780_v46  ;;  %24 = vst.msk [vmem:[#allocation2 + $0x18] sm:$0xff] %vm20_vm0, %v780_v46  ;;  %s756_s2 = scalar_lea.vmem %s569_s24, 512  ;;  %p761_p1 = scmp.lt.s32.totalorder %s569_s24, %s569_s24 }
  0x2d   :  { %695 = vmatpush3.bf16.msra.mxu0 %v752_v41  ;;  %p757_p0 = scmp.ne.s32.totalorder %s569_s24, %s756_s2  ;;  %p762_p2 = scmp.lt.s32.totalorder %s756_s2, %s756_s2 }
  0x2e   :  { %696 = vmatprep.subr.bf16.mxu0 %v753_v44 }
  0x2f   :  { %p763_p3 = por %p762_p2, %p761_p1 }
  0x31   :  { %697 = vmatpush3.bf16.msra.mxu0 %v753_v44  ;;  %p764_p4 = pnand %p763_p3, %p757_p0 }
  0x32   :  { %v27_v11 = vld [vmem:[#allocation2 + $0x10] sm:$0xff]  ;;  %v25_v14 = vld [vmem:[#allocation2] sm:$0xff] }
  0x33   :  { %v28_v17 = vld [vmem:[#allocation2 + $0x18] sm:$0xff]  ;;  %v26_v21 = vld [vmem:[#allocation2 + $0x8] sm:$0xff] }
  0x34   :  { %699 = vmatmul.mubr.msk.bf16.vlgmr.msra.gmra.mrb[8].mxu0 %vm20_vm0, %v755_v45 }
  0xf6   :  { %v644_v47 = vpop.f32.mrb[0].mxu0 }
  0xf7   :  { %v672_v48 = vpop.f32.mrb[0].mxu1  ;;  %v645_v49 = vpop.f32.mrb[1].mxu0 }
  0xf8   :  { %v646_v50 = vadd.f32 %v645_v49, %v644_v47  ;;  %v673_v51 = vpop.f32.mrb[1].mxu1  ;;  %v647_v52 = vpop.f32.mrb[2].mxu0 }
  0xf9   :  { %v674_v53 = vadd.f32 %v673_v51, %v672_v48  ;;  %v675_v54 = vpop.f32.mrb[2].mxu1  ;;  %v648_v55 = vpop.f32.mrb[3].mxu0 }
  0xfa   :  { %v649_v56 = vadd.f32 %v648_v55, %v647_v52  ;;  %v676_v57 = vpop.f32.mrb[3].mxu1 }
  0xfb   :  { %v677_v58 = vadd.f32 %v676_v57, %v675_v54  ;;  %v470_v59 = vadd.f32 %v674_v53, %v646_v50 }
  0xfd   :  { %v473_v60 = vadd.f32 %v677_v58, %v649_v56 }
  0xfe   :  { %v650_v61 = vpop.f32.mrb[4].mxu0 }
  0xff   :  { %v678_v62 = vpop.f32.mrb[4].mxu1  ;;  %v651_v63 = vpop.f32.mrb[5].mxu0 }
 0x100   :  { %v652_v0 = vadd.f32 %v651_v63, %v650_v61  ;;  %v679_v1 = vpop.f32.mrb[5].mxu1  ;;  %v653_v2 = vpop.f32.mrb[6].mxu0 }
 0x101   :  { %v680_v3 = vadd.f32 %v679_v1, %v678_v62  ;;  %v681_v4 = vpop.f32.mrb[6].mxu1  ;;  %v654_v5 = vpop.f32.mrb[7].mxu0 }
 0x102   :  { %v655_v6 = vadd.f32 %v654_v5, %v653_v2  ;;  %v682_v7 = vpop.f32.mrb[7].mxu1 }
 0x103   :  { %v683_v8 = vadd.f32 %v682_v7, %v681_v4  ;;  %v478_v9 = vadd.f32 %v680_v3, %v652_v0 }
 0x105   :  { %v481_v10 = vadd.f32 %v683_v8, %v655_v6 }
 0x107   :  { %v700_v12 = vpop.f32.mrb[8].mxu0 }
 0x108   :  { %v527_v13 = vadd.f32 %v700_v12, %v478_v9  ;;  %v518_v15 = vpop.f32.mrb[9].mxu0 }
 0x109   :  { %v519_v16 = vadd.f32 %v518_v15, %v470_v59  ;;  %v701_v18 = vpop.f32.mrb[10].mxu0 }
 0x10a   :  { %v535_v19 = vadd.f32 %v527_v13, %v27_v11  ;;  %v530_v20 = vadd.f32 %v701_v18, %v481_v10  ;;  %v521_v22 = vpop.f32.mrb[11].mxu0 }
 0x10b   :  { %v533_v23 = vadd.f32 %v519_v16, %v25_v14  ;;  %v522_v24 = vadd.f32 %v521_v22, %v473_v60 }
 0x10c   :  { %539 = vst.msk [vmem:[#allocation2 + $0x10] sm:$0xff] %vm20_vm0, %v535_v19  ;;  %v536_v25 = vadd.f32 %v530_v20, %v28_v17 }
 0x10d   :  { %537 = vst.msk [vmem:[#allocation2] sm:$0xff] %vm20_vm0, %v533_v23  ;;  %v534_v26 = vadd.f32 %v522_v24, %v26_v21 }
 0x10e   :  { %540 = vst.msk [vmem:[#allocation2 + $0x18] sm:$0xff] %vm20_vm0, %v536_v25 }
 0x10f   :  { %538 = vst.msk [vmem:[#allocation2 + $0x8] sm:$0xff] %vm20_vm0, %v534_v26 }
 0x113   :  { %v546_v28 = vld [vmem:[#allocation2 + $0x10] sm:$0xff] }
 0x114   :  { %v544_v29 = vld [vmem:[#allocation2] sm:$0xff]  ;;  %v557_v30 = vadd.f32 %v627_v27, %v546_v28 }
 0x115   :  { %v547_v31 = vld [vmem:[#allocation2 + $0x18] sm:$0xff]  ;;  %v555_v32 = vadd.f32 %v627_v27, %v544_v29 }
 0x116   :  { %v545_v33 = vld [vmem:[#allocation2 + $0x8] sm:$0xff]  ;;  %v558_v34 = vadd.f32 %v627_v27, %v547_v31  ;;  %561 = vst.msk [vmem:[#allocation3 + $0x10] sm:$0xff] %vm20_vm0, %v557_v30 }
 0x117   :  { %v556_v35 = vadd.f32 %v627_v27, %v545_v33  ;;  %559 = vst.msk [vmem:[#allocation3] sm:$0xff] %vm20_vm0, %v555_v32 }
 0x118   :  { %562 = vst.msk [vmem:[#allocation3 + $0x18] sm:$0xff] %vm20_vm0, %v558_v34 }
 0x119   :  { %560 = vst.msk [vmem:[#allocation3 + $0x8] sm:$0xff] %vm20_vm0, %v556_v35 }
 0x11a   :  { %767 = shalt.err (!%p764_p4)
}
 0x11b   :  { %s768_s27 = scalar_lea.hbm %s974_s3, 512 }
 0x11c   :  { %p769_p5 = scmp.ne.s32.totalorder %s974_s3, %s768_s27  ;;  %p772_p6 = scmp.lt.u32.totalorder %s768_s27, %s974_s3 }
 0x11e   :  { %p774_p7 = pnand %p772_p6, %p769_p5 }
 0x120   :  { %777 = shalt.err (!%p774_p7)
}
 0x121   :  { %s782_s5 = smov 128   ;;  %s783_s6 = smov 8  }
 0x122   :  { %574 = dma.vmem_to_hbm [thread:$0]  %s569_s24, 512, %s974_s3, [#allocation4], %s782_s5, %s782_s5, %s783_s6  }
 0x123   :  { %778 = dma.done.wait [#allocation4], 512  }
 0x124   :  { %779 = vsyncadd [#allocation4], 4294966784 }
 0x125   :  { %578 = vsyncpa [#allocation4], 1 }

</bundles_post_ra>
